<compile_context>
chip_gen: v7x
topology: tpu7x:2x2x1
jax: 0.10.0
libtpu: 0.0.40
codegen_flags: <defaults>
</compile_context>

<pallas_src>
import math

import jax
import jax.numpy as jnp
from jax.experimental import pallas as pl
from jax.experimental.pallas import tpu as pltpu

NUM_HEADS = 4
LN_EPS = 1e-6


def _layer_norm(v, alpha, beta):
    # Matches the tutorial LayerNormalization: alpha*(x-mean)/(std+eps)+bias
    # with torch-style *unbiased* std over the last dim.  Kept as
    # sqrt + reciprocal (not rsqrt(var+eps)) to preserve eps-on-std
    # semantics; the divide goes through the EUP (off the VALU path).
    n = v.shape[-1]
    mean = jnp.mean(v, axis=-1, keepdims=True)
    var = jnp.sum((v - mean) ** 2, axis=-1, keepdims=True) / (n - 1)
    inv = pl.reciprocal(jnp.sqrt(var) + LN_EPS, approx=True)
    return alpha * (v - mean) * inv + beta


def encoder_block_kernel(x_ref, mask_ref,
                         wq_ref, bq_ref, wk_ref, bk_ref, wv_ref, bv_ref,
                         wo_ref, bo_ref,
                         ln1_a_ref, ln1_b_ref,
                         w1_ref, b1_ref, w2_ref, b2_ref,
                         ln2_a_ref, ln2_b_ref,
                         o_ref,
                         ctx_ref):
    Bt, S, D = x_ref.shape
    dk = D // NUM_HEADS
    BS = Bt * S

    x = x_ref[...].astype(jnp.float32).reshape(BS, D)          # (BS, D) rows
    mask = mask_ref[...]                                        # (Bt, 1, S)
    # Additive mask computed once (broadcast over query dim & heads).
    neg = jnp.where(mask == 0.0, jnp.float32(-1e9), jnp.float32(0.0))

    # ---- residual connection 0: x + W_o(SelfAttention(LN1(x))) -------------
    xn = _layer_norm(x, ln1_a_ref[...], ln1_b_ref[...]).astype(jnp.bfloat16)
    # 1/sqrt(dk) is already folded into wq/bq by the wrapper; bias add and
    # bf16 cast are fused so no f32 q/k/v buffers stay live.
    q3 = (jnp.dot(xn, wq_ref[...], preferred_element_type=jnp.float32)
          + bq_ref[...]).astype(jnp.bfloat16).reshape(Bt, S, D)
    k3 = (jnp.dot(xn, wk_ref[...], preferred_element_type=jnp.float32)
          + bk_ref[...]).astype(jnp.bfloat16).reshape(Bt, S, D)
    v3 = (jnp.dot(xn, wv_ref[...], preferred_element_type=jnp.float32)
          + bv_ref[...]).astype(jnp.bfloat16).reshape(Bt, S, D)

    # TODO(synk): for long S (~>1-2k) switch to a K-tiled online-softmax
    #             (flash-style) loop so the (Bt,S,S) score buffers stay
    #             bounded inside v7x's 64 MiB VMEM; not needed at short S.
    for h in range(NUM_HEADS):                                  # static unroll
        sl = slice(h * dk, (h + 1) * dk)
        # scores: batched q.k^T contraction, no materialized transpose.
        s_h = jnp.einsum('bqd,bkd->bqk', q3[:, :, sl], k3[:, :, sl],
                         preferred_element_type=jnp.float32) + neg
        m = jnp.max(s_h, axis=-1, keepdims=True)
        e = jnp.exp(s_h - m)
        p = e * pl.reciprocal(jnp.sum(e, axis=-1, keepdims=True), approx=True)
        ctx = jnp.einsum('bqk,bkd->bqd', p.astype(jnp.bfloat16), v3[:, :, sl],
                         preferred_element_type=jnp.float32)    # (Bt, S, dk)
        # Stash this head's context in its lane slice of the (BS, D) scratch
        # (lane-aligned / free when dk is a multiple of 128).
        ctx_ref[:, sl] = ctx.reshape(BS, dk).astype(jnp.bfloat16)

    # Single K=D output projection (fills the 256-deep MXU on v6e/v7x).
    attn = jnp.dot(ctx_ref[...], wo_ref[...], preferred_element_type=jnp.float32)
    x1 = x + attn + bo_ref[...]                                  # (BS, D) f32

    # ---- residual connection 1: x1 + FeedForward(LN2(x1)) ------------------
    xn2 = _layer_norm(x1, ln2_a_ref[...], ln2_b_ref[...]).astype(jnp.bfloat16)
    h1 = jnp.dot(xn2, w1_ref[...], preferred_element_type=jnp.float32) + b1_ref[...]
    h1 = jnp.maximum(h1, 0.0).astype(jnp.bfloat16)
    ff = jnp.dot(h1, w2_ref[...], preferred_element_type=jnp.float32) + b2_ref[...]

    o_ref[...] = (x1 + ff).reshape(Bt, S, D).astype(o_ref.dtype)


def _largest_divisor_leq(n, ub):
    ub = max(1, min(n, int(ub)))
    while n % ub:
        ub -= 1
    return ub


def _vmem_limit_bytes(bt, S, D, Dff):
    """Rough scoped-VMEM requirement (bytes) for this kernel configuration."""
    bs = bt * S
    weights = 2 * (4 * D * D + 2 * D * Dff)            # bf16, single-buffered
    small = 4 * (9 * D + Dff)                          # biases + LN params (f32)
    io = 2 * (2 * 4 * bs * D + 4 * bt * S)             # x + out + mask, 2-deep
    # Live in-kernel values: x/x1 f32, xn/q/k/v bf16, one head's scores/e/p
    # f32, ctx scratch bf16, FFN hidden bf16.
    live = (4 * 2 * bs * D + 2 * 4 * bs * D + 4 * 3 * bt * S * S
            + 2 * bs * D + 2 * bs * Dff)
    est = weights + small + io + live
    return int(min(max(2 * est, 32 * 1024 * 1024), 128 * 1024 * 1024))


def encoder_block(x, mask, params, *, rows_per_step=512):
    B, S, D = x.shape
    Dff = params["w1"].shape[1]
    dk = D // NUM_HEADS
    scale = 1.0 / math.sqrt(dk)

    # Fold the attention scale into the query projection; cast all matmul
    # weights to bf16 (f32 MXU accumulation).  Biases / LN params stay f32.
    bf16 = lambda w: w.astype(jnp.bfloat16)
    wq = bf16(params["wq"] * scale)
    bq = (params["bq"] * scale).astype(jnp.float32)
    wk, bk = bf16(params["wk"]), params["bk"]
    wv, bv = bf16(params["wv"]), params["bv"]
    wo, bo = bf16(params["wo"]), params["bo"]
    w1, b1 = bf16(params["w1"]), params["b1"]
    w2, b2 = bf16(params["w2"]), params["b2"]

    # Fold enough batch elements into each grid step that the flattened
    # matmuls see >= ~rows_per_step rows (fills the MXU, amortizes grid
    # overhead).  Sweep rows_per_step 256/512/1024 per chip generation.
    bt = _largest_divisor_leq(B, pl.cdiv(rows_per_step, S))
    # v7x has 2 TensorCores; make sure the "parallel" batch grid axis has at
    # least 2 steps whenever B >= 2 so both cores get work.
    if B >= 2 and B // bt < 2:
        bt = _largest_divisor_leq(B, max(1, bt // 2))
    grid = (B // bt,)

    vmem_limit = _vmem_limit_bytes(bt, S, D, Dff)

    def run(single_buffer_weights):
        # Weight/bias/LN blocks are grid-invariant (constant index_map):
        # single-buffer them so they don't eat 2x VMEM for zero overlap gain.
        const_kwargs = ({"pipeline_mode": pl.Buffered(1)}
                        if single_buffer_weights else {})
        full = lambda shape: pl.BlockSpec(shape, lambda b: (0, 0), **const_kwargs)
        in_specs = [
            pl.BlockSpec((bt, S, D), lambda b: (b, 0, 0)),   # x
            pl.BlockSpec((bt, 1, S), lambda b: (b, 0, 0)),   # src_mask
            full((D, D)), full((1, D)),                      # wq, bq
            full((D, D)), full((1, D)),                      # wk, bk
            full((D, D)), full((1, D)),                      # wv, bv
            full((D, D)), full((1, D)),                      # wo, bo
            full((1, D)), full((1, D)),                      # ln1 alpha, bias
            full((D, Dff)), full((1, Dff)),                  # ff w1, b1
            full((Dff, D)), full((1, D)),                    # ff w2, b2
            full((1, D)), full((1, D)),                      # ln2 alpha, bias
        ]
        out_spec = pl.BlockSpec((bt, S, D), lambda b: (b, 0, 0))

        return pl.pallas_call(
            encoder_block_kernel,
            out_shape=jax.ShapeDtypeStruct((B, S, D), x.dtype),
            grid_spec=pltpu.PrefetchScalarGridSpec(
                num_scalar_prefetch=0,
                grid=grid,
                in_specs=in_specs,
                out_specs=out_spec,
                scratch_shapes=[pltpu.VMEM((bt * S, D), jnp.bfloat16)]),
            compiler_params=pltpu.CompilerParams(
                dimension_semantics=("parallel",),
                vmem_limit_bytes=vmem_limit),
        )(x, mask,
          wq, bq, wk, bk, wv, bv, wo, bo,
          params["ln1_a"], params["ln1_b"],
          w1, b1, w2, b2,
          params["ln2_a"], params["ln2_b"])

    try:
        return run(single_buffer_weights=True)
    except Exception:
        # Fallback: if this jax build rejects pl.Buffered(1), run with the
        # default double-buffered weights (correct, just uses more VMEM).
        return run(single_buffer_weights=False)


def encoder_block_reference(x, mask, params):
    """Plain-JAX f32 reference with the module's exact math (correctness check)."""
    B, S, D = x.shape
    dk = D // NUM_HEADS

    def ln(v, a, b):
        n = v.shape[-1]
        mean = jnp.mean(v, axis=-1, keepdims=True)
        var = jnp.sum((v - mean) ** 2, axis=-1, keepdims=True) / (n - 1)
        return a * (v - mean) / (jnp.sqrt(var) + LN_EPS) + b

    xn = ln(x, params["ln1_a"], params["ln1_b"])
    q = xn @ params["wq"] + params["bq"]
    k = xn @ params["wk"] + params["bk"]
    v = xn @ params["wv"] + params["bv"]
    q = q.reshape(B, S, NUM_HEADS, dk).transpose(0, 2, 1, 3)
    k = k.reshape(B, S, NUM_HEADS, dk).transpose(0, 2, 1, 3)
    v = v.reshape(B, S, NUM_HEADS, dk).transpose(0, 2, 1, 3)
    scores = jnp.einsum("bhqd,bhkd->bhqk", q, k) / math.sqrt(dk)
    m = mask[:, None, :, :]                       # (B,1,1,S)
    scores = jnp.where(m == 0, -1e9, scores)
    probs = jax.nn.softmax(scores, axis=-1)
    attn = jnp.einsum("bhqk,bhkd->bhqd", probs, v)
    attn = attn.transpose(0, 2, 1, 3).reshape(B, S, D)
    x1 = x + (attn @ params["wo"] + params["bo"])

    xn2 = ln(x1, params["ln2_a"], params["ln2_b"])
    h = jnp.maximum(xn2 @ params["w1"] + params["b1"], 0.0)
    return x1 + (h @ params["w2"] + params["b2"])


def make_params(key, d_model, d_ff):
    ks = jax.random.split(key, 6)
    init = lambda k, shape: (0.02 * jax.random.normal(k, shape)).astype(jnp.float32)
    zeros = lambda shape: jnp.zeros(shape, jnp.float32)
    ones = lambda shape: jnp.ones(shape, jnp.float32)
    return {
        "wq": init(ks[0], (d_model, d_model)), "bq": zeros((1, d_model)),
        "wk": init(ks[1], (d_model, d_model)), "bk": zeros((1, d_model)),
        "wv": init(ks[2], (d_model, d_model)), "bv": zeros((1, d_model)),
        "wo": init(ks[3], (d_model, d_model)), "bo": zeros((1, d_model)),
        "ln1_a": ones((1, d_model)), "ln1_b": zeros((1, d_model)),
        "w1": init(ks[4], (d_model, d_ff)), "b1": zeros((1, d_ff)),
        "w2": init(ks[5], (d_ff, d_model)), "b2": zeros((1, d_model)),
        "ln2_a": ones((1, d_model)), "ln2_b": zeros((1, d_model)),
    }


if __name__ == "__main__":
    B, S, D, Dff = 2, 8, 32, 64    # batch, seq, d_model, d_ff ; heads = 4
    # NOTE: production benchmarking should use D a multiple of 512 (dk=128,
    # lane-aligned head slices) and S a multiple of 128; these toy shapes are
    # only a correctness check.

    key = jax.random.PRNGKey(0)
    kx, kp = jax.random.split(key)
    x = jax.random.normal(kx, (B, S, D), dtype=jnp.float32)
    # src_mask: (B, 1, S); mask out the last two keys of batch element 1.
    src_mask = jnp.ones((B, 1, S), dtype=jnp.float32)
    src_mask = src_mask.at[1, 0, -2:].set(0.0)

    params = make_params(kp, D, Dff)

    out = encoder_block(x, src_mask, params)
    out = jax.block_until_ready(out)

    ref = encoder_block_reference(x, src_mask, params)
    assert out.shape == (B, S, D) and out.dtype == jnp.float32
    # Tolerance accounts for bf16 MXU matmuls + approximate reciprocals.
    assert jnp.allclose(out, ref, atol=1e-2, rtol=1e-2), \
        f"max abs err = {jnp.max(jnp.abs(out - ref))}"

    print("KERNEL_OK")
</pallas_src>

<mosaic_0001>
module attributes {stable_mosaic.version = 11 : i64} {
  func.func @encoder_block_kernel(%arg0: i32, %arg1: memref<1x8x32xf32, #tpu.memory_space<vmem>>, %arg2: memref<1x1x8xf32, #tpu.memory_space<vmem>>, %arg3: memref<32x32xbf16, #tpu.memory_space<vmem>>, %arg4: memref<1x32xf32, #tpu.memory_space<vmem>>, %arg5: memref<32x32xbf16, #tpu.memory_space<vmem>>, %arg6: memref<1x32xf32, #tpu.memory_space<vmem>>, %arg7: memref<32x32xbf16, #tpu.memory_space<vmem>>, %arg8: memref<1x32xf32, #tpu.memory_space<vmem>>, %arg9: memref<32x32xbf16, #tpu.memory_space<vmem>>, %arg10: memref<1x32xf32, #tpu.memory_space<vmem>>, %arg11: memref<1x32xf32, #tpu.memory_space<vmem>>, %arg12: memref<1x32xf32, #tpu.memory_space<vmem>>, %arg13: memref<32x64xbf16, #tpu.memory_space<vmem>>, %arg14: memref<1x64xf32, #tpu.memory_space<vmem>>, %arg15: memref<64x32xbf16, #tpu.memory_space<vmem>>, %arg16: memref<1x32xf32, #tpu.memory_space<vmem>>, %arg17: memref<1x32xf32, #tpu.memory_space<vmem>>, %arg18: memref<1x32xf32, #tpu.memory_space<vmem>>, %arg19: memref<1x8x32xf32, #tpu.memory_space<vmem>>, %arg20: memref<8x32xbf16, #tpu.memory_space<vmem>>) attributes {dimension_semantics = [#tpu.dimension_semantics<parallel>], iteration_bounds = array<i64: 2>, scalar_prefetch = 0 : i64, scratch_operands = 1 : i64, tpu.core_type = #tpu.core_type<tc>, window_params = [{transform_indices = @transform_0, window_bounds = array<i64: 1, 8, 32>}, {transform_indices = @transform_1, window_bounds = array<i64: 1, 1, 8>}, {pipeline_mode = #tpu.pipeline_mode<synchronous>, transform_indices = @transform_2, window_bounds = array<i64: 32, 32>}, {pipeline_mode = #tpu.pipeline_mode<synchronous>, transform_indices = @transform_3, window_bounds = array<i64: 1, 32>}, {pipeline_mode = #tpu.pipeline_mode<synchronous>, transform_indices = @transform_4, window_bounds = array<i64: 32, 32>}, {pipeline_mode = #tpu.pipeline_mode<synchronous>, transform_indices = @transform_5, window_bounds = array<i64: 1, 32>}, {pipeline_mode = #tpu.pipeline_mode<synchronous>, transform_indices = @transform_6, window_bounds = array<i64: 32, 32>}, {pipeline_mode = #tpu.pipeline_mode<synchronous>, transform_indices = @transform_7, window_bounds = array<i64: 1, 32>}, {pipeline_mode = #tpu.pipeline_mode<synchronous>, transform_indices = @transform_8, window_bounds = array<i64: 32, 32>}, {pipeline_mode = #tpu.pipeline_mode<synchronous>, transform_indices = @transform_9, window_bounds = array<i64: 1, 32>}, {pipeline_mode = #tpu.pipeline_mode<synchronous>, transform_indices = @transform_10, window_bounds = array<i64: 1, 32>}, {pipeline_mode = #tpu.pipeline_mode<synchronous>, transform_indices = @transform_11, window_bounds = array<i64: 1, 32>}, {pipeline_mode = #tpu.pipeline_mode<synchronous>, transform_indices = @transform_12, window_bounds = array<i64: 32, 64>}, {pipeline_mode = #tpu.pipeline_mode<synchronous>, transform_indices = @transform_13, window_bounds = array<i64: 1, 64>}, {pipeline_mode = #tpu.pipeline_mode<synchronous>, transform_indices = @transform_14, window_bounds = array<i64: 64, 32>}, {pipeline_mode = #tpu.pipeline_mode<synchronous>, transform_indices = @transform_15, window_bounds = array<i64: 1, 32>}, {pipeline_mode = #tpu.pipeline_mode<synchronous>, transform_indices = @transform_16, window_bounds = array<i64: 1, 32>}, {pipeline_mode = #tpu.pipeline_mode<synchronous>, transform_indices = @transform_17, window_bounds = array<i64: 1, 32>}, {transform_indices = @transform_18, window_bounds = array<i64: 1, 8, 32>}]} {
    %c0 = arith.constant 0 : index
    %c0_0 = arith.constant 0 : index
    %c0_1 = arith.constant 0 : index
    %0 = vector.load %arg1[%c0, %c0_0, %c0_1] : memref<1x8x32xf32, #tpu.memory_space<vmem>>, vector<1x8x32xf32>
    %1 = vector.shape_cast %0 : vector<1x8x32xf32> to vector<8x32xf32>
    %c0_2 = arith.constant 0 : index
    %c0_3 = arith.constant 0 : index
    %c0_4 = arith.constant 0 : index
    %2 = vector.load %arg2[%c0_2, %c0_3, %c0_4] : memref<1x1x8xf32, #tpu.memory_space<vmem>>, vector<1x1x8xf32>
    %cst = arith.constant 0.000000e+00 : f32
    %3 = vector.broadcast %cst : f32 to vector<1x1x8xf32>
    %4 = arith.cmpf oeq, %2, %3 : vector<1x1x8xf32>
    %cst_5 = arith.constant -1.000000e+09 : f32
    %cst_6 = arith.constant 0.000000e+00 : f32
    %5 = vector.broadcast %cst_5 : f32 to vector<1x1x8xf32>
    %6 = vector.broadcast %cst_6 : f32 to vector<1x1x8xf32>
    %7 = arith.select %4, %5, %6 : vector<1x1x8xi1>, vector<1x1x8xf32>
    %c0_7 = arith.constant 0 : index
    %c0_8 = arith.constant 0 : index
    %8 = vector.load %arg11[%c0_7, %c0_8] : memref<1x32xf32, #tpu.memory_space<vmem>>, vector<1x32xf32>
    %c0_9 = arith.constant 0 : index
    %c0_10 = arith.constant 0 : index
    %9 = vector.load %arg12[%c0_9, %c0_10] : memref<1x32xf32, #tpu.memory_space<vmem>>, vector<1x32xf32>
    %cst_11 = arith.constant dense<0.000000e+00> : vector<8xf32>
    %10 = vector.multi_reduction <add>, %1, %cst_11 [1] : vector<8x32xf32> to vector<8xf32>
    %11 = vector.shape_cast %10 : vector<8xf32> to vector<8x1xf32>
    %cst_12 = arith.constant 3.200000e+01 : f32
    %12 = vector.broadcast %cst_12 : f32 to vector<8x1xf32>
    %13 = arith.divf %11, %12 : vector<8x1xf32>
    %14 = vector.broadcast %13 : vector<8x1xf32> to vector<8x32xf32>
    %15 = arith.subf %1, %14 : vector<8x32xf32>
    %16 = arith.mulf %15, %15 : vector<8x32xf32>
    %cst_13 = arith.constant dense<0.000000e+00> : vector<8xf32>
    %17 = vector.multi_reduction <add>, %16, %cst_13 [1] : vector<8x32xf32> to vector<8xf32>
    %18 = vector.shape_cast %17 : vector<8xf32> to vector<8x1xf32>
    %cst_14 = arith.constant 3.100000e+01 : f32
    %19 = vector.broadcast %cst_14 : f32 to vector<8x1xf32>
    %20 = arith.divf %18, %19 : vector<8x1xf32>
    %21 = math.sqrt %20 : vector<8x1xf32>
    %cst_15 = arith.constant 9.99999997E-7 : f32
    %22 = vector.broadcast %cst_15 : f32 to vector<8x1xf32>
    %23 = arith.addf %21, %22 : vector<8x1xf32>
    %24 = tpu.reciprocal %23 {approx = true} : vector<8x1xf32> -> vector<8x1xf32>
    %25 = vector.broadcast %13 : vector<8x1xf32> to vector<8x32xf32>
    %26 = arith.subf %1, %25 : vector<8x32xf32>
    %27 = vector.broadcast %8 : vector<1x32xf32> to vector<8x32xf32>
    %28 = arith.mulf %27, %26 : vector<8x32xf32>
    %29 = vector.broadcast %24 : vector<8x1xf32> to vector<8x32xf32>
    %30 = arith.mulf %28, %29 : vector<8x32xf32>
    %31 = vector.broadcast %9 : vector<1x32xf32> to vector<8x32xf32>
    %32 = arith.addf %30, %31 : vector<8x32xf32>
    %33 = arith.truncf %32 : vector<8x32xf32> to vector<8x32xbf16>
    %c0_16 = arith.constant 0 : index
    %c0_17 = arith.constant 0 : index
    %34 = vector.load %arg3[%c0_16, %c0_17] : memref<32x32xbf16, #tpu.memory_space<vmem>>, vector<32x32xbf16>
    %cst_18 = arith.constant dense<0.000000e+00> : vector<8x32xf32>
    %35 = tpu.matmul %33, %34, %cst_18 {dimension_numbers = #tpu.dot_dimension_numbers<[1], [0], [0], [1], [0, 0, 1, 1], [], []>} : vector<8x32xbf16>, vector<32x32xbf16>, vector<8x32xf32> -> vector<8x32xf32>
    %c0_19 = arith.constant 0 : index
    %c0_20 = arith.constant 0 : index
    %36 = vector.load %arg4[%c0_19, %c0_20] : memref<1x32xf32, #tpu.memory_space<vmem>>, vector<1x32xf32>
    %37 = vector.broadcast %36 : vector<1x32xf32> to vector<8x32xf32>
    %38 = arith.addf %35, %37 : vector<8x32xf32>
    %39 = arith.truncf %38 : vector<8x32xf32> to vector<8x32xbf16>
    %40 = vector.shape_cast %39 : vector<8x32xbf16> to vector<1x8x32xbf16>
    %c0_21 = arith.constant 0 : index
    %c0_22 = arith.constant 0 : index
    %41 = vector.load %arg5[%c0_21, %c0_22] : memref<32x32xbf16, #tpu.memory_space<vmem>>, vector<32x32xbf16>
    %cst_23 = arith.constant dense<0.000000e+00> : vector<8x32xf32>
    %42 = tpu.matmul %33, %41, %cst_23 {dimension_numbers = #tpu.dot_dimension_numbers<[1], [0], [0], [1], [0, 0, 1, 1], [], []>} : vector<8x32xbf16>, vector<32x32xbf16>, vector<8x32xf32> -> vector<8x32xf32>
    %c0_24 = arith.constant 0 : index
    %c0_25 = arith.constant 0 : index
    %43 = vector.load %arg6[%c0_24, %c0_25] : memref<1x32xf32, #tpu.memory_space<vmem>>, vector<1x32xf32>
    %44 = vector.broadcast %43 : vector<1x32xf32> to vector<8x32xf32>
    %45 = arith.addf %42, %44 : vector<8x32xf32>
    %46 = arith.truncf %45 : vector<8x32xf32> to vector<8x32xbf16>
    %47 = vector.shape_cast %46 : vector<8x32xbf16> to vector<1x8x32xbf16>
    %c0_26 = arith.constant 0 : index
    %c0_27 = arith.constant 0 : index
    %48 = vector.load %arg7[%c0_26, %c0_27] : memref<32x32xbf16, #tpu.memory_space<vmem>>, vector<32x32xbf16>
    %cst_28 = arith.constant dense<0.000000e+00> : vector<8x32xf32>
    %49 = tpu.matmul %33, %48, %cst_28 {dimension_numbers = #tpu.dot_dimension_numbers<[1], [0], [0], [1], [0, 0, 1, 1], [], []>} : vector<8x32xbf16>, vector<32x32xbf16>, vector<8x32xf32> -> vector<8x32xf32>
    %c0_29 = arith.constant 0 : index
    %c0_30 = arith.constant 0 : index
    %50 = vector.load %arg8[%c0_29, %c0_30] : memref<1x32xf32, #tpu.memory_space<vmem>>, vector<1x32xf32>
    %51 = vector.broadcast %50 : vector<1x32xf32> to vector<8x32xf32>
    %52 = arith.addf %49, %51 : vector<8x32xf32>
    %53 = arith.truncf %52 : vector<8x32xf32> to vector<8x32xbf16>
    %54 = vector.shape_cast %53 : vector<8x32xbf16> to vector<1x8x32xbf16>
    %55 = vector.extract_strided_slice %40 {offsets = [0, 0, 0], sizes = [1, 8, 8], strides = [1, 1, 1]} : vector<1x8x32xbf16> to vector<1x8x8xbf16>
    %56 = vector.extract_strided_slice %47 {offsets = [0, 0, 0], sizes = [1, 8, 8], strides = [1, 1, 1]} : vector<1x8x32xbf16> to vector<1x8x8xbf16>
    "tpu.trace_start"() <{level = 10 : i32, message = "bqd,bkd->bqk"}> : () -> ()
    %cst_31 = arith.constant dense<0.000000e+00> : vector<1x8x8xf32>
    %57 = tpu.matmul %55, %56, %cst_31 {dimension_numbers = #tpu.dot_dimension_numbers<[2], [2], [1], [1], [0, 0, 0, 1, 1, 1], [0], [0]>} : vector<1x8x8xbf16>, vector<1x8x8xbf16>, vector<1x8x8xf32> -> vector<1x8x8xf32>
    "tpu.trace_stop"() : () -> ()
    %58 = vector.broadcast %7 : vector<1x1x8xf32> to vector<1x8x8xf32>
    %59 = arith.addf %57, %58 : vector<1x8x8xf32>
    %cst_32 = arith.constant dense<0xFF800000> : vector<1x8xf32>
    %60 = vector.multi_reduction <maximumf>, %59, %cst_32 [2] : vector<1x8x8xf32> to vector<1x8xf32>
    %61 = vector.shape_cast %60 : vector<1x8xf32> to vector<1x8x1xf32>
    %62 = vector.broadcast %61 : vector<1x8x1xf32> to vector<1x8x8xf32>
    %63 = arith.subf %59, %62 : vector<1x8x8xf32>
    %64 = math.exp %63 : vector<1x8x8xf32>
    %cst_33 = arith.constant dense<0.000000e+00> : vector<1x8xf32>
    %65 = vector.multi_reduction <add>, %64, %cst_33 [2] : vector<1x8x8xf32> to vector<1x8xf32>
    %66 = vector.shape_cast %65 : vector<1x8xf32> to vector<1x8x1xf32>
    %67 = tpu.reciprocal %66 {approx = true} : vector<1x8x1xf32> -> vector<1x8x1xf32>
    %68 = vector.broadcast %67 : vector<1x8x1xf32> to vector<1x8x8xf32>
    %69 = arith.mulf %64, %68 : vector<1x8x8xf32>
    %70 = arith.truncf %69 : vector<1x8x8xf32> to vector<1x8x8xbf16>
    %71 = vector.extract_strided_slice %54 {offsets = [0, 0, 0], sizes = [1, 8, 8], strides = [1, 1, 1]} : vector<1x8x32xbf16> to vector<1x8x8xbf16>
    "tpu.trace_start"() <{level = 10 : i32, message = "bqk,bkd->bqd"}> : () -> ()
    %cst_34 = arith.constant dense<0.000000e+00> : vector<1x8x8xf32>
    %72 = tpu.matmul %70, %71, %cst_34 {dimension_numbers = #tpu.dot_dimension_numbers<[2], [1], [1], [2], [0, 0, 0, 1, 1, 2], [0], [0]>} : vector<1x8x8xbf16>, vector<1x8x8xbf16>, vector<1x8x8xf32> -> vector<1x8x8xf32>
    "tpu.trace_stop"() : () -> ()
    %73 = vector.shape_cast %72 : vector<1x8x8xf32> to vector<8x8xf32>
    %74 = arith.truncf %73 : vector<8x8xf32> to vector<8x8xbf16>
    %c0_35 = arith.constant 0 : index
    %c0_36 = arith.constant 0 : index
    %75 = vector.load %arg20[%c0_35, %c0_36] : memref<8x32xbf16, #tpu.memory_space<vmem>>, vector<8x8xbf16>
    tpu.vector_store %arg20[%c0_35, %c0_36], %74 {strides = array<i32>} : memref<8x32xbf16, #tpu.memory_space<vmem>>, vector<8x8xbf16>,
    %76 = vector.extract_strided_slice %40 {offsets = [0, 0, 8], sizes = [1, 8, 8], strides = [1, 1, 1]} : vector<1x8x32xbf16> to vector<1x8x8xbf16>
    %77 = vector.extract_strided_slice %47 {offsets = [0, 0, 8], sizes = [1, 8, 8], strides = [1, 1, 1]} : vector<1x8x32xbf16> to vector<1x8x8xbf16>
    "tpu.trace_start"() <{level = 10 : i32, message = "bqd,bkd->bqk"}> : () -> ()
    %cst_37 = arith.constant dense<0.000000e+00> : vector<1x8x8xf32>
    %78 = tpu.matmul %76, %77, %cst_37 {dimension_numbers = #tpu.dot_dimension_numbers<[2], [2], [1], [1], [0, 0, 0, 1, 1, 1], [0], [0]>} : vector<1x8x8xbf16>, vector<1x8x8xbf16>, vector<1x8x8xf32> -> vector<1x8x8xf32>
    "tpu.trace_stop"() : () -> ()
    %79 = vector.broadcast %7 : vector<1x1x8xf32> to vector<1x8x8xf32>
    %80 = arith.addf %78, %79 : vector<1x8x8xf32>
    %cst_38 = arith.constant dense<0xFF800000> : vector<1x8xf32>
    %81 = vector.multi_reduction <maximumf>, %80, %cst_38 [2] : vector<1x8x8xf32> to vector<1x8xf32>
    %82 = vector.shape_cast %81 : vector<1x8xf32> to vector<1x8x1xf32>
    %83 = vector.broadcast %82 : vector<1x8x1xf32> to vector<1x8x8xf32>
    %84 = arith.subf %80, %83 : vector<1x8x8xf32>
    %85 = math.exp %84 : vector<1x8x8xf32>
    %cst_39 = arith.constant dense<0.000000e+00> : vector<1x8xf32>
    %86 = vector.multi_reduction <add>, %85, %cst_39 [2] : vector<1x8x8xf32> to vector<1x8xf32>
    %87 = vector.shape_cast %86 : vector<1x8xf32> to vector<1x8x1xf32>
    %88 = tpu.reciprocal %87 {approx = true} : vector<1x8x1xf32> -> vector<1x8x1xf32>
    %89 = vector.broadcast %88 : vector<1x8x1xf32> to vector<1x8x8xf32>
    %90 = arith.mulf %85, %89 : vector<1x8x8xf32>
    %91 = arith.truncf %90 : vector<1x8x8xf32> to vector<1x8x8xbf16>
    %92 = vector.extract_strided_slice %54 {offsets = [0, 0, 8], sizes = [1, 8, 8], strides = [1, 1, 1]} : vector<1x8x32xbf16> to vector<1x8x8xbf16>
    "tpu.trace_start"() <{level = 10 : i32, message = "bqk,bkd->bqd"}> : () -> ()
    %cst_40 = arith.constant dense<0.000000e+00> : vector<1x8x8xf32>
    %93 = tpu.matmul %91, %92, %cst_40 {dimension_numbers = #tpu.dot_dimension_numbers<[2], [1], [1], [2], [0, 0, 0, 1, 1, 2], [0], [0]>} : vector<1x8x8xbf16>, vector<1x8x8xbf16>, vector<1x8x8xf32> -> vector<1x8x8xf32>
    "tpu.trace_stop"() : () -> ()
    %94 = vector.shape_cast %93 : vector<1x8x8xf32> to vector<8x8xf32>
    %95 = arith.truncf %94 : vector<8x8xf32> to vector<8x8xbf16>
    %c0_41 = arith.constant 0 : index
    %c8 = arith.constant 8 : index
    %96 = vector.load %arg20[%c0_41, %c8] : memref<8x32xbf16, #tpu.memory_space<vmem>>, vector<8x8xbf16>
    tpu.vector_store %arg20[%c0_41, %c8], %95 {strides = array<i32>} : memref<8x32xbf16, #tpu.memory_space<vmem>>, vector<8x8xbf16>,
    %97 = vector.extract_strided_slice %40 {offsets = [0, 0, 16], sizes = [1, 8, 8], strides = [1, 1, 1]} : vector<1x8x32xbf16> to vector<1x8x8xbf16>
    %98 = vector.extract_strided_slice %47 {offsets = [0, 0, 16], sizes = [1, 8, 8], strides = [1, 1, 1]} : vector<1x8x32xbf16> to vector<1x8x8xbf16>
    "tpu.trace_start"() <{level = 10 : i32, message = "bqd,bkd->bqk"}> : () -> ()
    %cst_42 = arith.constant dense<0.000000e+00> : vector<1x8x8xf32>
    %99 = tpu.matmul %97, %98, %cst_42 {dimension_numbers = #tpu.dot_dimension_numbers<[2], [2], [1], [1], [0, 0, 0, 1, 1, 1], [0], [0]>} : vector<1x8x8xbf16>, vector<1x8x8xbf16>, vector<1x8x8xf32> -> vector<1x8x8xf32>
    "tpu.trace_stop"() : () -> ()
    %100 = vector.broadcast %7 : vector<1x1x8xf32> to vector<1x8x8xf32>
    %101 = arith.addf %99, %100 : vector<1x8x8xf32>
    %cst_43 = arith.constant dense<0xFF800000> : vector<1x8xf32>
    %102 = vector.multi_reduction <maximumf>, %101, %cst_43 [2] : vector<1x8x8xf32> to vector<1x8xf32>
    %103 = vector.shape_cast %102 : vector<1x8xf32> to vector<1x8x1xf32>
    %104 = vector.broadcast %103 : vector<1x8x1xf32> to vector<1x8x8xf32>
    %105 = arith.subf %101, %104 : vector<1x8x8xf32>
    %106 = math.exp %105 : vector<1x8x8xf32>
    %cst_44 = arith.constant dense<0.000000e+00> : vector<1x8xf32>
    %107 = vector.multi_reduction <add>, %106, %cst_44 [2] : vector<1x8x8xf32> to vector<1x8xf32>
    %108 = vector.shape_cast %107 : vector<1x8xf32> to vector<1x8x1xf32>
    %109 = tpu.reciprocal %108 {approx = true} : vector<1x8x1xf32> -> vector<1x8x1xf32>
    %110 = vector.broadcast %109 : vector<1x8x1xf32> to vector<1x8x8xf32>
    %111 = arith.mulf %106, %110 : vector<1x8x8xf32>
    %112 = arith.truncf %111 : vector<1x8x8xf32> to vector<1x8x8xbf16>
    %113 = vector.extract_strided_slice %54 {offsets = [0, 0, 16], sizes = [1, 8, 8], strides = [1, 1, 1]} : vector<1x8x32xbf16> to vector<1x8x8xbf16>
    "tpu.trace_start"() <{level = 10 : i32, message = "bqk,bkd->bqd"}> : () -> ()
    %cst_45 = arith.constant dense<0.000000e+00> : vector<1x8x8xf32>
    %114 = tpu.matmul %112, %113, %cst_45 {dimension_numbers = #tpu.dot_dimension_numbers<[2], [1], [1], [2], [0, 0, 0, 1, 1, 2], [0], [0]>} : vector<1x8x8xbf16>, vector<1x8x8xbf16>, vector<1x8x8xf32> -> vector<1x8x8xf32>
    "tpu.trace_stop"() : () -> ()
    %115 = vector.shape_cast %114 : vector<1x8x8xf32> to vector<8x8xf32>
    %116 = arith.truncf %115 : vector<8x8xf32> to vector<8x8xbf16>
    %c0_46 = arith.constant 0 : index
    %c16 = arith.constant 16 : index
    %117 = vector.load %arg20[%c0_46, %c16] : memref<8x32xbf16, #tpu.memory_space<vmem>>, vector<8x8xbf16>
    tpu.vector_store %arg20[%c0_46, %c16], %116 {strides = array<i32>} : memref<8x32xbf16, #tpu.memory_space<vmem>>, vector<8x8xbf16>,
    %118 = vector.extract_strided_slice %40 {offsets = [0, 0, 24], sizes = [1, 8, 8], strides = [1, 1, 1]} : vector<1x8x32xbf16> to vector<1x8x8xbf16>
    %119 = vector.extract_strided_slice %47 {offsets = [0, 0, 24], sizes = [1, 8, 8], strides = [1, 1, 1]} : vector<1x8x32xbf16> to vector<1x8x8xbf16>
    "tpu.trace_start"() <{level = 10 : i32, message = "bqd,bkd->bqk"}> : () -> ()
    %cst_47 = arith.constant dense<0.000000e+00> : vector<1x8x8xf32>
    %120 = tpu.matmul %118, %119, %cst_47 {dimension_numbers = #tpu.dot_dimension_numbers<[2], [2], [1], [1], [0, 0, 0, 1, 1, 1], [0], [0]>} : vector<1x8x8xbf16>, vector<1x8x8xbf16>, vector<1x8x8xf32> -> vector<1x8x8xf32>
    "tpu.trace_stop"() : () -> ()
    %121 = vector.broadcast %7 : vector<1x1x8xf32> to vector<1x8x8xf32>
    %122 = arith.addf %120, %121 : vector<1x8x8xf32>
    %cst_48 = arith.constant dense<0xFF800000> : vector<1x8xf32>
    %123 = vector.multi_reduction <maximumf>, %122, %cst_48 [2] : vector<1x8x8xf32> to vector<1x8xf32>
    %124 = vector.shape_cast %123 : vector<1x8xf32> to vector<1x8x1xf32>
    %125 = vector.broadcast %124 : vector<1x8x1xf32> to vector<1x8x8xf32>
    %126 = arith.subf %122, %125 : vector<1x8x8xf32>
    %127 = math.exp %126 : vector<1x8x8xf32>
    %cst_49 = arith.constant dense<0.000000e+00> : vector<1x8xf32>
    %128 = vector.multi_reduction <add>, %127, %cst_49 [2] : vector<1x8x8xf32> to vector<1x8xf32>
    %129 = vector.shape_cast %128 : vector<1x8xf32> to vector<1x8x1xf32>
    %130 = tpu.reciprocal %129 {approx = true} : vector<1x8x1xf32> -> vector<1x8x1xf32>
    %131 = vector.broadcast %130 : vector<1x8x1xf32> to vector<1x8x8xf32>
    %132 = arith.mulf %127, %131 : vector<1x8x8xf32>
    %133 = arith.truncf %132 : vector<1x8x8xf32> to vector<1x8x8xbf16>
    %134 = vector.extract_strided_slice %54 {offsets = [0, 0, 24], sizes = [1, 8, 8], strides = [1, 1, 1]} : vector<1x8x32xbf16> to vector<1x8x8xbf16>
    "tpu.trace_start"() <{level = 10 : i32, message = "bqk,bkd->bqd"}> : () -> ()
    %cst_50 = arith.constant dense<0.000000e+00> : vector<1x8x8xf32>
    %135 = tpu.matmul %133, %134, %cst_50 {dimension_numbers = #tpu.dot_dimension_numbers<[2], [1], [1], [2], [0, 0, 0, 1, 1, 2], [0], [0]>} : vector<1x8x8xbf16>, vector<1x8x8xbf16>, vector<1x8x8xf32> -> vector<1x8x8xf32>
    "tpu.trace_stop"() : () -> ()
    %136 = vector.shape_cast %135 : vector<1x8x8xf32> to vector<8x8xf32>
    %137 = arith.truncf %136 : vector<8x8xf32> to vector<8x8xbf16>
    %c0_51 = arith.constant 0 : index
    %c24 = arith.constant 24 : index
    %138 = vector.load %arg20[%c0_51, %c24] : memref<8x32xbf16, #tpu.memory_space<vmem>>, vector<8x8xbf16>
    tpu.vector_store %arg20[%c0_51, %c24], %137 {strides = array<i32>} : memref<8x32xbf16, #tpu.memory_space<vmem>>, vector<8x8xbf16>,
    %c0_52 = arith.constant 0 : index
    %c0_53 = arith.constant 0 : index
    %139 = vector.load %arg20[%c0_52, %c0_53] : memref<8x32xbf16, #tpu.memory_space<vmem>>, vector<8x32xbf16>
    %c0_54 = arith.constant 0 : index
    %c0_55 = arith.constant 0 : index
    %140 = vector.load %arg9[%c0_54, %c0_55] : memref<32x32xbf16, #tpu.memory_space<vmem>>, vector<32x32xbf16>
    %cst_56 = arith.constant dense<0.000000e+00> : vector<8x32xf32>
    %141 = tpu.matmul %139, %140, %cst_56 {dimension_numbers = #tpu.dot_dimension_numbers<[1], [0], [0], [1], [0, 0, 1, 1], [], []>} : vector<8x32xbf16>, vector<32x32xbf16>, vector<8x32xf32> -> vector<8x32xf32>
    %142 = arith.addf %1, %141 : vector<8x32xf32>
    %c0_57 = arith.constant 0 : index
    %c0_58 = arith.constant 0 : index
    %143 = vector.load %arg10[%c0_57, %c0_58] : memref<1x32xf32, #tpu.memory_space<vmem>>, vector<1x32xf32>
    %144 = vector.broadcast %143 : vector<1x32xf32> to vector<8x32xf32>
    %145 = arith.addf %142, %144 : vector<8x32xf32>
    %c0_59 = arith.constant 0 : index
    %c0_60 = arith.constant 0 : index
    %146 = vector.load %arg17[%c0_59, %c0_60] : memref<1x32xf32, #tpu.memory_space<vmem>>, vector<1x32xf32>
    %c0_61 = arith.constant 0 : index
    %c0_62 = arith.constant 0 : index
    %147 = vector.load %arg18[%c0_61, %c0_62] : memref<1x32xf32, #tpu.memory_space<vmem>>, vector<1x32xf32>
    %cst_63 = arith.constant dense<0.000000e+00> : vector<8xf32>
    %148 = vector.multi_reduction <add>, %145, %cst_63 [1] : vector<8x32xf32> to vector<8xf32>
    %149 = vector.shape_cast %148 : vector<8xf32> to vector<8x1xf32>
    %cst_64 = arith.constant 3.200000e+01 : f32
    %150 = vector.broadcast %cst_64 : f32 to vector<8x1xf32>
    %151 = arith.divf %149, %150 : vector<8x1xf32>
    %152 = vector.broadcast %151 : vector<8x1xf32> to vector<8x32xf32>
    %153 = arith.subf %145, %152 : vector<8x32xf32>
    %154 = arith.mulf %153, %153 : vector<8x32xf32>
    %cst_65 = arith.constant dense<0.000000e+00> : vector<8xf32>
    %155 = vector.multi_reduction <add>, %154, %cst_65 [1] : vector<8x32xf32> to vector<8xf32>
    %156 = vector.shape_cast %155 : vector<8xf32> to vector<8x1xf32>
    %cst_66 = arith.constant 3.100000e+01 : f32
    %157 = vector.broadcast %cst_66 : f32 to vector<8x1xf32>
    %158 = arith.divf %156, %157 : vector<8x1xf32>
    %159 = math.sqrt %158 : vector<8x1xf32>
    %cst_67 = arith.constant 9.99999997E-7 : f32
    %160 = vector.broadcast %cst_67 : f32 to vector<8x1xf32>
    %161 = arith.addf %159, %160 : vector<8x1xf32>
    %162 = tpu.reciprocal %161 {approx = true} : vector<8x1xf32> -> vector<8x1xf32>
    %163 = vector.broadcast %151 : vector<8x1xf32> to vector<8x32xf32>
    %164 = arith.subf %145, %163 : vector<8x32xf32>
    %165 = vector.broadcast %146 : vector<1x32xf32> to vector<8x32xf32>
    %166 = arith.mulf %165, %164 : vector<8x32xf32>
    %167 = vector.broadcast %162 : vector<8x1xf32> to vector<8x32xf32>
    %168 = arith.mulf %166, %167 : vector<8x32xf32>
    %169 = vector.broadcast %147 : vector<1x32xf32> to vector<8x32xf32>
    %170 = arith.addf %168, %169 : vector<8x32xf32>
    %171 = arith.truncf %170 : vector<8x32xf32> to vector<8x32xbf16>
    %c0_68 = arith.constant 0 : index
    %c0_69 = arith.constant 0 : index
    %172 = vector.load %arg13[%c0_68, %c0_69] : memref<32x64xbf16, #tpu.memory_space<vmem>>, vector<32x64xbf16>
    %cst_70 = arith.constant dense<0.000000e+00> : vector<8x64xf32>
    %173 = tpu.matmul %171, %172, %cst_70 {dimension_numbers = #tpu.dot_dimension_numbers<[1], [0], [0], [1], [0, 0, 1, 1], [], []>} : vector<8x32xbf16>, vector<32x64xbf16>, vector<8x64xf32> -> vector<8x64xf32>
    %c0_71 = arith.constant 0 : index
    %c0_72 = arith.constant 0 : index
    %174 = vector.load %arg14[%c0_71, %c0_72] : memref<1x64xf32, #tpu.memory_space<vmem>>, vector<1x64xf32>
    %175 = vector.broadcast %174 : vector<1x64xf32> to vector<8x64xf32>
    %176 = arith.addf %173, %175 : vector<8x64xf32>
    %cst_73 = arith.constant 0.000000e+00 : f32
    %177 = vector.broadcast %cst_73 : f32 to vector<8x64xf32>
    %178 = arith.maximumf %176, %177 : vector<8x64xf32>
    %179 = arith.truncf %178 : vector<8x64xf32> to vector<8x64xbf16>
    %c0_74 = arith.constant 0 : index
    %c0_75 = arith.constant 0 : index
    %180 = vector.load %arg15[%c0_74, %c0_75] : memref<64x32xbf16, #tpu.memory_space<vmem>>, vector<64x32xbf16>
    %cst_76 = arith.constant dense<0.000000e+00> : vector<8x32xf32>
    %181 = tpu.matmul %179, %180, %cst_76 {dimension_numbers = #tpu.dot_dimension_numbers<[1], [0], [0], [1], [0, 0, 1, 1], [], []>} : vector<8x64xbf16>, vector<64x32xbf16>, vector<8x32xf32> -> vector<8x32xf32>
    %c0_77 = arith.constant 0 : index
    %c0_78 = arith.constant 0 : index
    %182 = vector.load %arg16[%c0_77, %c0_78] : memref<1x32xf32, #tpu.memory_space<vmem>>, vector<1x32xf32>
    %183 = vector.broadcast %182 : vector<1x32xf32> to vector<8x32xf32>
    %184 = arith.addf %181, %183 : vector<8x32xf32>
    %185 = arith.addf %145, %184 : vector<8x32xf32>
    %186 = vector.shape_cast %185 : vector<8x32xf32> to vector<1x8x32xf32>
    %c0_79 = arith.constant 0 : index
    %c0_80 = arith.constant 0 : index
    %c0_81 = arith.constant 0 : index
    %187 = vector.load %arg19[%c0_79, %c0_80, %c0_81] : memref<1x8x32xf32, #tpu.memory_space<vmem>>, vector<1x8x32xf32>
    tpu.vector_store %arg19[%c0_79, %c0_80, %c0_81], %186 {strides = array<i32>} : memref<1x8x32xf32, #tpu.memory_space<vmem>>, vector<1x8x32xf32>,
    return
  }
  func.func @transform_0(%arg0: i32) -> (i32, i32, i32) {
    %c0_i32 = arith.constant 0 : i32
    %c0_i32_0 = arith.constant 0 : i32
    %c0_i32_1 = arith.constant 0 : i32
    return %arg0, %c0_i32, %c0_i32_0 : i32, i32, i32
  }
  func.func @transform_1(%arg0: i32) -> (i32, i32, i32) {
    %c0_i32 = arith.constant 0 : i32
    %c0_i32_0 = arith.constant 0 : i32
    %c0_i32_1 = arith.constant 0 : i32
    return %arg0, %c0_i32, %c0_i32_0 : i32, i32, i32
  }
  func.func @transform_2(%arg0: i32) -> (i32, i32) {
    %c0_i32 = arith.constant 0 : i32
    %c0_i32_0 = arith.constant 0 : i32
    %c0_i32_1 = arith.constant 0 : i32
    return %c0_i32, %c0_i32_0 : i32, i32
  }
  func.func @transform_3(%arg0: i32) -> (i32, i32) {
    %c0_i32 = arith.constant 0 : i32
    %c0_i32_0 = arith.constant 0 : i32
    %c0_i32_1 = arith.constant 0 : i32
    return %c0_i32, %c0_i32_0 : i32, i32
  }
  func.func @transform_4(%arg0: i32) -> (i32, i32) {
    %c0_i32 = arith.constant 0 : i32
    %c0_i32_0 = arith.constant 0 : i32
    %c0_i32_1 = arith.constant 0 : i32
    return %c0_i32, %c0_i32_0 : i32, i32
  }
  func.func @transform_5(%arg0: i32) -> (i32, i32) {
    %c0_i32 = arith.constant 0 : i32
    %c0_i32_0 = arith.constant 0 : i32
    %c0_i32_1 = arith.constant 0 : i32
    return %c0_i32, %c0_i32_0 : i32, i32
  }
  func.func @transform_6(%arg0: i32) -> (i32, i32) {
    %c0_i32 = arith.constant 0 : i32
    %c0_i32_0 = arith.constant 0 : i32
    %c0_i32_1 = arith.constant 0 : i32
    return %c0_i32, %c0_i32_0 : i32, i32
  }
  func.func @transform_7(%arg0: i32) -> (i32, i32) {
    %c0_i32 = arith.constant 0 : i32
    %c0_i32_0 = arith.constant 0 : i32
    %c0_i32_1 = arith.constant 0 : i32
    return %c0_i32, %c0_i32_0 : i32, i32
  }
  func.func @transform_8(%arg0: i32) -> (i32, i32) {
    %c0_i32 = arith.constant 0 : i32
    %c0_i32_0 = arith.constant 0 : i32
    %c0_i32_1 = arith.constant 0 : i32
    return %c0_i32, %c0_i32_0 : i32, i32
  }
  func.func @transform_9(%arg0: i32) -> (i32, i32) {
    %c0_i32 = arith.constant 0 : i32
    %c0_i32_0 = arith.constant 0 : i32
    %c0_i32_1 = arith.constant 0 : i32
    return %c0_i32, %c0_i32_0 : i32, i32
  }
  func.func @transform_10(%arg0: i32) -> (i32, i32) {
    %c0_i32 = arith.constant 0 : i32
    %c0_i32_0 = arith.constant 0 : i32
    %c0_i32_1 = arith.constant 0 : i32
    return %c0_i32, %c0_i32_0 : i32, i32
  }
  func.func @transform_11(%arg0: i32) -> (i32, i32) {
    %c0_i32 = arith.constant 0 : i32
    %c0_i32_0 = arith.constant 0 : i32
    %c0_i32_1 = arith.constant 0 : i32
    return %c0_i32, %c0_i32_0 : i32, i32
  }
  func.func @transform_12(%arg0: i32) -> (i32, i32) {
    %c0_i32 = arith.constant 0 : i32
    %c0_i32_0 = arith.constant 0 : i32
    %c0_i32_1 = arith.constant 0 : i32
    return %c0_i32, %c0_i32_0 : i32, i32
  }
  func.func @transform_13(%arg0: i32) -> (i32, i32) {
    %c0_i32 = arith.constant 0 : i32
    %c0_i32_0 = arith.constant 0 : i32
    %c0_i32_1 = arith.constant 0 : i32
    return %c0_i32, %c0_i32_0 : i32, i32
  }
  func.func @transform_14(%arg0: i32) -> (i32, i32) {
    %c0_i32 = arith.constant 0 : i32
    %c0_i32_0 = arith.constant 0 : i32
    %c0_i32_1 = arith.constant 0 : i32
    return %c0_i32, %c0_i32_0 : i32, i32
  }
  func.func @transform_15(%arg0: i32) -> (i32, i32) {
    %c0_i32 = arith.constant 0 : i32
    %c0_i32_0 = arith.constant 0 : i32
    %c0_i32_1 = arith.constant 0 : i32
    return %c0_i32, %c0_i32_0 : i32, i32
  }
  func.func @transform_16(%arg0: i32) -> (i32, i32) {
    %c0_i32 = arith.constant 0 : i32
    %c0_i32_0 = arith.constant 0 : i32
    %c0_i32_1 = arith.constant 0 : i32
    return %c0_i32, %c0_i32_0 : i32, i32
  }
  func.func @transform_17(%arg0: i32) -> (i32, i32) {
    %c0_i32 = arith.constant 0 : i32
    %c0_i32_0 = arith.constant 0 : i32
    %c0_i32_1 = arith.constant 0 : i32
    return %c0_i32, %c0_i32_0 : i32, i32
  }
  func.func @transform_18(%arg0: i32) -> (i32, i32, i32) {
    %c0_i32 = arith.constant 0 : i32
    %c0_i32_0 = arith.constant 0 : i32
    %c0_i32_1 = arith.constant 0 : i32
    return %arg0, %c0_i32, %c0_i32_0 : i32, i32, i32
  }
}

module attributes {stable_mosaic.version = 11 : i64} {
  func.func @encoder_block_kernel(%arg0: i32, %arg1: memref<1x8x32xf32, #tpu.memory_space<vmem>>, %arg2: memref<1x1x8xf32, #tpu.memory_space<vmem>>, %arg3: memref<32x32xbf16, #tpu.memory_space<vmem>>, %arg4: memref<1x32xf32, #tpu.memory_space<vmem>>, %arg5: memref<32x32xbf16, #tpu.memory_space<vmem>>, %arg6: memref<1x32xf32, #tpu.memory_space<vmem>>, %arg7: memref<32x32xbf16, #tpu.memory_space<vmem>>, %arg8: memref<1x32xf32, #tpu.memory_space<vmem>>, %arg9: memref<32x32xbf16, #tpu.memory_space<vmem>>, %arg10: memref<1x32xf32, #tpu.memory_space<vmem>>, %arg11: memref<1x32xf32, #tpu.memory_space<vmem>>, %arg12: memref<1x32xf32, #tpu.memory_space<vmem>>, %arg13: memref<32x64xbf16, #tpu.memory_space<vmem>>, %arg14: memref<1x64xf32, #tpu.memory_space<vmem>>, %arg15: memref<64x32xbf16, #tpu.memory_space<vmem>>, %arg16: memref<1x32xf32, #tpu.memory_space<vmem>>, %arg17: memref<1x32xf32, #tpu.memory_space<vmem>>, %arg18: memref<1x32xf32, #tpu.memory_space<vmem>>, %arg19: memref<1x8x32xf32, #tpu.memory_space<vmem>>, %arg20: memref<8x32xbf16, #tpu.memory_space<vmem>>) attributes {dimension_semantics = [#tpu.dimension_semantics<parallel>], iteration_bounds = array<i64: 2>, scalar_prefetch = 0 : i64, scratch_operands = 1 : i64, tpu.core_type = #tpu.core_type<tc>, window_params = [{transform_indices = @transform_0, window_bounds = array<i64: 1, 8, 32>}, {transform_indices = @transform_1, window_bounds = array<i64: 1, 1, 8>}, {pipeline_mode = #tpu.pipeline_mode<synchronous>, transform_indices = @transform_2, window_bounds = array<i64: 32, 32>}, {pipeline_mode = #tpu.pipeline_mode<synchronous>, transform_indices = @transform_3, window_bounds = array<i64: 1, 32>}, {pipeline_mode = #tpu.pipeline_mode<synchronous>, transform_indices = @transform_4, window_bounds = array<i64: 32, 32>}, {pipeline_mode = #tpu.pipeline_mode<synchronous>, transform_indices = @transform_5, window_bounds = array<i64: 1, 32>}, {pipeline_mode = #tpu.pipeline_mode<synchronous>, transform_indices = @transform_6, window_bounds = array<i64: 32, 32>}, {pipeline_mode = #tpu.pipeline_mode<synchronous>, transform_indices = @transform_7, window_bounds = array<i64: 1, 32>}, {pipeline_mode = #tpu.pipeline_mode<synchronous>, transform_indices = @transform_8, window_bounds = array<i64: 32, 32>}, {pipeline_mode = #tpu.pipeline_mode<synchronous>, transform_indices = @transform_9, window_bounds = array<i64: 1, 32>}, {pipeline_mode = #tpu.pipeline_mode<synchronous>, transform_indices = @transform_10, window_bounds = array<i64: 1, 32>}, {pipeline_mode = #tpu.pipeline_mode<synchronous>, transform_indices = @transform_11, window_bounds = array<i64: 1, 32>}, {pipeline_mode = #tpu.pipeline_mode<synchronous>, transform_indices = @transform_12, window_bounds = array<i64: 32, 64>}, {pipeline_mode = #tpu.pipeline_mode<synchronous>, transform_indices = @transform_13, window_bounds = array<i64: 1, 64>}, {pipeline_mode = #tpu.pipeline_mode<synchronous>, transform_indices = @transform_14, window_bounds = array<i64: 64, 32>}, {pipeline_mode = #tpu.pipeline_mode<synchronous>, transform_indices = @transform_15, window_bounds = array<i64: 1, 32>}, {pipeline_mode = #tpu.pipeline_mode<synchronous>, transform_indices = @transform_16, window_bounds = array<i64: 1, 32>}, {pipeline_mode = #tpu.pipeline_mode<synchronous>, transform_indices = @transform_17, window_bounds = array<i64: 1, 32>}, {transform_indices = @transform_18, window_bounds = array<i64: 1, 8, 32>}]} {
    %c0 = arith.constant 0 : index
    %c0_0 = arith.constant 0 : index
    %c0_1 = arith.constant 0 : index
    %0 = vector.load %arg1[%c0, %c0_0, %c0_1] : memref<1x8x32xf32, #tpu.memory_space<vmem>>, vector<1x8x32xf32>
    %1 = vector.shape_cast %0 : vector<1x8x32xf32> to vector<8x32xf32>
    %c0_2 = arith.constant 0 : index
    %c0_3 = arith.constant 0 : index
    %c0_4 = arith.constant 0 : index
    %2 = vector.load %arg2[%c0_2, %c0_3, %c0_4] : memref<1x1x8xf32, #tpu.memory_space<vmem>>, vector<1x1x8xf32>
    %cst = arith.constant 0.000000e+00 : f32
    %3 = vector.broadcast %cst : f32 to vector<1x1x8xf32>
    %4 = arith.cmpf oeq, %2, %3 : vector<1x1x8xf32>
    %cst_5 = arith.constant -1.000000e+09 : f32
    %cst_6 = arith.constant 0.000000e+00 : f32
    %5 = vector.broadcast %cst_5 : f32 to vector<1x1x8xf32>
    %6 = vector.broadcast %cst_6 : f32 to vector<1x1x8xf32>
    %7 = arith.select %4, %5, %6 : vector<1x1x8xi1>, vector<1x1x8xf32>
    %c0_7 = arith.constant 0 : index
    %c0_8 = arith.constant 0 : index
    %8 = vector.load %arg11[%c0_7, %c0_8] : memref<1x32xf32, #tpu.memory_space<vmem>>, vector<1x32xf32>
    %c0_9 = arith.constant 0 : index
    %c0_10 = arith.constant 0 : index
    %9 = vector.load %arg12[%c0_9, %c0_10] : memref<1x32xf32, #tpu.memory_space<vmem>>, vector<1x32xf32>
    %cst_11 = arith.constant dense<0.000000e+00> : vector<8xf32>
    %10 = vector.multi_reduction <add>, %1, %cst_11 [1] : vector<8x32xf32> to vector<8xf32>
    %11 = vector.shape_cast %10 : vector<8xf32> to vector<8x1xf32>
    %cst_12 = arith.constant 3.200000e+01 : f32
    %12 = vector.broadcast %cst_12 : f32 to vector<8x1xf32>
    %13 = arith.divf %11, %12 : vector<8x1xf32>
    %14 = vector.broadcast %13 : vector<8x1xf32> to vector<8x32xf32>
    %15 = arith.subf %1, %14 : vector<8x32xf32>
    %16 = arith.mulf %15, %15 : vector<8x32xf32>
    %cst_13 = arith.constant dense<0.000000e+00> : vector<8xf32>
    %17 = vector.multi_reduction <add>, %16, %cst_13 [1] : vector<8x32xf32> to vector<8xf32>
    %18 = vector.shape_cast %17 : vector<8xf32> to vector<8x1xf32>
    %cst_14 = arith.constant 3.100000e+01 : f32
    %19 = vector.broadcast %cst_14 : f32 to vector<8x1xf32>
    %20 = arith.divf %18, %19 : vector<8x1xf32>
    %21 = math.sqrt %20 : vector<8x1xf32>
    %cst_15 = arith.constant 9.99999997E-7 : f32
    %22 = vector.broadcast %cst_15 : f32 to vector<8x1xf32>
    %23 = arith.addf %21, %22 : vector<8x1xf32>
    %24 = tpu.reciprocal %23 {approx = true} : vector<8x1xf32> -> vector<8x1xf32>
    %25 = vector.broadcast %13 : vector<8x1xf32> to vector<8x32xf32>
    %26 = arith.subf %1, %25 : vector<8x32xf32>
    %27 = vector.broadcast %8 : vector<1x32xf32> to vector<8x32xf32>
    %28 = arith.mulf %27, %26 : vector<8x32xf32>
    %29 = vector.broadcast %24 : vector<8x1xf32> to vector<8x32xf32>
    %30 = arith.mulf %28, %29 : vector<8x32xf32>
    %31 = vector.broadcast %9 : vector<1x32xf32> to vector<8x32xf32>
    %32 = arith.addf %30, %31 : vector<8x32xf32>
    %33 = arith.truncf %32 : vector<8x32xf32> to vector<8x32xbf16>
    %c0_16 = arith.constant 0 : index
    %c0_17 = arith.constant 0 : index
    %34 = vector.load %arg3[%c0_16, %c0_17] : memref<32x32xbf16, #tpu.memory_space<vmem>>, vector<32x32xbf16>
    %cst_18 = arith.constant dense<0.000000e+00> : vector<8x32xf32>
    %35 = tpu.matmul %33, %34, %cst_18 {dimension_numbers = #tpu.dot_dimension_numbers<[1], [0], [0], [1], [0, 0, 1, 1], [], []>} : vector<8x32xbf16>, vector<32x32xbf16>, vector<8x32xf32> -> vector<8x32xf32>
    %c0_19 = arith.constant 0 : index
    %c0_20 = arith.constant 0 : index
    %36 = vector.load %arg4[%c0_19, %c0_20] : memref<1x32xf32, #tpu.memory_space<vmem>>, vector<1x32xf32>
    %37 = vector.broadcast %36 : vector<1x32xf32> to vector<8x32xf32>
    %38 = arith.addf %35, %37 : vector<8x32xf32>
    %39 = arith.truncf %38 : vector<8x32xf32> to vector<8x32xbf16>
    %40 = vector.shape_cast %39 : vector<8x32xbf16> to vector<1x8x32xbf16>
    %c0_21 = arith.constant 0 : index
    %c0_22 = arith.constant 0 : index
    %41 = vector.load %arg5[%c0_21, %c0_22] : memref<32x32xbf16, #tpu.memory_space<vmem>>, vector<32x32xbf16>
    %cst_23 = arith.constant dense<0.000000e+00> : vector<8x32xf32>
    %42 = tpu.matmul %33, %41, %cst_23 {dimension_numbers = #tpu.dot_dimension_numbers<[1], [0], [0], [1], [0, 0, 1, 1], [], []>} : vector<8x32xbf16>, vector<32x32xbf16>, vector<8x32xf32> -> vector<8x32xf32>
    %c0_24 = arith.constant 0 : index
    %c0_25 = arith.constant 0 : index
    %43 = vector.load %arg6[%c0_24, %c0_25] : memref<1x32xf32, #tpu.memory_space<vmem>>, vector<1x32xf32>
    %44 = vector.broadcast %43 : vector<1x32xf32> to vector<8x32xf32>
    %45 = arith.addf %42, %44 : vector<8x32xf32>
    %46 = arith.truncf %45 : vector<8x32xf32> to vector<8x32xbf16>
    %47 = vector.shape_cast %46 : vector<8x32xbf16> to vector<1x8x32xbf16>
    %c0_26 = arith.constant 0 : index
    %c0_27 = arith.constant 0 : index
    %48 = vector.load %arg7[%c0_26, %c0_27] : memref<32x32xbf16, #tpu.memory_space<vmem>>, vector<32x32xbf16>
    %cst_28 = arith.constant dense<0.000000e+00> : vector<8x32xf32>
    %49 = tpu.matmul %33, %48, %cst_28 {dimension_numbers = #tpu.dot_dimension_numbers<[1], [0], [0], [1], [0, 0, 1, 1], [], []>} : vector<8x32xbf16>, vector<32x32xbf16>, vector<8x32xf32> -> vector<8x32xf32>
    %c0_29 = arith.constant 0 : index
    %c0_30 = arith.constant 0 : index
    %50 = vector.load %arg8[%c0_29, %c0_30] : memref<1x32xf32, #tpu.memory_space<vmem>>, vector<1x32xf32>
    %51 = vector.broadcast %50 : vector<1x32xf32> to vector<8x32xf32>
    %52 = arith.addf %49, %51 : vector<8x32xf32>
    %53 = arith.truncf %52 : vector<8x32xf32> to vector<8x32xbf16>
    %54 = vector.shape_cast %53 : vector<8x32xbf16> to vector<1x8x32xbf16>
    %55 = vector.extract_strided_slice %40 {offsets = [0, 0, 0], sizes = [1, 8, 8], strides = [1, 1, 1]} : vector<1x8x32xbf16> to vector<1x8x8xbf16>
    %56 = vector.extract_strided_slice %47 {offsets = [0, 0, 0], sizes = [1, 8, 8], strides = [1, 1, 1]} : vector<1x8x32xbf16> to vector<1x8x8xbf16>
    "tpu.trace_start"() <{level = 10 : i32, message = "bqd,bkd->bqk"}> : () -> ()
    %cst_31 = arith.constant dense<0.000000e+00> : vector<1x8x8xf32>
    %57 = tpu.matmul %55, %56, %cst_31 {dimension_numbers = #tpu.dot_dimension_numbers<[2], [2], [1], [1], [0, 0, 0, 1, 1, 1], [0], [0]>} : vector<1x8x8xbf16>, vector<1x8x8xbf16>, vector<1x8x8xf32> -> vector<1x8x8xf32>
    "tpu.trace_stop"() : () -> ()
    %58 = vector.broadcast %7 : vector<1x1x8xf32> to vector<1x8x8xf32>
    %59 = arith.addf %57, %58 : vector<1x8x8xf32>
    %cst_32 = arith.constant dense<0xFF800000> : vector<1x8xf32>
    %60 = vector.multi_reduction <maximumf>, %59, %cst_32 [2] : vector<1x8x8xf32> to vector<1x8xf32>
    %61 = vector.shape_cast %60 : vector<1x8xf32> to vector<1x8x1xf32>
    %62 = vector.broadcast %61 : vector<1x8x1xf32> to vector<1x8x8xf32>
    %63 = arith.subf %59, %62 : vector<1x8x8xf32>
    %64 = math.exp %63 : vector<1x8x8xf32>
    %cst_33 = arith.constant dense<0.000000e+00> : vector<1x8xf32>
    %65 = vector.multi_reduction <add>, %64, %cst_33 [2] : vector<1x8x8xf32> to vector<1x8xf32>
    %66 = vector.shape_cast %65 : vector<1x8xf32> to vector<1x8x1xf32>
    %67 = tpu.reciprocal %66 {approx = true} : vector<1x8x1xf32> -> vector<1x8x1xf32>
    %68 = vector.broadcast %67 : vector<1x8x1xf32> to vector<1x8x8xf32>
    %69 = arith.mulf %64, %68 : vector<1x8x8xf32>
    %70 = arith.truncf %69 : vector<1x8x8xf32> to vector<1x8x8xbf16>
    %71 = vector.extract_strided_slice %54 {offsets = [0, 0, 0], sizes = [1, 8, 8], strides = [1, 1, 1]} : vector<1x8x32xbf16> to vector<1x8x8xbf16>
    "tpu.trace_start"() <{level = 10 : i32, message = "bqk,bkd->bqd"}> : () -> ()
    %cst_34 = arith.constant dense<0.000000e+00> : vector<1x8x8xf32>
    %72 = tpu.matmul %70, %71, %cst_34 {dimension_numbers = #tpu.dot_dimension_numbers<[2], [1], [1], [2], [0, 0, 0, 1, 1, 2], [0], [0]>} : vector<1x8x8xbf16>, vector<1x8x8xbf16>, vector<1x8x8xf32> -> vector<1x8x8xf32>
    "tpu.trace_stop"() : () -> ()
    %73 = vector.shape_cast %72 : vector<1x8x8xf32> to vector<8x8xf32>
    %74 = arith.truncf %73 : vector<8x8xf32> to vector<8x8xbf16>
    %c0_35 = arith.constant 0 : index
    %c0_36 = arith.constant 0 : index
    %75 = vector.load %arg20[%c0_35, %c0_36] : memref<8x32xbf16, #tpu.memory_space<vmem>>, vector<8x8xbf16>
    tpu.vector_store %arg20[%c0_35, %c0_36], %74 {strides = array<i32>} : memref<8x32xbf16, #tpu.memory_space<vmem>>, vector<8x8xbf16>,
    %76 = vector.extract_strided_slice %40 {offsets = [0, 0, 8], sizes = [1, 8, 8], strides = [1, 1, 1]} : vector<1x8x32xbf16> to vector<1x8x8xbf16>
    %77 = vector.extract_strided_slice %47 {offsets = [0, 0, 8], sizes = [1, 8, 8], strides = [1, 1, 1]} : vector<1x8x32xbf16> to vector<1x8x8xbf16>
    "tpu.trace_start"() <{level = 10 : i32, message = "bqd,bkd->bqk"}> : () -> ()
    %cst_37 = arith.constant dense<0.000000e+00> : vector<1x8x8xf32>
    %78 = tpu.matmul %76, %77, %cst_37 {dimension_numbers = #tpu.dot_dimension_numbers<[2], [2], [1], [1], [0, 0, 0, 1, 1, 1], [0], [0]>} : vector<1x8x8xbf16>, vector<1x8x8xbf16>, vector<1x8x8xf32> -> vector<1x8x8xf32>
    "tpu.trace_stop"() : () -> ()
    %79 = vector.broadcast %7 : vector<1x1x8xf32> to vector<1x8x8xf32>
    %80 = arith.addf %78, %79 : vector<1x8x8xf32>
    %cst_38 = arith.constant dense<0xFF800000> : vector<1x8xf32>
    %81 = vector.multi_reduction <maximumf>, %80, %cst_38 [2] : vector<1x8x8xf32> to vector<1x8xf32>
    %82 = vector.shape_cast %81 : vector<1x8xf32> to vector<1x8x1xf32>
    %83 = vector.broadcast %82 : vector<1x8x1xf32> to vector<1x8x8xf32>
    %84 = arith.subf %80, %83 : vector<1x8x8xf32>
    %85 = math.exp %84 : vector<1x8x8xf32>
    %cst_39 = arith.constant dense<0.000000e+00> : vector<1x8xf32>
    %86 = vector.multi_reduction <add>, %85, %cst_39 [2] : vector<1x8x8xf32> to vector<1x8xf32>
    %87 = vector.shape_cast %86 : vector<1x8xf32> to vector<1x8x1xf32>
    %88 = tpu.reciprocal %87 {approx = true} : vector<1x8x1xf32> -> vector<1x8x1xf32>
    %89 = vector.broadcast %88 : vector<1x8x1xf32> to vector<1x8x8xf32>
    %90 = arith.mulf %85, %89 : vector<1x8x8xf32>
    %91 = arith.truncf %90 : vector<1x8x8xf32> to vector<1x8x8xbf16>
    %92 = vector.extract_strided_slice %54 {offsets = [0, 0, 8], sizes = [1, 8, 8], strides = [1, 1, 1]} : vector<1x8x32xbf16> to vector<1x8x8xbf16>
    "tpu.trace_start"() <{level = 10 : i32, message = "bqk,bkd->bqd"}> : () -> ()
    %cst_40 = arith.constant dense<0.000000e+00> : vector<1x8x8xf32>
    %93 = tpu.matmul %91, %92, %cst_40 {dimension_numbers = #tpu.dot_dimension_numbers<[2], [1], [1], [2], [0, 0, 0, 1, 1, 2], [0], [0]>} : vector<1x8x8xbf16>, vector<1x8x8xbf16>, vector<1x8x8xf32> -> vector<1x8x8xf32>
    "tpu.trace_stop"() : () -> ()
    %94 = vector.shape_cast %93 : vector<1x8x8xf32> to vector<8x8xf32>
    %95 = arith.truncf %94 : vector<8x8xf32> to vector<8x8xbf16>
    %c0_41 = arith.constant 0 : index
    %c8 = arith.constant 8 : index
    %96 = vector.load %arg20[%c0_41, %c8] : memref<8x32xbf16, #tpu.memory_space<vmem>>, vector<8x8xbf16>
    tpu.vector_store %arg20[%c0_41, %c8], %95 {strides = array<i32>} : memref<8x32xbf16, #tpu.memory_space<vmem>>, vector<8x8xbf16>,
    %97 = vector.extract_strided_slice %40 {offsets = [0, 0, 16], sizes = [1, 8, 8], strides = [1, 1, 1]} : vector<1x8x32xbf16> to vector<1x8x8xbf16>
    %98 = vector.extract_strided_slice %47 {offsets = [0, 0, 16], sizes = [1, 8, 8], strides = [1, 1, 1]} : vector<1x8x32xbf16> to vector<1x8x8xbf16>
    "tpu.trace_start"() <{level = 10 : i32, message = "bqd,bkd->bqk"}> : () -> ()
    %cst_42 = arith.constant dense<0.000000e+00> : vector<1x8x8xf32>
    %99 = tpu.matmul %97, %98, %cst_42 {dimension_numbers = #tpu.dot_dimension_numbers<[2], [2], [1], [1], [0, 0, 0, 1, 1, 1], [0], [0]>} : vector<1x8x8xbf16>, vector<1x8x8xbf16>, vector<1x8x8xf32> -> vector<1x8x8xf32>
    "tpu.trace_stop"() : () -> ()
    %100 = vector.broadcast %7 : vector<1x1x8xf32> to vector<1x8x8xf32>
    %101 = arith.addf %99, %100 : vector<1x8x8xf32>
    %cst_43 = arith.constant dense<0xFF800000> : vector<1x8xf32>
    %102 = vector.multi_reduction <maximumf>, %101, %cst_43 [2] : vector<1x8x8xf32> to vector<1x8xf32>
    %103 = vector.shape_cast %102 : vector<1x8xf32> to vector<1x8x1xf32>
    %104 = vector.broadcast %103 : vector<1x8x1xf32> to vector<1x8x8xf32>
    %105 = arith.subf %101, %104 : vector<1x8x8xf32>
    %106 = math.exp %105 : vector<1x8x8xf32>
    %cst_44 = arith.constant dense<0.000000e+00> : vector<1x8xf32>
    %107 = vector.multi_reduction <add>, %106, %cst_44 [2] : vector<1x8x8xf32> to vector<1x8xf32>
    %108 = vector.shape_cast %107 : vector<1x8xf32> to vector<1x8x1xf32>
    %109 = tpu.reciprocal %108 {approx = true} : vector<1x8x1xf32> -> vector<1x8x1xf32>
    %110 = vector.broadcast %109 : vector<1x8x1xf32> to vector<1x8x8xf32>
    %111 = arith.mulf %106, %110 : vector<1x8x8xf32>
    %112 = arith.truncf %111 : vector<1x8x8xf32> to vector<1x8x8xbf16>
    %113 = vector.extract_strided_slice %54 {offsets = [0, 0, 16], sizes = [1, 8, 8], strides = [1, 1, 1]} : vector<1x8x32xbf16> to vector<1x8x8xbf16>
    "tpu.trace_start"() <{level = 10 : i32, message = "bqk,bkd->bqd"}> : () -> ()
    %cst_45 = arith.constant dense<0.000000e+00> : vector<1x8x8xf32>
    %114 = tpu.matmul %112, %113, %cst_45 {dimension_numbers = #tpu.dot_dimension_numbers<[2], [1], [1], [2], [0, 0, 0, 1, 1, 2], [0], [0]>} : vector<1x8x8xbf16>, vector<1x8x8xbf16>, vector<1x8x8xf32> -> vector<1x8x8xf32>
    "tpu.trace_stop"() : () -> ()
    %115 = vector.shape_cast %114 : vector<1x8x8xf32> to vector<8x8xf32>
    %116 = arith.truncf %115 : vector<8x8xf32> to vector<8x8xbf16>
    %c0_46 = arith.constant 0 : index
    %c16 = arith.constant 16 : index
    %117 = vector.load %arg20[%c0_46, %c16] : memref<8x32xbf16, #tpu.memory_space<vmem>>, vector<8x8xbf16>
    tpu.vector_store %arg20[%c0_46, %c16], %116 {strides = array<i32>} : memref<8x32xbf16, #tpu.memory_space<vmem>>, vector<8x8xbf16>,
    %118 = vector.extract_strided_slice %40 {offsets = [0, 0, 24], sizes = [1, 8, 8], strides = [1, 1, 1]} : vector<1x8x32xbf16> to vector<1x8x8xbf16>
    %119 = vector.extract_strided_slice %47 {offsets = [0, 0, 24], sizes = [1, 8, 8], strides = [1, 1, 1]} : vector<1x8x32xbf16> to vector<1x8x8xbf16>
    "tpu.trace_start"() <{level = 10 : i32, message = "bqd,bkd->bqk"}> : () -> ()
    %cst_47 = arith.constant dense<0.000000e+00> : vector<1x8x8xf32>
    %120 = tpu.matmul %118, %119, %cst_47 {dimension_numbers = #tpu.dot_dimension_numbers<[2], [2], [1], [1], [0, 0, 0, 1, 1, 1], [0], [0]>} : vector<1x8x8xbf16>, vector<1x8x8xbf16>, vector<1x8x8xf32> -> vector<1x8x8xf32>
    "tpu.trace_stop"() : () -> ()
    %121 = vector.broadcast %7 : vector<1x1x8xf32> to vector<1x8x8xf32>
    %122 = arith.addf %120, %121 : vector<1x8x8xf32>
    %cst_48 = arith.constant dense<0xFF800000> : vector<1x8xf32>
    %123 = vector.multi_reduction <maximumf>, %122, %cst_48 [2] : vector<1x8x8xf32> to vector<1x8xf32>
    %124 = vector.shape_cast %123 : vector<1x8xf32> to vector<1x8x1xf32>
    %125 = vector.broadcast %124 : vector<1x8x1xf32> to vector<1x8x8xf32>
    %126 = arith.subf %122, %125 : vector<1x8x8xf32>
    %127 = math.exp %126 : vector<1x8x8xf32>
    %cst_49 = arith.constant dense<0.000000e+00> : vector<1x8xf32>
    %128 = vector.multi_reduction <add>, %127, %cst_49 [2] : vector<1x8x8xf32> to vector<1x8xf32>
    %129 = vector.shape_cast %128 : vector<1x8xf32> to vector<1x8x1xf32>
    %130 = tpu.reciprocal %129 {approx = true} : vector<1x8x1xf32> -> vector<1x8x1xf32>
    %131 = vector.broadcast %130 : vector<1x8x1xf32> to vector<1x8x8xf32>
    %132 = arith.mulf %127, %131 : vector<1x8x8xf32>
    %133 = arith.truncf %132 : vector<1x8x8xf32> to vector<1x8x8xbf16>
    %134 = vector.extract_strided_slice %54 {offsets = [0, 0, 24], sizes = [1, 8, 8], strides = [1, 1, 1]} : vector<1x8x32xbf16> to vector<1x8x8xbf16>
    "tpu.trace_start"() <{level = 10 : i32, message = "bqk,bkd->bqd"}> : () -> ()
    %cst_50 = arith.constant dense<0.000000e+00> : vector<1x8x8xf32>
    %135 = tpu.matmul %133, %134, %cst_50 {dimension_numbers = #tpu.dot_dimension_numbers<[2], [1], [1], [2], [0, 0, 0, 1, 1, 2], [0], [0]>} : vector<1x8x8xbf16>, vector<1x8x8xbf16>, vector<1x8x8xf32> -> vector<1x8x8xf32>
    "tpu.trace_stop"() : () -> ()
    %136 = vector.shape_cast %135 : vector<1x8x8xf32> to vector<8x8xf32>
    %137 = arith.truncf %136 : vector<8x8xf32> to vector<8x8xbf16>
    %c0_51 = arith.constant 0 : index
    %c24 = arith.constant 24 : index
    %138 = vector.load %arg20[%c0_51, %c24] : memref<8x32xbf16, #tpu.memory_space<vmem>>, vector<8x8xbf16>
    tpu.vector_store %arg20[%c0_51, %c24], %137 {strides = array<i32>} : memref<8x32xbf16, #tpu.memory_space<vmem>>, vector<8x8xbf16>,
    %c0_52 = arith.constant 0 : index
    %c0_53 = arith.constant 0 : index
    %139 = vector.load %arg20[%c0_52, %c0_53] : memref<8x32xbf16, #tpu.memory_space<vmem>>, vector<8x32xbf16>
    %c0_54 = arith.constant 0 : index
    %c0_55 = arith.constant 0 : index
    %140 = vector.load %arg9[%c0_54, %c0_55] : memref<32x32xbf16, #tpu.memory_space<vmem>>, vector<32x32xbf16>
    %cst_56 = arith.constant dense<0.000000e+00> : vector<8x32xf32>
    %141 = tpu.matmul %139, %140, %cst_56 {dimension_numbers = #tpu.dot_dimension_numbers<[1], [0], [0], [1], [0, 0, 1, 1], [], []>} : vector<8x32xbf16>, vector<32x32xbf16>, vector<8x32xf32> -> vector<8x32xf32>
    %142 = arith.addf %1, %141 : vector<8x32xf32>
    %c0_57 = arith.constant 0 : index
    %c0_58 = arith.constant 0 : index
    %143 = vector.load %arg10[%c0_57, %c0_58] : memref<1x32xf32, #tpu.memory_space<vmem>>, vector<1x32xf32>
    %144 = vector.broadcast %143 : vector<1x32xf32> to vector<8x32xf32>
    %145 = arith.addf %142, %144 : vector<8x32xf32>
    %c0_59 = arith.constant 0 : index
    %c0_60 = arith.constant 0 : index
    %146 = vector.load %arg17[%c0_59, %c0_60] : memref<1x32xf32, #tpu.memory_space<vmem>>, vector<1x32xf32>
    %c0_61 = arith.constant 0 : index
    %c0_62 = arith.constant 0 : index
    %147 = vector.load %arg18[%c0_61, %c0_62] : memref<1x32xf32, #tpu.memory_space<vmem>>, vector<1x32xf32>
    %cst_63 = arith.constant dense<0.000000e+00> : vector<8xf32>
    %148 = vector.multi_reduction <add>, %145, %cst_63 [1] : vector<8x32xf32> to vector<8xf32>
    %149 = vector.shape_cast %148 : vector<8xf32> to vector<8x1xf32>
    %cst_64 = arith.constant 3.200000e+01 : f32
    %150 = vector.broadcast %cst_64 : f32 to vector<8x1xf32>
    %151 = arith.divf %149, %150 : vector<8x1xf32>
    %152 = vector.broadcast %151 : vector<8x1xf32> to vector<8x32xf32>
    %153 = arith.subf %145, %152 : vector<8x32xf32>
    %154 = arith.mulf %153, %153 : vector<8x32xf32>
    %cst_65 = arith.constant dense<0.000000e+00> : vector<8xf32>
    %155 = vector.multi_reduction <add>, %154, %cst_65 [1] : vector<8x32xf32> to vector<8xf32>
    %156 = vector.shape_cast %155 : vector<8xf32> to vector<8x1xf32>
    %cst_66 = arith.constant 3.100000e+01 : f32
    %157 = vector.broadcast %cst_66 : f32 to vector<8x1xf32>
    %158 = arith.divf %156, %157 : vector<8x1xf32>
    %159 = math.sqrt %158 : vector<8x1xf32>
    %cst_67 = arith.constant 9.99999997E-7 : f32
    %160 = vector.broadcast %cst_67 : f32 to vector<8x1xf32>
    %161 = arith.addf %159, %160 : vector<8x1xf32>
    %162 = tpu.reciprocal %161 {approx = true} : vector<8x1xf32> -> vector<8x1xf32>
    %163 = vector.broadcast %151 : vector<8x1xf32> to vector<8x32xf32>
    %164 = arith.subf %145, %163 : vector<8x32xf32>
    %165 = vector.broadcast %146 : vector<1x32xf32> to vector<8x32xf32>
    %166 = arith.mulf %165, %164 : vector<8x32xf32>
    %167 = vector.broadcast %162 : vector<8x1xf32> to vector<8x32xf32>
    %168 = arith.mulf %166, %167 : vector<8x32xf32>
    %169 = vector.broadcast %147 : vector<1x32xf32> to vector<8x32xf32>
    %170 = arith.addf %168, %169 : vector<8x32xf32>
    %171 = arith.truncf %170 : vector<8x32xf32> to vector<8x32xbf16>
    %c0_68 = arith.constant 0 : index
    %c0_69 = arith.constant 0 : index
    %172 = vector.load %arg13[%c0_68, %c0_69] : memref<32x64xbf16, #tpu.memory_space<vmem>>, vector<32x64xbf16>
    %cst_70 = arith.constant dense<0.000000e+00> : vector<8x64xf32>
    %173 = tpu.matmul %171, %172, %cst_70 {dimension_numbers = #tpu.dot_dimension_numbers<[1], [0], [0], [1], [0, 0, 1, 1], [], []>} : vector<8x32xbf16>, vector<32x64xbf16>, vector<8x64xf32> -> vector<8x64xf32>
    %c0_71 = arith.constant 0 : index
    %c0_72 = arith.constant 0 : index
    %174 = vector.load %arg14[%c0_71, %c0_72] : memref<1x64xf32, #tpu.memory_space<vmem>>, vector<1x64xf32>
    %175 = vector.broadcast %174 : vector<1x64xf32> to vector<8x64xf32>
    %176 = arith.addf %173, %175 : vector<8x64xf32>
    %cst_73 = arith.constant 0.000000e+00 : f32
    %177 = vector.broadcast %cst_73 : f32 to vector<8x64xf32>
    %178 = arith.maximumf %176, %177 : vector<8x64xf32>
    %179 = arith.truncf %178 : vector<8x64xf32> to vector<8x64xbf16>
    %c0_74 = arith.constant 0 : index
    %c0_75 = arith.constant 0 : index
    %180 = vector.load %arg15[%c0_74, %c0_75] : memref<64x32xbf16, #tpu.memory_space<vmem>>, vector<64x32xbf16>
    %cst_76 = arith.constant dense<0.000000e+00> : vector<8x32xf32>
    %181 = tpu.matmul %179, %180, %cst_76 {dimension_numbers = #tpu.dot_dimension_numbers<[1], [0], [0], [1], [0, 0, 1, 1], [], []>} : vector<8x64xbf16>, vector<64x32xbf16>, vector<8x32xf32> -> vector<8x32xf32>
    %c0_77 = arith.constant 0 : index
    %c0_78 = arith.constant 0 : index
    %182 = vector.load %arg16[%c0_77, %c0_78] : memref<1x32xf32, #tpu.memory_space<vmem>>, vector<1x32xf32>
    %183 = vector.broadcast %182 : vector<1x32xf32> to vector<8x32xf32>
    %184 = arith.addf %181, %183 : vector<8x32xf32>
    %185 = arith.addf %145, %184 : vector<8x32xf32>
    %186 = vector.shape_cast %185 : vector<8x32xf32> to vector<1x8x32xf32>
    %c0_79 = arith.constant 0 : index
    %c0_80 = arith.constant 0 : index
    %c0_81 = arith.constant 0 : index
    %187 = vector.load %arg19[%c0_79, %c0_80, %c0_81] : memref<1x8x32xf32, #tpu.memory_space<vmem>>, vector<1x8x32xf32>
    tpu.vector_store %arg19[%c0_79, %c0_80, %c0_81], %186 {strides = array<i32>} : memref<1x8x32xf32, #tpu.memory_space<vmem>>, vector<1x8x32xf32>,
    return
  }
  func.func @transform_0(%arg0: i32) -> (i32, i32, i32) {
    %c0_i32 = arith.constant 0 : i32
    %c0_i32_0 = arith.constant 0 : i32
    %c0_i32_1 = arith.constant 0 : i32
    return %arg0, %c0_i32, %c0_i32_0 : i32, i32, i32
  }
  func.func @transform_1(%arg0: i32) -> (i32, i32, i32) {
    %c0_i32 = arith.constant 0 : i32
    %c0_i32_0 = arith.constant 0 : i32
    %c0_i32_1 = arith.constant 0 : i32
    return %arg0, %c0_i32, %c0_i32_0 : i32, i32, i32
  }
  func.func @transform_2(%arg0: i32) -> (i32, i32) {
    %c0_i32 = arith.constant 0 : i32
    %c0_i32_0 = arith.constant 0 : i32
    %c0_i32_1 = arith.constant 0 : i32
    return %c0_i32, %c0_i32_0 : i32, i32
  }
  func.func @transform_3(%arg0: i32) -> (i32, i32) {
    %c0_i32 = arith.constant 0 : i32
    %c0_i32_0 = arith.constant 0 : i32
    %c0_i32_1 = arith.constant 0 : i32
    return %c0_i32, %c0_i32_0 : i32, i32
  }
  func.func @transform_4(%arg0: i32) -> (i32, i32) {
    %c0_i32 = arith.constant 0 : i32
    %c0_i32_0 = arith.constant 0 : i32
    %c0_i32_1 = arith.constant 0 : i32
    return %c0_i32, %c0_i32_0 : i32, i32
  }
  func.func @transform_5(%arg0: i32) -> (i32, i32) {
    %c0_i32 = arith.constant 0 : i32
    %c0_i32_0 = arith.constant 0 : i32
    %c0_i32_1 = arith.constant 0 : i32
    return %c0_i32, %c0_i32_0 : i32, i32
  }
  func.func @transform_6(%arg0: i32) -> (i32, i32) {
    %c0_i32 = arith.constant 0 : i32
    %c0_i32_0 = arith.constant 0 : i32
    %c0_i32_1 = arith.constant 0 : i32
    return %c0_i32, %c0_i32_0 : i32, i32
  }
  func.func @transform_7(%arg0: i32) -> (i32, i32) {
    %c0_i32 = arith.constant 0 : i32
    %c0_i32_0 = arith.constant 0 : i32
    %c0_i32_1 = arith.constant 0 : i32
    return %c0_i32, %c0_i32_0 : i32, i32
  }
  func.func @transform_8(%arg0: i32) -> (i32, i32) {
    %c0_i32 = arith.constant 0 : i32
    %c0_i32_0 = arith.constant 0 : i32
    %c0_i32_1 = arith.constant 0 : i32
    return %c0_i32, %c0_i32_0 : i32, i32
  }
  func.func @transform_9(%arg0: i32) -> (i32, i32) {
    %c0_i32 = arith.constant 0 : i32
    %c0_i32_0 = arith.constant 0 : i32
    %c0_i32_1 = arith.constant 0 : i32
    return %c0_i32, %c0_i32_0 : i32, i32
  }
  func.func @transform_10(%arg0: i32) -> (i32, i32) {
    %c0_i32 = arith.constant 0 : i32
    %c0_i32_0 = arith.constant 0 : i32
    %c0_i32_1 = arith.constant 0 : i32
    return %c0_i32, %c0_i32_0 : i32, i32
  }
  func.func @transform_11(%arg0: i32) -> (i32, i32) {
    %c0_i32 = arith.constant 0 : i32
    %c0_i32_0 = arith.constant 0 : i32
    %c0_i32_1 = arith.constant 0 : i32
    return %c0_i32, %c0_i32_0 : i32, i32
  }
  func.func @transform_12(%arg0: i32) -> (i32, i32) {
    %c0_i32 = arith.constant 0 : i32
    %c0_i32_0 = arith.constant 0 : i32
    %c0_i32_1 = arith.constant 0 : i32
    return %c0_i32, %c0_i32_0 : i32, i32
  }
  func.func @transform_13(%arg0: i32) -> (i32, i32) {
    %c0_i32 = arith.constant 0 : i32
    %c0_i32_0 = arith.constant 0 : i32
    %c0_i32_1 = arith.constant 0 : i32
    return %c0_i32, %c0_i32_0 : i32, i32
  }
  func.func @transform_14(%arg0: i32) -> (i32, i32) {
    %c0_i32 = arith.constant 0 : i32
    %c0_i32_0 = arith.constant 0 : i32
    %c0_i32_1 = arith.constant 0 : i32
    return %c0_i32, %c0_i32_0 : i32, i32
  }
  func.func @transform_15(%arg0: i32) -> (i32, i32) {
    %c0_i32 = arith.constant 0 : i32
    %c0_i32_0 = arith.constant 0 : i32
    %c0_i32_1 = arith.constant 0 : i32
    return %c0_i32, %c0_i32_0 : i32, i32
  }
  func.func @transform_16(%arg0: i32) -> (i32, i32) {
    %c0_i32 = arith.constant 0 : i32
    %c0_i32_0 = arith.constant 0 : i32
    %c0_i32_1 = arith.constant 0 : i32
    return %c0_i32, %c0_i32_0 : i32, i32
  }
  func.func @transform_17(%arg0: i32) -> (i32, i32) {
    %c0_i32 = arith.constant 0 : i32
    %c0_i32_0 = arith.constant 0 : i32
    %c0_i32_1 = arith.constant 0 : i32
    return %c0_i32, %c0_i32_0 : i32, i32
  }
  func.func @transform_18(%arg0: i32) -> (i32, i32, i32) {
    %c0_i32 = arith.constant 0 : i32
    %c0_i32_0 = arith.constant 0 : i32
    %c0_i32_1 = arith.constant 0 : i32
    return %arg0, %c0_i32, %c0_i32_0 : i32, i32, i32
  }
}

</mosaic_0001>

<bundles_post_ra>
// kernel: tpu_custom_call.1
= control target key start
LH: loop header
LB: loop body
LE: loop exit
PB: predicated region body
PF: predicated region fallthrough
CT: control target
= control target key end

     0   :  { %s2925_s0 = inlined_call_operand.vmem [shape: f32[2,8,32], index: 0, kind: input, shape index: {}]   ;;  %s2926_s1 = inlined_call_operand.vmem [shape: f32[2,1,8], index: 1, kind: input, shape index: {}]   ;;  %s2927_s2 = inlined_call_operand.vmem [shape: bf16[32,32], index: 2, kind: input, shape index: {}]   ;;  %s2928_s3 = inlined_call_operand.hbm [shape: f32[1,32], index: 3, kind: input, shape index: {}]   ;;  %s2929_s4 = inlined_call_operand.vmem [shape: bf16[32,32], index: 4, kind: input, shape index: {}]   ;;  %s2930_s5 = inlined_call_operand.hbm [shape: f32[1,32], index: 5, kind: input, shape index: {}]   ;;  %s2931_s6 = inlined_call_operand.hbm [shape: bf16[32,32], index: 6, kind: input, shape index: {}]   ;;  %s2932_s7 = inlined_call_operand.hbm [shape: f32[1,32], index: 7, kind: input, shape index: {}]   ;;  %s2933_s8 = inlined_call_operand.hbm [shape: bf16[32,32], index: 8, kind: input, shape index: {}]   ;;  %s2934_s9 = inlined_call_operand.hbm [shape: f32[1,32], index: 9, kind: input, shape index: {}]   ;;  %s2935_s10 = inlined_call_operand.vmem [shape: f32[1,32], index: 10, kind: input, shape index: {}]   ;;  %s2936_s11 = inlined_call_operand.vmem [shape: f32[1,32], index: 11, kind: input, shape index: {}]   ;;  %s2937_s12 = inlined_call_operand.vmem [shape: bf16[32,64], index: 12, kind: input, shape index: {}]   ;;  %s2938_s13 = inlined_call_operand.vmem [shape: f32[1,64], index: 13, kind: input, shape index: {}]   ;;  %s2939_s14 = inlined_call_operand.vmem [shape: bf16[64,32], index: 14, kind: input, shape index: {}]   ;;  %s2940_s15 = inlined_call_operand.vmem [shape: f32[1,32], index: 15, kind: input, shape index: {}]   ;;  %s2941_s16 = inlined_call_operand.vmem [shape: f32[1,32], index: 16, kind: input, shape index: {}]   ;;  %s2942_s17 = inlined_call_operand.vmem [shape: f32[1,32], index: 17, kind: input, shape index: {}]   ;;  %s2943_s18 = inlined_call_operand.hbm [shape: f32[2,8,32], index: 18, kind: output, shape index: {}]  }
   0x1   :  { %2957 = sst [smem:[#allocation27_spill]] %s2925_s0 }
   0x2   :  { %2958 = sst [smem:[#allocation28_spill]] %s2926_s1 }
   0x3   :  { %2959 = sst [smem:[#allocation29_spill]] %s2927_s2 }
   0x4   :  { %2960 = sst [smem:[#allocation30_spill]] %s2928_s3 }
   0x5   :  { %2961 = sst [smem:[#allocation31_spill]] %s2930_s5 }
   0x6   :  { %2962 = sst [smem:[#allocation32_spill]] %s2940_s15 }
   0x7   :  { %2963 = sst [smem:[#allocation33_spill]] %s2943_s18 }
   0x8   :  { %23 = vsyncpa [#allocation4], 0 }
   0x9   :  { %24 = vsyncpa [#allocation7], 0 }
   0xa   :  { %25 = vsyncpa [#allocation10], 0 }
   0xb   :  { %26 = vsyncpa [#allocation13], 0 }
   0xc   :  { %27 = vsyncpa [#allocation5], 0 }
   0xd   :  { %29 = vsyncpa [#allocation5 + $0x1], 0  ;;  %s2491_s27 = smov 0   ;;  %s2493_s28 = smov 0  }
   0xe   :  { %s2495_s29 = smov 0   ;;  %s2497_s30 = smov 0  }
   0xf LB: > { %2964 = sst [smem:[#allocation20_spill]] %s2365_s27  ;;  %s2512_s0 = sadd.s32 4294967295, %s2377_s30   ;;  %s2377_s30 = sphi %s2497_s30, %s2998_s30   ;;  %s2373_s29 = sphi %s2495_s29, %s3000_s29   ;;  %s2369_s28 = sphi %s2493_s28, %s3002_s28   ;;  %s2365_s27 = sphi %s2491_s27, %s3001_s27  }
  0x10   : > { %2965 = sst [smem:[#allocation21_spill]] %s2373_s29  ;;  %s1781_s19 = sadd.s32 4294967294, %s2377_s30  }
  0x11   : > { %2966 = sst [smem:[#allocation22_spill]] %s2377_s30  ;;  %s2516_s1 = sadd.s32 1, %s2377_s30  }
  0x12   : > { %2967 = sst [smem:[#allocation23_spill]] %s2516_s1  ;;  %s430_s20 = sadd.s32 1, %s2373_s29 }
  0x13   : > { %s427_s21 = ssub.s32 %s2377_s30, %s2516_s1  ;;  %p440_p0 = scmp.ne.s32.totalorder %s2373_s29, %s2369_s28 }
  0x14   : > { %p428_p1 = scmp.eq.s32.totalorder %s427_s21, 0  ;;  %p441_p2 = scmp.eq.s32.totalorder %s2512_s0, 1 }
  0x15   : > { %p446_p3 = scmp.ne.s32.totalorder %s2369_s28, %s2365_s27  ;;  %p447_p4 = scmp.eq.s32.totalorder %s1781_s19, 1 }
  0x16   : > { %s2527_s22 = scalar_select %p428_p1, %s2373_s29, %s430_s20  }
  0x17   : > { %p2529_p5 = por %p441_p2, %p440_p0  ;;  %p2533_p6 = por %p447_p4, %p446_p3 }
  0x18   : > { %2968 = sst [smem:[#allocation24_spill]] %s2527_s22  ;;  %p1782_p7 = scmp.ge.s32.totalorder %s2377_s30, 1 }
  0x19   : > { %s2969_s2 = scalar_select %p2529_p5, 1, 0 }
  0x1a   : > { %s2971_s23 = scalar_select %p2533_p6, 1, 0 }
  0x1b   : > { %2970 = sst [smem:[#allocation25_spill]] %s2969_s2  ;;  %p454_p8 = scmp.lt.s32.totalorder %s2377_s30, 3 }
  0x1c   : > { %2972 = sst [smem:[#allocation26_spill]] %s2971_s23  ;;  %p2952_p9 = scmp.eq.s32.totalorder %s2512_s0, 0 }
  0x1d   : > { %p2540_p10 = pnand %p1782_p7, %p454_p8  ;;  %s2379_s25 = smov [#allocation6]  }
  0x1e   : > { %s484_s26 = sshll.u32 %s2379_s25, 4  ;;  %s2380_s19 = smov [#allocation9]   ;;  %s485_s26 = int_to_ptr.vmem [resolvable:$true] %s484_s26 }
  0x1f   : > { %s2973_s24 = scalar_select %p2540_p10, 1, 0 }
  0x20   : > { %p2009_p11 = pneg %p2540_p10  ;;  %s508_s20 = sshll.u32 %s2380_s19, 4  ;;  %s2552_s20 = int_to_ptr.vmem [resolvable:$true] %s508_s20 }
  0x21   : > { %s2381_s22 = smov [#allocation3]   ;;  %s2975_s5 = sld [smem:[#allocation31_spill]] }
  0x22   : > { %p2548_p12 = pnand %p2952_p9, %p2009_p11  ;;  %s470_s29 = sshll.u32 %s2381_s22, 4  ;;  %s2554_s29 = int_to_ptr.vmem [resolvable:$true] %s470_s29 }
  0x24   : > { %p2564_p0 = pneg %p2548_p12 }
  0x27   : > { %s2131_s25 = scalar_lea.hbm %s2975_s5, 16 }
  0x28   : > { %p2132_p13 = scmp.ne.s32.totalorder %s2975_s5, %s2131_s25  ;;  %p2138_p3 = scmp.lt.u32.totalorder %s2131_s25, %s2975_s5 }
  0x2a   : > { %p2134_p1 = pnand %p2564_p0, %p2132_p13 }
  0x2c   : > { %p2135_p2 = pneg %p2134_p1 }
  0x2e   : > { %p2140_p4 = pnand %p2138_p3, %p2135_p2 }
  0x30   : > { %2143 = shalt.err (!%p2140_p4)
}
  0x31   : > { %s2144_s1 = scalar_lea.vmem %s485_s26, 16  ;;  %s2151_s27 = scalar_lea.vmem %s485_s26, 32 }
  0x32   : > { %p2145_p7 = scmp.ne.s32.totalorder %s485_s26, %s2144_s1  ;;  %p2152_p9 = scmp.lt.s32.totalorder %s485_s26, %s485_s26 }
  0x33   : > { %p2153_p6 = scmp.lt.s32.totalorder %s2151_s27, %s2144_s1 }
  0x34   : > { %p2147_p8 = pnand %p2145_p7, %p2564_p0 }
  0x35   : > { %p2154_p5 = por %p2153_p6, %p2152_p9 }
  0x36   : > { %p2148_p11 = pneg %p2147_p8 }
  0x38   : > { %p2155_p10 = pnand %p2154_p5, %p2148_p11 }
  0x3a   : > { %2158 = shalt.err (!%p2155_p10)
}
  0x3b   : > { %2015 = dma.hbm_to_vmem [thread:$0]  (!%p2548_p12), %s2975_s5, 16, %s485_s26, [#allocation7]  }
  0x3c   : > { %s2159_s22 = scalar_lea.hbm %s2932_s7, 16 }
  0x3d   : > { %p2160_p13 = scmp.ne.s32.totalorder %s2932_s7, %s2159_s22  ;;  %p2166_p5 = scmp.lt.u32.totalorder %s2159_s22, %s2932_s7 }
  0x3f   : > { %p2162_p1 = pnand %p2160_p13, %p2564_p0 }
  0x41   : > { %p2163_p6 = pneg %p2162_p1 }
  0x43   : > { %p2168_p9 = pnand %p2166_p5, %p2163_p6 }
  0x45   : > { %2171 = shalt.err (!%p2168_p9)
}
  0x46   : > { %s2172_s26 = scalar_lea.vmem %s2552_s20, 16  ;;  %s2179_s15 = scalar_lea.vmem %s2552_s20, 32 }
  0x47   : > { %p2173_p10 = scmp.ne.s32.totalorder %s2552_s20, %s2172_s26  ;;  %p2180_p4 = scmp.lt.s32.totalorder %s2552_s20, %s2552_s20 }
  0x48   : > { %p2181_p7 = scmp.lt.s32.totalorder %s2179_s15, %s2172_s26 }
  0x49   : > { %p2175_p2 = pnand %p2173_p10, %p2564_p0 }
  0x4a   : > { %p2182_p8 = por %p2181_p7, %p2180_p4 }
  0x4b   : > { %p2176_p3 = pneg %p2175_p2 }
  0x4d   : > { %p2183_p11 = pnand %p2182_p8, %p2176_p3 }
  0x4f   : > { %2186 = shalt.err (!%p2183_p11)
}
  0x50   : > { %2021 = dma.hbm_to_vmem [thread:$0]  (!%p2548_p12), %s2932_s7, 16, %s2552_s20, [#allocation10]  }
  0x51   : > { %s2977_s3 = sld [smem:[#allocation30_spill]] }
  0x57   : > { %s2187_s25 = scalar_lea.hbm %s2977_s3, 16 }
  0x58   : > { %p2188_p13 = scmp.ne.s32.totalorder %s2977_s3, %s2187_s25  ;;  %p2194_p5 = scmp.lt.u32.totalorder %s2187_s25, %s2977_s3 }
  0x5a   : > { %p2190_p1 = pnand %p2188_p13, %p2564_p0 }
  0x5c   : > { %p2191_p6 = pneg %p2190_p1 }
  0x5e   : > { %p2196_p9 = pnand %p2194_p5, %p2191_p6 }
  0x60   : > { %2199 = shalt.err (!%p2196_p9)
}
  0x61   : > { %s2200_s20 = scalar_lea.vmem %s2554_s29, 16  ;;  %s2207_s15 = scalar_lea.vmem %s2554_s29, 32 }
  0x62   : > { %p2201_p10 = scmp.ne.s32.totalorder %s2554_s29, %s2200_s20  ;;  %p2208_p4 = scmp.lt.s32.totalorder %s2554_s29, %s2554_s29 }
  0x63   : > { %p2209_p7 = scmp.lt.s32.totalorder %s2207_s15, %s2200_s20 }
  0x64   : > { %p2203_p2 = pnand %p2201_p10, %p2564_p0 }
  0x65   : > { %p2210_p8 = por %p2209_p7, %p2208_p4 }
  0x66   : > { %p2204_p3 = pneg %p2203_p2 }
  0x68   : > { %p2211_p11 = pnand %p2210_p8, %p2204_p3 }
  0x6a   : > { %2214 = shalt.err (!%p2211_p11)
}
  0x6b   : > { %2012 = dma.hbm_to_vmem [thread:$0]  (!%p2548_p12), %s2977_s3, 16, %s2554_s29, [#allocation4]  }
  0x6c   : > { %s2382_s23 = smov [#allocation8]   ;;  %s2215_s1 = scalar_lea.hbm %s2931_s6, 256 }
  0x6d   : > { %s494_s18 = sshll.u32 %s2382_s23, 4  ;;  %p2216_p13 = scmp.ne.s32.totalorder %s2931_s6, %s2215_s1  ;;  %s495_s18 = int_to_ptr.vmem [resolvable:$true] %s494_s18 }
  0x6e   : > { %p2222_p5 = scmp.lt.u32.totalorder %s2215_s1, %s2931_s6 }
  0x6f   : > { %p2218_p1 = pnand %p2216_p13, %p2564_p0 }
  0x71   : > { %p2219_p6 = pneg %p2218_p1 }
  0x73   : > { %p2224_p9 = pnand %p2222_p5, %p2219_p6 }
  0x75   : > { %2227 = shalt.err (!%p2224_p9)
}
  0x76   : > { %s2228_s29 = scalar_lea.vmem %s495_s18, 256  ;;  %p2236_p4 = scmp.lt.s32.totalorder %s495_s18, %s495_s18 }
  0x77   : > { %p2229_p10 = scmp.ne.s32.totalorder %s495_s18, %s2228_s29  ;;  %p2237_p7 = scmp.lt.s32.totalorder %s2228_s29, %s2228_s29 }
  0x79   : > { %p2231_p2 = pnand %p2229_p10, %p2564_p0  ;;  %p2238_p8 = por %p2237_p7, %p2236_p4 }
  0x7b   : > { %p2232_p3 = pneg %p2231_p2 }
  0x7d   : > { %p2239_p11 = pnand %p2238_p8, %p2232_p3 }
  0x7f   : > { %2242 = shalt.err (!%p2239_p11)
}
  0x80   : > { %s2383_s2 = smov 64   ;;  %s2384_s30 = smov 4  }
  0x81   : > { %2018 = dma.hbm_to_vmem [thread:$0]  (!%p2548_p12), %s2931_s6, 256, %s495_s18, [#allocation7], %s2383_s2, %s2383_s2, %s2384_s30  }
  0x82   : > { %s2385_s22 = smov [#allocation11]   ;;  %s2386_s27 = smov [#allocation12]  }
  0x83   : > { %s518_s1 = sshll.u32 %s2385_s22, 4  ;;  %s532_s26 = sshll.u32 %s2386_s27, 4  ;;  %s519_s1 = int_to_ptr.vmem [resolvable:$true] %s518_s1  ;;  %s2646_s26 = int_to_ptr.vmem [resolvable:$true] %s532_s26 }
  0x84   : > { %s2243_s29 = scalar_lea.hbm %s2933_s8, 256 }
  0x85   : > { %p2244_p13 = scmp.ne.s32.totalorder %s2933_s8, %s2243_s29  ;;  %p2250_p5 = scmp.lt.u32.totalorder %s2243_s29, %s2933_s8 }
  0x87   : > { %p2246_p1 = pnand %p2244_p13, %p2564_p0 }
  0x89   : > { %p2247_p6 = pneg %p2246_p1 }
  0x8b   : > { %p2252_p9 = pnand %p2250_p5, %p2247_p6 }
  0x8d   : > { %2255 = shalt.err (!%p2252_p9)
}
  0x8e   : > { %s2256_s25 = scalar_lea.vmem %s519_s1, 256  ;;  %p2264_p4 = scmp.lt.s32.totalorder %s519_s1, %s519_s1 }
  0x8f   : > { %p2257_p10 = scmp.ne.s32.totalorder %s519_s1, %s2256_s25  ;;  %p2265_p7 = scmp.lt.s32.totalorder %s2256_s25, %s2256_s25 }
  0x91   : > { %p2259_p2 = pnand %p2257_p10, %p2564_p0  ;;  %p2266_p8 = por %p2265_p7, %p2264_p4 }
  0x93   : > { %p2260_p3 = pneg %p2259_p2 }
  0x95   : > { %p2267_p11 = pnand %p2266_p8, %p2260_p3 }
  0x97   : > { %2270 = shalt.err (!%p2267_p11)
}
  0x98   : > { %2024 = dma.hbm_to_vmem [thread:$0]  (!%p2548_p12), %s2933_s8, 256, %s519_s1, [#allocation10], %s2383_s2, %s2383_s2, %s2384_s30  }
  0x99   : > { %s2271_s20 = scalar_lea.hbm %s2934_s9, 16 }
  0x9a   : > { %p2272_p13 = scmp.ne.s32.totalorder %s2934_s9, %s2271_s20  ;;  %p2278_p5 = scmp.lt.u32.totalorder %s2271_s20, %s2934_s9 }
  0x9c   : > { %p2274_p1 = pnand %p2272_p13, %p2564_p0 }
  0x9e   : > { %p2275_p6 = pneg %p2274_p1 }
  0xa0   : > { %p2280_p9 = pnand %p2278_p5, %p2275_p6 }
  0xa2   : > { %2283 = shalt.err (!%p2280_p9)
}
  0xa3   : > { %s2284_s2 = scalar_lea.vmem %s2646_s26, 16  ;;  %s2291_s30 = scalar_lea.vmem %s2646_s26, 32 }
  0xa4   : > { %p2285_p10 = scmp.ne.s32.totalorder %s2646_s26, %s2284_s2  ;;  %p2292_p4 = scmp.lt.s32.totalorder %s2646_s26, %s2646_s26 }
  0xa5   : > { %p2293_p7 = scmp.lt.s32.totalorder %s2291_s30, %s2284_s2 }
  0xa6   : > { %p2287_p2 = pnand %p2285_p10, %p2564_p0 }
  0xa7   : > { %p2294_p8 = por %p2293_p7, %p2292_p4 }
  0xa8   : > { %p2288_p3 = pneg %p2287_p2 }
  0xaa   : > { %p2295_p11 = pnand %p2294_p8, %p2288_p3 }
  0xac   : > { %2298 = shalt.err (!%p2295_p11)
}
  0xad   : > { %2027 = dma.hbm_to_vmem [thread:$0]  (!%p2548_p12), %s2934_s9, 16, %s2646_s26, [#allocation13]  }
  0xae   : > { %p2978_p13 = scmp.ne.s32.totalorder %s2973_s24, 0 }
  0xaf   : > { %p2979_p0 = scmp.eq.s32.totalorder (!%p2978_p13), %s2512_s0, 0 }
  0xb0   : > { %582 = sbr.rel (%p2978_p13) target bundleno = 2780 (0xadc), region = 92 }
  0xb7   : > { %2344 = dma.done.wait (%p2979_p0), [#allocation4], 16   ;;  %p2980_p1 = pmov %p2979_p0 }
  0xb8   : > { %p2981_p6 = pmov %p2979_p0 }
  0xb9   : > { %2346 = vsyncadd (%p2980_p1), [#allocation4], 4294967280 }
  0xba   : > { %2348 = dma.done.wait (%p2981_p6), [#allocation7], 272   ;;  %p2982_p5 = pmov %p2979_p0 }
  0xbb   : > { %p2983_p9 = pmov %p2979_p0 }
  0xbc   : > { %2350 = vsyncadd (%p2982_p5), [#allocation7], 4294967024 }
  0xbd   : > { %2352 = dma.done.wait (%p2983_p9), [#allocation10], 272   ;;  %p2984_p12 = pmov %p2979_p0 }
  0xbe   : > { %p2985_p10 = pmov %p2979_p0 }
  0xbf   : > { %2354 = vsyncadd (%p2984_p12), [#allocation10], 4294967024 }
  0xc0   : > { %2356 = dma.done.wait (%p2985_p10), [#allocation13], 16   ;;  %p2986_p2 = pmov %p2979_p0 }
  0xc1   : > { %p658_p3 = scmp.lt.s32.totalorder %s2512_s0, 1  ;;  %s2987_s3 = sld [smem:[#allocation27_spill]]  ;;  %vm672_vm0 = vcmask 261120   ;;  %v2094_v8 = vld [vmem:[%s2929_s4] sm:$0xff]   ;;  %v2387_v9 = vmov 0.0   ;;  %v2096_v11 = vld [vmem:[%s2929_s4 + $0x8] sm:$0xff]   ;;  %v906_v61 = vlaneseq }
  0xc2   : > { %2358 = vsyncadd (%p2986_p2), [#allocation13], 4294967280  ;;  %s2988_s20 = sld [smem:[#allocation29_spill]]  ;;  %1883 = vmatprep.subr.bf16.mxu0 %v2387_v9  ;;  %1891 = vmatprep.subr.bf16.mxu1 %v2387_v9  ;;  %vm2388_vm1 = vmmov 0   ;;  %v1799_v20 = vld [vmem:[%s2935_s10] ss:$0 sm:$0xff] }
  0xc3   : > { %s2710_s24 = scalar_select %p658_p3, %s2512_s0, 1  ;;  %1892 = vmatpush3.bf16.msra.mxu1 %v2094_v8  ;;  %1887 = vmatprep.mubr.msk.bf16.mxu0 %vm2388_vm1, %v2387_v9  ;;  %v1800_v23 = vld [vmem:[%s2936_s11] ss:$0 sm:$0xff]  ;;  %v2097_v26 = vld [vmem:[#allocation8] sm:$0xff]   ;;  %v2098_v28 = vld [vmem:[#allocation8 + $0x8] sm:$0xff]   ;;  %vm911_vm4 = vcmask 64512  }
  0xc4   : > { %1893 = vmatprep.subr.bf16.mxu1 %v2387_v9  ;;  %1895 = vmatprep.mubr.msk.bf16.mxu1 %vm2388_vm1, %v2387_v9  ;;  %v1805_v29 = vld [vmem:[#allocation6] ss:$0 sm:$0xff]  ;;  %v1801_v30 = vld [vmem:[#allocation3] ss:$0 sm:$0xff]  ;;  %s2389_s26 = smov 112   ;;  %vm973_vm5 = vcmask 1043456  }
  0xc5   : > { %s1798_s21 = sshll.u32 %s2710_s24, 3  ;;  %v1809_v43 = vld [vmem:[#allocation9] ss:$0 sm:$0xff]  ;;  %s2989_s15 = sld [smem:[#allocation28_spill]]  ;;  %v907_v63 = vshrl.u32 %v906_v61, 7  ;;  %vm1018_vm7 = vcmask 60416  }
  0xc6   : > { %s2393_s23 = smov 16   ;;  %s2394_s18 = smov 24   ;;  %vm1140_vm8 = vcmask 126016   ;;  %vm1259_vm9 = vcmask 191616   ;;  %vm1378_vm10 = vcmask 257216   ;;  %vm1593_vm13 = vcmask 523264  }
  0xc7   : > { %s661_s5 = scalar_lea.vmem %s2987_s3, %s1798_s21  ;;  %1894 = vmatpush3.bf16.msra.mxu1 %v2096_v11  ;;  %s2390_s3 = smov 120  }
  0xc8   : > { %v2716_v0 = vld [vmem:[%s661_s5] sm:$0xff]  ;;  %v2095_v10 = vld [vmem:[%s2988_s20 + $0x8] sm:$0xff]   ;;  %1907 = vmatprep.subr.bf16.mxu1 %v2387_v9  ;;  %s2391_s5 = smov 104   ;;  %s655_s1 = sand.u32 1, %s2369_s28  }
  0xc9   : > { %v673_v1 = vsel %vm672_vm0, %v2716_v0, 0.0  ;;  %v2093_v7 = vld [vmem:[%s2988_s20] sm:$0xff]   ;;  %s1797_s25 = sshll.u32 %s655_s1, 3  ;;  %s2395_s2 = smov [#allocation14]  }
  0xca   : > { %674 = vadd.xlane.f32.xlu0 %v673_v1  ;;  %1884 = vmatpush3.bf16.msra.mxu0 %v2093_v7  ;;  %v908_v1 = vsub.s32 0, %v907_v63  ;;  %s657_s22 = scalar_lea.vmem [#allocation14], %s1797_s25  ;;  %s2303_s30 = sshll.u32 %s2395_s2, 4  ;;  %s2304_s30 = int_to_ptr.vmem [resolvable:$false] %s2303_s30 }
  0xcb   : > { %1885 = vmatprep.subr.bf16.mxu0 %v2387_v9  ;;  %s664_s29 = scalar_lea.vmem %s2989_s15, %s2710_s24  ;;  %s2392_s24 = smov 8  }
  0xcc   : > { %v667_v62 = vld [vmem:[%s664_s29] sm:$0x1]  ;;  %s1653_s27 = sshll.u32 %s657_s22, 4  ;;  %s2305_s25 = scalar_lea.vmem %s2304_s30, 256  ;;  %s2884_s27 = int_to_ptr.vmem [resolvable:$true] %s1653_s27 }
  0xcd   : > { %vm668_vm6 = vcmp.eq.f32.partialorder %v667_v62, 0.0  ;;  %p2306_p13 = scmp.lt.s32.totalorder %s2884_s27, %s2304_s30 }
  0xce   : > { %1886 = vmatpush3.bf16.msra.mxu0 %v2095_v10 }
  0xcf   : > { %1899 = vmatprep.subr.bf16.mxu0 %v2387_v9 }
 0x157   : > { %v675_v2 = vpop.xlane.xlu0 %674 }
 0x158   : > { %v677_v3 = vmul.f32 0.03125, %v675_v2  ;;  %v669_v2 = vsel %vm668_vm6, -1e+09, %v2387_v9 }
 0x15a   : > { %v678_v4 = vsub.f32 %v2716_v0, %v677_v3  ;;  %v909_v3 = vrot.slane %v669_v2, %v908_v1 }
 0x15c   : > { %v679_v5 = vmul.f32 %v678_v4, %v678_v4  ;;  %v700_v21 = vmul.f32 %v1799_v20, %v678_v4 }
 0x15e   : > { %v680_v6 = vsel %vm672_vm0, %v679_v5, 0.0 }
 0x15f   : > { %681 = vadd.xlane.f32.xlu0 %v680_v6 }
 0x1ec   : > { %v682_v12 = vpop.xlane.xlu0 %681 }
 0x1ed   : > { %v684_v13 = vmul.f32 0.032258064, %v682_v12 }
 0x1ef   : > { %2107 = vrsqrt.f32 %v684_v13  ;;  %vm687_vm2 = vcmp.eq.f32.partialorder %v684_v13, inf  ;;  %v690_v16 = vand.u32 2147483648, %v684_v13  ;;  %vm689_vm3 = vcmp.eq.f32.partialorder %v684_v13, 0.0 }
 0x1f9   : > { %v2108_v14 = vpop.eup %2107 }
 0x1fa   : > { %v686_v15 = vmul.f32 %v2108_v14, %v684_v13 }
 0x1fc   : > { %v688_v17 = vsel %vm687_vm2, %v684_v13, %v686_v15 }
 0x1fd   : > { %v691_v18 = vsel %vm689_vm3, %v690_v16, %v688_v17 }
 0x1fe   : > { %v692_v19 = vadd.f32 1e-06, %v691_v18 }
 0x200   : > { %2109 = vrcp.f32 %v692_v19 }
 0x20a   : > { %v2110_v22 = vpop.eup %2109 }
 0x20b   : > { %v701_v24 = vmul.f32 %v2110_v22, %v700_v21 }
 0x20d   : > { %v708_v25 = vadd.f32 %v1800_v23, %v701_v24 }
 0x20f   : > { %v709_v27 = vpack.c.bf16 %v708_v25, %v708_v25 }
 0x211   : > { %1888 = vmatmul.mubr.msk.bf16.vlgmr.msra.gmra.mrb[0].mxu0 %vm672_vm0, %v709_v27  ;;  %1896 = vmatmul.mubr.msk.bf16.vlgmr.msra.gmra.mrb[0].mxu1 %vm672_vm0, %v709_v27 }
 0x212   : > { %1900 = vmatpush3.bf16.msra.mxu0 %v2097_v26  ;;  %1903 = vmatprep.mubr.msk.bf16.mxu0 %vm2388_vm1, %v2387_v9 }
 0x213   : > { %1901 = vmatprep.subr.bf16.mxu0 %v2387_v9  ;;  %1909 = vmatprep.mubr.msk.bf16.mxu1 %vm2388_vm1, %v2387_v9 }
 0x216   : > { %1902 = vmatpush3.bf16.msra.mxu0 %v2098_v28 }
 0x217   : > { %1913 = vmatprep.subr.bf16.mxu0 %v2387_v9 }
 0x219   : > { %1904 = vmatmul.mubr.msk.bf16.vlgmr.msra.gmra.mrb[4].mxu0 %vm672_vm0, %v709_v27 }
 0x21a   : > { %1915 = vmatprep.mubr.msk.bf16.mxu0 %vm2388_vm1, %v2387_v9 }
 0x2e4   : > { %v770_v31 = vpop.f32.mrb[0].mxu0  ;;  %v834_v32 = vpop.f32.mrb[0].mxu1 }
 0x2e5   : > { %v835_v33 = vadd.f32 %v1805_v29, %v834_v32  ;;  %v1889_v34 = vpop.f32.mrb[1].mxu0  ;;  %v1897_v35 = vpop.f32.mrb[1].mxu1  ;;  %v771_v38 = vadd.f32 %v1801_v30, %v770_v31 }
 0x2e6   : > { %v773_v36 = vpop.f32.mrb[2].mxu0  ;;  %v837_v37 = vpop.f32.mrb[2].mxu1 }
 0x2e7   : > { %v840_v39 = vpack.c.bf16 %v835_v33, %v835_v33  ;;  %v1890_v40 = vpop.f32.mrb[3].mxu0  ;;  %v1898_v41 = vpop.f32.mrb[3].mxu1  ;;  %v776_v44 = vpack.c.bf16 %v771_v38, %v771_v38 }
 0x2e9   : > { %1144 = vrot.lane.b32.xlu0 %v840_v39, %s2389_s26  ;;  %1024 = vrot.lane.b32.xlu1 %v840_v39, %s2390_s3  ;;  %v916_v42 = vsel %vm911_vm4, %v840_v39, 0 }
 0x2ea   : > { %1908 = vmatpush3.bf16.xpose.msra.mxu1 %v916_v42 }
 0x2eb   : > { %1919 = vmatprep.subr.bf16.mxu1 %v2387_v9 }
 0x2ec   : > { %v898_v45 = vpop.f32.mrb[4].mxu0 }
 0x2ed   : > { %v899_v46 = vadd.f32 %v1809_v43, %v898_v45  ;;  %1021 = vrot.lane.b32.xlu1 %v776_v44, %s2390_s3  ;;  %v1905_v47 = vpop.f32.mrb[5].mxu0 }
 0x2ee   : > { %v901_v48 = vpop.f32.mrb[6].mxu0 }
 0x2ef   : > { %v2766_v49 = vpack.c.bf16 %v899_v46, %v899_v46  ;;  %v1906_v50 = vpop.f32.mrb[7].mxu0 }
 0x2f1   : > { %1142 = vrot.lane.b32.xlu1 %v776_v44, %s2389_s26  ;;  %1910 = vmatmul.mubr.msk.bf16.vlgmr.msra.gmra.mrb[4].mxu1 %vm911_vm4, %v776_v44  ;;  %v975_v51 = vsel %vm973_vm5, %v2766_v49, 0 }
 0x2f2   : > { %1914 = vmatpush3.bf16.msra.mxu0 %v975_v51  ;;  %1921 = vmatprep.mubr.msk.bf16.mxu1 %vm2388_vm1, %v2387_v9 }
 0x2f3   : > { %1925 = vmatprep.subr.bf16.mxu0 %v2387_v9 }
 0x2f5   : > { %1263 = vrot.lane.b32.xlu1 %v840_v39, %s2391_s5 }
 0x2f9   : > { %1261 = vrot.lane.b32.xlu1 %v776_v44, %s2391_s5 }
 0x35b   : > { %v1025_v52 = vpop.permute.xlu1 %1024  ;;  %v1145_v55 = vpop.permute.xlu0 %1144 }
 0x35c   : > { %v1030_v53 = vsel %vm911_vm4, %v1025_v52, 0  ;;  %v1150_v57 = vsel %vm911_vm4, %v1145_v55, 0 }
 0x35d   : > { %1920 = vmatpush3.bf16.xpose.msra.mxu1 %v1030_v53 }
 0x35e   : > { %1931 = vmatprep.subr.bf16.mxu1 %v2387_v9 }
 0x35f   : > { %v1022_v54 = vpop.permute.xlu1 %1021 }
 0x363   : > { %v1143_v56 = vpop.permute.xlu1 %1142 }
 0x364   : > { %1922 = vmatmul.mubr.msk.bf16.vlgmr.msra.gmra.mrb[8].mxu1 %vm911_vm4, %v1022_v54 }
 0x365   : > { %1932 = vmatpush3.bf16.xpose.msra.mxu1 %v1150_v57  ;;  %1933 = vmatprep.mubr.msk.bf16.mxu1 %vm2388_vm1, %v2387_v9 }
 0x366   : > { %1943 = vmatprep.subr.bf16.mxu1 %v2387_v9 }
 0x367   : > { %v1264_v58 = vpop.permute.xlu1 %1263 }
 0x368   : > { %v1269_v59 = vsel %vm911_vm4, %v1264_v58, 0 }
 0x36b   : > { %v1262_v60 = vpop.permute.xlu1 %1261 }
 0x36c   : > { %1934 = vmatmul.mubr.msk.bf16.vlgmr.msra.gmra.mrb[12].mxu1 %vm911_vm4, %v1143_v56 }
 0x36d   : > { %1944 = vmatpush3.bf16.xpose.msra.mxu1 %v1269_v59  ;;  %1945 = vmatprep.mubr.msk.bf16.mxu1 %vm2388_vm1, %v2387_v9 }
 0x36e   : > { %1955 = vmatprep.subr.bf16.mxu1 %v2387_v9 }
 0x374   : > { %1946 = vmatmul.mubr.msk.bf16.vlgmr.msra.gmra.mrb[16].mxu1 %vm911_vm4, %v1262_v60 }
 0x375   : > { %1959 = vmatprep.mubr.msk.bf16.mxu1 %vm2388_vm1, %v2387_v9 }
 0x3c4   : > { %v952_v4 = vpop.f32.mrb[4].mxu1 }
 0x3c5   : > { %v953_v5 = vadd.f32 %v952_v4, %v909_v3  ;;  %v1911_v6 = vpop.f32.mrb[5].mxu1 }
 0x3c6   : > { %v955_v7 = vpop.f32.mrb[6].mxu1 }
 0x3c7   : > { %v1912_v8 = vpop.f32.mrb[7].mxu1  ;;  %v958_v10 = vsel %vm911_vm4, %v953_v5, -inf }
 0x3c8   : > { %959 = vmax.xlane.f32.xlu1 %v958_v10 }
 0x437   : > { %v1066_v11 = vpop.f32.mrb[8].mxu1 }
 0x438   : > { %v1067_v12 = vadd.f32 %v1066_v11, %v909_v3  ;;  %v1923_v13 = vpop.f32.mrb[9].mxu1 }
 0x439   : > { %v1069_v14 = vpop.f32.mrb[10].mxu1 }
 0x43a   : > { %v1924_v15 = vpop.f32.mrb[11].mxu1  ;;  %v1072_v16 = vsel %vm911_vm4, %v1067_v12, -inf }
 0x43b   : > { %1073 = vmax.xlane.f32.xlu0 %v1072_v16 }
 0x43f   : > { %v1186_v17 = vpop.f32.mrb[12].mxu1 }
 0x440   : > { %v1187_v18 = vadd.f32 %v1186_v17, %v909_v3  ;;  %v1935_v19 = vpop.f32.mrb[13].mxu1 }
 0x441   : > { %v1189_v20 = vpop.f32.mrb[14].mxu1 }
 0x442   : > { %v1936_v21 = vpop.f32.mrb[15].mxu1  ;;  %v1192_v22 = vsel %vm911_vm4, %v1187_v18, -inf }
 0x443   : > { %1193 = vmax.xlane.f32.xlu1 %v1192_v22 }
 0x447   : > { %v1305_v23 = vpop.f32.mrb[16].mxu1 }
 0x448   : > { %v1306_v24 = vadd.f32 %v1305_v23, %v909_v3  ;;  %v1947_v25 = vpop.f32.mrb[17].mxu1 }
 0x449   : > { %v1308_v26 = vpop.f32.mrb[18].mxu1  ;;  %v2100_v25 = vld [vmem:[#allocation11 + $0x8] sm:$0xff]  }
 0x44a   : > { %v1948_v27 = vpop.f32.mrb[19].mxu1  ;;  %v1311_v28 = vsel %vm911_vm4, %v1306_v24, -inf }
 0x44b   : > { %1312 = vmax.xlane.f32.xlu1 %v1311_v28 }
 0x455   : > { %v960_v29 = vpop.xlane.xlu1 %959 }
 0x456   : > { %v961_v30 = vsub.f32 %v953_v5, %v960_v29 }
 0x458   : > { %v962_v31 = vmul.f32 1.442695, %v961_v30 }
 0x45a   : > { %2111 = vpow2.f32 %v962_v31 }
 0x464   : > { %v2112_v32 = vpop.eup %2111 }
 0x465   : > { %v964_v33 = vsel %vm911_vm4, %v2112_v32, 0.0 }
 0x466   : > { %965 = vadd.xlane.f32.xlu0 %v964_v33 }
 0x4c8   : > { %v1074_v34 = vpop.xlane.xlu0 %1073 }
 0x4c9   : > { %v1075_v35 = vsub.f32 %v1067_v12, %v1074_v34 }
 0x4cb   : > { %v1076_v36 = vmul.f32 1.442695, %v1075_v35 }
 0x4cd   : > { %2113 = vpow2.f32 %v1076_v36  ;;  %v1827_v36 = vld [vmem:[#allocation12] ss:$0 sm:$0xff] }
 0x4d0   : > { %v1194_v37 = vpop.xlane.xlu1 %1193 }
 0x4d1   : > { %v1195_v38 = vsub.f32 %v1187_v18, %v1194_v37 }
 0x4d3   : > { %v1196_v39 = vmul.f32 1.442695, %v1195_v38 }
 0x4d5   : > { %2115 = vpow2.f32 %v1196_v39 }
 0x4d7   : > { %v2114_v40 = vpop.eup %2113 }
 0x4d8   : > { %v1078_v41 = vsel %vm911_vm4, %v2114_v40, 0.0  ;;  %v1313_v45 = vpop.xlane.xlu1 %1312 }
 0x4d9   : > { %1079 = vadd.xlane.f32.xlu1 %v1078_v41  ;;  %v1314_v46 = vsub.f32 %v1306_v24, %v1313_v45  ;;  %v2099_v24 = vld [vmem:[#allocation11] sm:$0xff]  }
 0x4da   : > { %1956 = vmatpush3.bf16.msra.mxu1 %v2099_v24 }
 0x4db   : > { %v1315_v47 = vmul.f32 1.442695, %v1314_v46  ;;  %1957 = vmatprep.subr.bf16.mxu1 %v2387_v9 }
 0x4de   : > { %1958 = vmatpush3.bf16.msra.mxu1 %v2100_v25 }
 0x4df   : > { %v2116_v42 = vpop.eup %2115  ;;  %1971 = vmatprep.subr.bf16.mxu1 %v2387_v9 }
 0x4e0   : > { %v1198_v43 = vsel %vm911_vm4, %v2116_v42, 0.0 }
 0x4e1   : > { %1199 = vadd.xlane.f32.xlu0 %v1198_v43 }
 0x4ea   : > { %1204 = vrot.lane.b32.xlu1 %v2766_v49, %s2389_s26  ;;  %s2990_s26 = sld [smem:[#allocation32_spill]] }
 0x4f3   : > { %v966_v44 = vpop.xlane.xlu0 %965 }
 0x4f4   : > { %2117 = vrcp.f32 %v966_v44 }
 0x4f5   : > { %2119 = vpow2.f32 %v1315_v47 }
 0x4f7   : > { %1085 = vrot.lane.b32.xlu0 %v2766_v49, %s2390_s3  ;;  %s2991_s3 = sld [smem:[#allocation25_spill]] }
 0x4fd   : > { %p2993_p7 = scmp.ne.s32.totalorder %s2991_s3, 0 }
 0x4fe   : > { %v2118_v48 = vpop.eup %2117 }
 0x4ff   : > { %v968_v50 = vmul.f32 %v2118_v48, %v2112_v32  ;;  %v2120_v52 = vpop.eup %2119  ;;  %v2102_v48 = vld [vmem:[%s2937_s12 + $0x8] sm:$0xff]  }
 0x500   : > { %v1317_v53 = vsel %vm911_vm4, %v2120_v52, 0.0 }
 0x501   : > { %v969_v51 = vpack.c.bf16 %v968_v50, %v968_v50  ;;  %v2103_v50 = vld [vmem:[%s2939_s14] sm:$0xff]  }
 0x503   : > { %1916 = vmatmul.mubr.msk.bf16.vlgmr.msra.gmra.mrb[8].mxu0 %vm911_vm4, %v969_v51  ;;  %v2104_v51 = vld [vmem:[%s2939_s14 + $0x8] sm:$0xff]  }
 0x504   : > { %1927 = vmatprep.mubr.msk.bf16.mxu0 %vm2388_vm1, %v2387_v9 }
 0x50e   : > { %1318 = vadd.xlane.f32.xlu1 %v1317_v53 }
 0x51f   : > { %1323 = vrot.lane.b32.xlu1 %v2766_v49, %s2391_s5  ;;  %s1841_s5 = sshll.u32 %s2512_s0, 7  ;;  %s1640_s0 = scalar_lea.sflag [#allocation5], %s655_s1 }
 0x566   : > { %v1080_v54 = vpop.xlane.xlu1 %1079 }
 0x567   : > { %2121 = vrcp.f32 %v1080_v54 }
 0x56a   : > { %v1205_v60 = vpop.permute.xlu1 %1204 }
 0x56b   : > { %v1210_v62 = vsel %vm973_vm5, %v1205_v60, 0  ;;  %v1828_v60 = vld [vmem:[%s2941_s16] ss:$0 sm:$0xff] }
 0x56e   : > { %v1200_v55 = vpop.xlane.xlu0 %1199 }
 0x56f   : > { %2123 = vrcp.f32 %v1200_v55 }
 0x571   : > { %v2122_v56 = vpop.eup %2121 }
 0x572   : > { %v1082_v57 = vmul.f32 %v2122_v56, %v2114_v40  ;;  %v1086_v58 = vpop.permute.xlu0 %1085 }
 0x573   : > { %v1091_v59 = vsel %vm973_vm5, %v1086_v58, 0 }
 0x574   : > { %1926 = vmatpush3.bf16.msra.mxu0 %v1091_v59  ;;  %v1083_v61 = vpack.c.bf16 %v1082_v57, %v1082_v57 }
 0x575   : > { %1937 = vmatprep.subr.bf16.mxu0 %v2387_v9 }
 0x577   : > { %1928 = vmatmul.mubr.msk.bf16.vlgmr.msra.gmra.mrb[12].mxu0 %vm911_vm4, %v1083_v61 }
 0x578   : > { %1938 = vmatpush3.bf16.msra.mxu0 %v1210_v62  ;;  %1939 = vmatprep.mubr.msk.bf16.mxu0 %vm2388_vm1, %v2387_v9 }
 0x579   : > { %v2124_v49 = vpop.eup %2123  ;;  %1949 = vmatprep.subr.bf16.mxu0 %v2387_v9 }
 0x57a   : > { %v1202_v63 = vmul.f32 %v2124_v49, %v2116_v42  ;;  %v1829_v49 = vld [vmem:[%s2942_s17] ss:$0 sm:$0xff] }
 0x57c   : > { %v1203_v1 = vpack.c.bf16 %v1202_v63, %v1202_v63 }
 0x57f   : > { %1940 = vmatmul.mubr.msk.bf16.vlgmr.msra.gmra.mrb[16].mxu0 %vm911_vm4, %v1203_v1 }
 0x580   : > { %1951 = vmatprep.mubr.msk.bf16.mxu0 %vm2388_vm1, %v2387_v9 }
 0x59b   : > { %v1319_v2 = vpop.xlane.xlu1 %1318 }
 0x59c   : > { %2125 = vrcp.f32 %v1319_v2 }
 0x59f   : > { %v1324_v3 = vpop.permute.xlu1 %1323 }
 0x5a0   : > { %v1329_v4 = vsel %vm973_vm5, %v1324_v3, 0  ;;  %v2105_v3 = vld [vmem:[%s2939_s14 + $0x10] sm:$0xff]  }
 0x5a1   : > { %1950 = vmatpush3.bf16.msra.mxu0 %v1329_v4  ;;  %v2106_v4 = vld [vmem:[%s2939_s14 + $0x18] sm:$0xff]  }
 0x5a2   : > { %1963 = vmatprep.subr.bf16.mxu0 %v2387_v9 }
 0x5a6   : > { %v2126_v5 = vpop.eup %2125 }
 0x5a7   : > { %v1321_v6 = vmul.f32 %v2126_v5, %v2120_v52  ;;  %v1830_v5 = vld [vmem:[%s2938_s13] ss:$0 sm:$0xff] }
 0x5a9   : > { %v1322_v7 = vpack.c.bf16 %v1321_v6, %v1321_v6 }
 0x5ab   : > { %1952 = vmatmul.mubr.msk.bf16.vlgmr.msra.gmra.mrb[20].mxu0 %vm911_vm4, %v1322_v7 }
 0x5ac   : > { %1967 = vmatprep.mubr.msk.bf16.mxu0 %vm2388_vm1, %v2387_v9 }
 0x5d6   : > { %v1011_v8 = vpop.f32.mrb[8].mxu0 }
 0x5d7   : > { %v1017_v10 = vpack.c.bf16 %v1011_v8, %v1011_v8  ;;  %v1917_v11 = vpop.f32.mrb[9].mxu0 }
 0x5d8   : > { %v1014_v12 = vpop.f32.mrb[10].mxu0 }
 0x5d9   : > { %1019 = vst.msk [vmem:[#allocation2] sm:$0xf] %vm1018_vm7, %v1017_v10  ;;  %v1918_v13 = vpop.f32.mrb[11].mxu0 }
 0x64a   : > { %v1127_v14 = vpop.f32.mrb[12].mxu0 }
 0x64b   : > { %v1844_v15 = vpack.c.bf16 %v1127_v14, %v1127_v14  ;;  %v1929_v16 = vpop.f32.mrb[13].mxu0 }
 0x64c   : > { %v1130_v17 = vpop.f32.mrb[14].mxu0 }
 0x64d   : > { %1137 = vrot.lane.b32.xlu0 %v1844_v15, %s2392_s24  ;;  %v1930_v18 = vpop.f32.mrb[15].mxu0  ;;  %s2992_s24 = sld [smem:[#allocation33_spill]] }
 0x652   : > { %v1246_v19 = vpop.f32.mrb[16].mxu0 }
 0x653   : > { %v1845_v20 = vpack.c.bf16 %v1246_v19, %v1246_v19  ;;  %v1941_v21 = vpop.f32.mrb[17].mxu0 }
 0x654   : > { %v1249_v22 = vpop.f32.mrb[18].mxu0 }
 0x655   : > { %1256 = vrot.lane.b32.xlu1 %v1845_v20, %s2393_s23  ;;  %v1942_v23 = vpop.f32.mrb[19].mxu0  ;;  %s2882_s23 = scalar_lea.hbm %s2992_s24, %s1841_s5 }
 0x67e   : > { %v1365_v26 = vpop.f32.mrb[20].mxu0 }
 0x67f   : > { %v1846_v27 = vpack.c.bf16 %v1365_v26, %v1365_v26  ;;  %v1953_v28 = vpop.f32.mrb[21].mxu0 }
 0x680   : > { %v1368_v29 = vpop.f32.mrb[22].mxu0 }
 0x681   : > { %1375 = vrot.lane.b32.xlu0 %v1846_v27, %s2394_s18  ;;  %v1954_v30 = vpop.f32.mrb[23].mxu0  ;;  %s2299_s18 = scalar_lea.vmem %s2884_s27, 128 }
 0x682   : > { %p2300_p4 = scmp.ne.s32.totalorder %s2884_s27, %s2299_s18  ;;  %p2307_p0 = scmp.lt.s32.totalorder %s2305_s25, %s2299_s18 }
 0x684   : > { %p2301_p8 = pnand %p2300_p4, %p2993_p7  ;;  %p2308_p1 = por %p2307_p0, %p2306_p13 }
 0x686   : > { %p2302_p11 = pneg %p2301_p8 }
 0x688   : > { %p2309_p6 = pnand %p2308_p1, %p2302_p11 }
 0x6bf   : > { %v1138_v31 = vpop.permute.xlu0 %1137 }
 0x6c0   : > { %1141 = vst.msk [vmem:[#allocation2] sm:$0xf] %vm1140_vm8, %v1138_v31 }
 0x6c7   : > { %v1257_v32 = vpop.permute.xlu1 %1256 }
 0x6c8   : > { %1260 = vst.msk [vmem:[#allocation2] sm:$0xf] %vm1259_vm9, %v1257_v32 }
 0x6f3   : > { %v1376_v33 = vpop.permute.xlu0 %1375 }
 0x6f4   : > { %1379 = vst.msk [vmem:[#allocation2] sm:$0xf] %vm1378_vm10, %v1376_v33 }
 0x6fb   : > { %v1380_v34 = vld [vmem:[#allocation2] sm:$0xf] }
 0x6fc   : > { %1960 = vmatmul.mubr.msk.bf16.vlgmr.msra.gmra.mrb[20].mxu1 %vm672_vm0, %v1380_v34 }
 0x6fd   : > { %1979 = vmatprep.mubr.msk.bf16.mxu1 %vm2388_vm1, %v2387_v9  ;;  %1972 = vmatpush3.bf16.msra.mxu1 %v2103_v50 }
 0x6fe   : > { %1973 = vmatprep.subr.bf16.mxu1 %v2387_v9 }
 0x701   : > { %1974 = vmatpush3.bf16.msra.mxu1 %v2104_v51 }
 0x702   : > { %1975 = vmatprep.subr.bf16.mxu1 %v2387_v9 }
 0x705   : > { %1976 = vmatpush3.bf16.msra.mxu1 %v2105_v3 }
 0x706   : > { %1977 = vmatprep.subr.bf16.mxu1 %v2387_v9 }
 0x709   : > { %1978 = vmatpush3.bf16.msra.mxu1 %v2106_v4 }
 0x7cf   : > { %v1434_v35 = vpop.f32.mrb[20].mxu1 }
 0x7d0   : > { %v1440_v37 = vadd.f32 %v1434_v35, %v2716_v0  ;;  %v1961_v38 = vpop.f32.mrb[21].mxu1  ;;  %v2101_v0 = vld [vmem:[%s2937_s12] sm:$0xff]  }
 0x7d1   : > { %v1437_v39 = vpop.f32.mrb[22].mxu1  ;;  %1964 = vmatpush3.bf16.msra.mxu0 %v2101_v0 }
 0x7d2   : > { %v2835_v40 = vadd.f32 %v1827_v36, %v1440_v37  ;;  %v1962_v41 = vpop.f32.mrb[23].mxu1  ;;  %1965 = vmatprep.subr.bf16.mxu0 %v2387_v9  ;;  %v1834_v9 = vld [vmem:[%s2990_s26] ss:$0 sm:$0xff] }
 0x7d4   : > { %v1451_v42 = vsel %vm672_vm0, %v2835_v40, 0.0 }
 0x7d5   : > { %1452 = vadd.xlane.f32.xlu1 %v1451_v42  ;;  %1966 = vmatpush3.bf16.msra.mxu0 %v2102_v48 }
 0x862   : > { %v1453_v43 = vpop.xlane.xlu1 %1452 }
 0x863   : > { %v1454_v44 = vmul.f32 0.03125, %v1453_v43 }
 0x865   : > { %v1455_v45 = vsub.f32 %v2835_v40, %v1454_v44 }
 0x867   : > { %v1456_v46 = vmul.f32 %v1455_v45, %v1455_v45  ;;  %v1476_v61 = vmul.f32 %v1828_v60, %v1455_v45 }
 0x869   : > { %v1457_v47 = vsel %vm672_vm0, %v1456_v46, 0.0 }
 0x86a   : > { %1458 = vadd.xlane.f32.xlu0 %v1457_v47 }
 0x8f7   : > { %v1459_v52 = vpop.xlane.xlu0 %1458 }
 0x8f8   : > { %v1460_v53 = vmul.f32 0.032258064, %v1459_v52 }
 0x8fa   : > { %2127 = vrsqrt.f32 %v1460_v53  ;;  %vm1463_vm11 = vcmp.eq.f32.partialorder %v1460_v53, inf  ;;  %v1466_v56 = vand.u32 2147483648, %v1460_v53  ;;  %vm1465_vm12 = vcmp.eq.f32.partialorder %v1460_v53, 0.0 }
 0x904   : > { %v2128_v54 = vpop.eup %2127 }
 0x905   : > { %v1462_v55 = vmul.f32 %v2128_v54, %v1460_v53 }
 0x907   : > { %v1464_v57 = vsel %vm1463_vm11, %v1460_v53, %v1462_v55 }
 0x908   : > { %v1467_v58 = vsel %vm1465_vm12, %v1466_v56, %v1464_v57 }
 0x909   : > { %v1468_v59 = vadd.f32 1e-06, %v1467_v58 }
 0x90b   : > { %2129 = vrcp.f32 %v1468_v59 }
 0x915   : > { %v2130_v62 = vpop.eup %2129 }
 0x916   : > { %v1477_v63 = vmul.f32 %v2130_v62, %v1476_v61 }
 0x918   : > { %v1484_v1 = vadd.f32 %v1829_v49, %v1477_v63 }
 0x91a   : > { %v1485_v2 = vpack.c.bf16 %v1484_v1, %v1484_v1 }
 0x91c   : > { %1968 = vmatmul.mubr.msk.bf16.vlgmr.msra.gmra.mrb[24].mxu0 %vm672_vm0, %v1485_v2 }
 0x9ef   : > { %v1546_v6 = vpop.f32.mrb[24].mxu0 }
 0x9f0   : > { %v1547_v7 = vadd.f32 %v1830_v5, %v1546_v6  ;;  %v1969_v8 = vpop.f32.mrb[25].mxu0 }
 0x9f1   : > { %v1549_v10 = vpop.f32.mrb[26].mxu0 }
 0x9f2   : > { %v1552_v11 = vmax.f32 %v1547_v7, 0.0  ;;  %v1970_v12 = vpop.f32.mrb[27].mxu0 }
 0x9f4   : > { %v1553_v13 = vpack.c.bf16 %v1552_v11, %v1552_v11 }
 0x9f6   : > { %1980 = vmatmul.mubr.msk.bf16.vlgmr.msra.gmra.mrb[24].mxu1 %vm1593_vm13, %v1553_v13 }
 0xac9   : > { %v1631_v14 = vpop.f32.mrb[24].mxu1 }
 0xaca   : > { %v1632_v15 = vadd.f32 %v1834_v9, %v1631_v14  ;;  %v1981_v16 = vpop.f32.mrb[25].mxu1 }
 0xacb   : > { %v1634_v17 = vpop.f32.mrb[26].mxu1 }
 0xacc   : > { %v1637_v18 = vadd.f32 %v1632_v15, %v2835_v40  ;;  %v1982_v19 = vpop.f32.mrb[27].mxu1 }
 0xace   : > { %1638 = vst.msk [vmem:[%s657_s22] sm:$0xff] %vm672_vm0, %v1637_v18 }
 0xacf   : > { %2312 = shalt.err (!%p2309_p6)
}
 0xad0   : > { %s2313_s1 = scalar_lea.hbm %s2882_s23, 128  ;;  %s2317_s26 = scalar_lea.hbm %s2992_s24, 256 }
 0xad1   : > { %p2314_p5 = scmp.ne.s32.totalorder %s2882_s23, %s2313_s1  ;;  %p2318_p10 = scmp.lt.u32.totalorder %s2882_s23, %s2992_s24 }
 0xad2   : > { %p2319_p2 = scmp.lt.u32.totalorder %s2317_s26, %s2313_s1  ;;  %p2321_p4 = scmp.lt.u32.totalorder %s2313_s1, %s2882_s23 }
 0xad3   : > { %p2315_p9 = pnand %p2314_p5, %p2993_p7 }
 0xad4   : > { %p2320_p3 = por %p2319_p2, %p2318_p10 }
 0xad5   : > { %p2316_p12 = pneg %p2315_p9 }
 0xad6   : > { %p2322_p8 = por %p2321_p4, %p2320_p3 }
 0xad8   : > { %p2323_p11 = pnand %p2322_p8, %p2316_p12 }
 0xada   : > { %2326 = shalt.err (!%p2323_p11)
}
 0xadb   : > { %2007 = dma.vmem_to_hbm [thread:$0]  (%p2993_p7), %s2884_s27, 128, %s2882_s23, %s1640_s0  }
 0xadc PF: > { %s2994_s15 = sld [smem:[#allocation22_spill]]  ;;  %s2995_s29 = sld [smem:[#allocation20_spill]] }
 0xadd   : > { %s2996_s18 = sld [smem:[#allocation26_spill]] }
 0xae2   : > { %p2044_p13 = scmp.ge.s32.totalorder %s2994_s15, 2  ;;  %s1665_s2 = sand.u32 1, %s2995_s29  }
 0xae3   : > { %p2997_p0 = scmp.ne.s32.totalorder %s2996_s18, 0  ;;  %s1666_s30 = scalar_lea.sflag [#allocation5], %s1665_s2 }
 0xae5   : > { %p2029_p1 = pnand %p2044_p13, %p2997_p0 }
 0xae7   : > { %2360 = dma.done.wait (!%p2029_p1), %s1666_s30, 128  }
 0xae8   : > { %2362 = vsyncadd (!%p2029_p1), %s1666_s30, 4294967168  ;;  %s2998_s30 = sld [smem:[#allocation23_spill]]  ;;  %s2999_s25 = sld [smem:[#allocation21_spill]] }
 0xae9   : > { %s3000_s29 = sld [smem:[#allocation24_spill]]  ;;  %s3001_s27 = smov %s2369_s28 }
 0xaee   : > { %p32_p6 = scmp.ge.s32.totalorder %s2998_s30, 4   ;;  %s3002_s28 = smov %s2999_s25 }
 0xaf0   :  { %34 = sbr.rel (!%p32_p6) target bundleno = 15 (0xf), region = 155 }
 0xaf7   :  { %1671 = vsyncpa [#allocation4], 1 }
 0xaf8   :  { %1673 = vsyncpa [#allocation4 + $0x1], 1 }
 0xaf9   :  { %1674 = vsyncpa [#allocation7], 1 }
 0xafa   :  { %1675 = vsyncpa [#allocation10], 1 }
 0xafb   :  { %1676 = vsyncpa [#allocation13], 1 }
 0xafc   :  { %1677 = vsyncpa [#allocation5], 1 }
 0xafd   :  { %1679 = vsyncpa [#allocation5 + $0x1], 1 }

// kernel: tpu_custom_call.1
= control target key start
LH: loop header
LB: loop body
LE: loop exit
PB: predicated region body
PF: predicated region fallthrough
CT: control target
= control target key end

     0   :  { %s2925_s0 = inlined_call_operand.vmem [shape: f32[2,8,32], index: 0, kind: input, shape index: {}]   ;;  %s2926_s1 = inlined_call_operand.vmem [shape: f32[2,1,8], index: 1, kind: input, shape index: {}]   ;;  %s2927_s2 = inlined_call_operand.vmem [shape: bf16[32,32], index: 2, kind: input, shape index: {}]   ;;  %s2928_s3 = inlined_call_operand.hbm [shape: f32[1,32], index: 3, kind: input, shape index: {}]   ;;  %s2929_s4 = inlined_call_operand.vmem [shape: bf16[32,32], index: 4, kind: input, shape index: {}]   ;;  %s2930_s5 = inlined_call_operand.hbm [shape: f32[1,32], index: 5, kind: input, shape index: {}]   ;;  %s2931_s6 = inlined_call_operand.hbm [shape: bf16[32,32], index: 6, kind: input, shape index: {}]   ;;  %s2932_s7 = inlined_call_operand.hbm [shape: f32[1,32], index: 7, kind: input, shape index: {}]   ;;  %s2933_s8 = inlined_call_operand.hbm [shape: bf16[32,32], index: 8, kind: input, shape index: {}]   ;;  %s2934_s9 = inlined_call_operand.hbm [shape: f32[1,32], index: 9, kind: input, shape index: {}]   ;;  %s2935_s10 = inlined_call_operand.vmem [shape: f32[1,32], index: 10, kind: input, shape index: {}]   ;;  %s2936_s11 = inlined_call_operand.vmem [shape: f32[1,32], index: 11, kind: input, shape index: {}]   ;;  %s2937_s12 = inlined_call_operand.vmem [shape: bf16[32,64], index: 12, kind: input, shape index: {}]   ;;  %s2938_s13 = inlined_call_operand.vmem [shape: f32[1,64], index: 13, kind: input, shape index: {}]   ;;  %s2939_s14 = inlined_call_operand.vmem [shape: bf16[64,32], index: 14, kind: input, shape index: {}]   ;;  %s2940_s15 = inlined_call_operand.vmem [shape: f32[1,32], index: 15, kind: input, shape index: {}]   ;;  %s2941_s16 = inlined_call_operand.vmem [shape: f32[1,32], index: 16, kind: input, shape index: {}]   ;;  %s2942_s17 = inlined_call_operand.vmem [shape: f32[1,32], index: 17, kind: input, shape index: {}]   ;;  %s2943_s18 = inlined_call_operand.hbm [shape: f32[2,8,32], index: 18, kind: output, shape index: {}]  }
   0x1   :  { %2957 = sst [smem:[#allocation27_spill]] %s2925_s0 }
   0x2   :  { %2958 = sst [smem:[#allocation28_spill]] %s2926_s1 }
   0x3   :  { %2959 = sst [smem:[#allocation29_spill]] %s2927_s2 }
   0x4   :  { %2960 = sst [smem:[#allocation30_spill]] %s2928_s3 }
   0x5   :  { %2961 = sst [smem:[#allocation31_spill]] %s2930_s5 }
   0x6   :  { %2962 = sst [smem:[#allocation32_spill]] %s2940_s15 }
   0x7   :  { %2963 = sst [smem:[#allocation33_spill]] %s2943_s18 }
   0x8   :  { %23 = vsyncpa [#allocation4], 0 }
   0x9   :  { %24 = vsyncpa [#allocation7], 0 }
   0xa   :  { %25 = vsyncpa [#allocation10], 0 }
   0xb   :  { %26 = vsyncpa [#allocation13], 0 }
   0xc   :  { %27 = vsyncpa [#allocation5], 0 }
   0xd   :  { %29 = vsyncpa [#allocation5 + $0x1], 0  ;;  %s2491_s27 = smov 0   ;;  %s2493_s28 = smov 0  }
   0xe   :  { %s2495_s29 = smov 0   ;;  %s2497_s30 = smov 0  }
   0xf LB: > { %2964 = sst [smem:[#allocation20_spill]] %s2365_s27  ;;  %s2512_s0 = sadd.s32 4294967295, %s2377_s30   ;;  %s2377_s30 = sphi %s2497_s30, %s2998_s30   ;;  %s2373_s29 = sphi %s2495_s29, %s3000_s29   ;;  %s2369_s28 = sphi %s2493_s28, %s3002_s28   ;;  %s2365_s27 = sphi %s2491_s27, %s3001_s27  }
  0x10   : > { %2965 = sst [smem:[#allocation21_spill]] %s2373_s29  ;;  %s1781_s19 = sadd.s32 4294967294, %s2377_s30  }
  0x11   : > { %2966 = sst [smem:[#allocation22_spill]] %s2377_s30  ;;  %s2516_s1 = sadd.s32 1, %s2377_s30  }
  0x12   : > { %2967 = sst [smem:[#allocation23_spill]] %s2516_s1  ;;  %s430_s20 = sadd.s32 1, %s2373_s29 }
  0x13   : > { %s427_s21 = ssub.s32 %s2377_s30, %s2516_s1  ;;  %p440_p0 = scmp.ne.s32.totalorder %s2373_s29, %s2369_s28 }
  0x14   : > { %p428_p1 = scmp.eq.s32.totalorder %s427_s21, 0  ;;  %p441_p2 = scmp.eq.s32.totalorder %s2512_s0, 1 }
  0x15   : > { %p446_p3 = scmp.ne.s32.totalorder %s2369_s28, %s2365_s27  ;;  %p447_p4 = scmp.eq.s32.totalorder %s1781_s19, 1 }
  0x16   : > { %s2527_s22 = scalar_select %p428_p1, %s2373_s29, %s430_s20  }
  0x17   : > { %p2529_p5 = por %p441_p2, %p440_p0  ;;  %p2533_p6 = por %p447_p4, %p446_p3 }
  0x18   : > { %2968 = sst [smem:[#allocation24_spill]] %s2527_s22  ;;  %p1782_p7 = scmp.ge.s32.totalorder %s2377_s30, 1 }
  0x19   : > { %s2969_s2 = scalar_select %p2529_p5, 1, 0 }
  0x1a   : > { %s2971_s23 = scalar_select %p2533_p6, 1, 0 }
  0x1b   : > { %2970 = sst [smem:[#allocation25_spill]] %s2969_s2  ;;  %p454_p8 = scmp.lt.s32.totalorder %s2377_s30, 3 }
  0x1c   : > { %2972 = sst [smem:[#allocation26_spill]] %s2971_s23  ;;  %p2952_p9 = scmp.eq.s32.totalorder %s2512_s0, 0 }
  0x1d   : > { %p2540_p10 = pnand %p1782_p7, %p454_p8  ;;  %s2379_s25 = smov [#allocation6]  }
  0x1e   : > { %s484_s26 = sshll.u32 %s2379_s25, 4  ;;  %s2380_s19 = smov [#allocation9]   ;;  %s485_s26 = int_to_ptr.vmem [resolvable:$true] %s484_s26 }
  0x1f   : > { %s2973_s24 = scalar_select %p2540_p10, 1, 0 }
  0x20   : > { %p2009_p11 = pneg %p2540_p10  ;;  %s508_s20 = sshll.u32 %s2380_s19, 4  ;;  %s2552_s20 = int_to_ptr.vmem [resolvable:$true] %s508_s20 }
  0x21   : > { %s2381_s22 = smov [#allocation3]   ;;  %s2975_s5 = sld [smem:[#allocation31_spill]] }
  0x22   : > { %p2548_p12 = pnand %p2952_p9, %p2009_p11  ;;  %s470_s29 = sshll.u32 %s2381_s22, 4  ;;  %s2554_s29 = int_to_ptr.vmem [resolvable:$true] %s470_s29 }
  0x24   : > { %p2564_p0 = pneg %p2548_p12 }
  0x27   : > { %s2131_s25 = scalar_lea.hbm %s2975_s5, 16 }
  0x28   : > { %p2132_p13 = scmp.ne.s32.totalorder %s2975_s5, %s2131_s25  ;;  %p2138_p3 = scmp.lt.u32.totalorder %s2131_s25, %s2975_s5 }
  0x2a   : > { %p2134_p1 = pnand %p2564_p0, %p2132_p13 }
  0x2c   : > { %p2135_p2 = pneg %p2134_p1 }
  0x2e   : > { %p2140_p4 = pnand %p2138_p3, %p2135_p2 }
  0x30   : > { %2143 = shalt.err (!%p2140_p4)
}
  0x31   : > { %s2144_s1 = scalar_lea.vmem %s485_s26, 16  ;;  %s2151_s27 = scalar_lea.vmem %s485_s26, 32 }
  0x32   : > { %p2145_p7 = scmp.ne.s32.totalorder %s485_s26, %s2144_s1  ;;  %p2152_p9 = scmp.lt.s32.totalorder %s485_s26, %s485_s26 }
  0x33   : > { %p2153_p6 = scmp.lt.s32.totalorder %s2151_s27, %s2144_s1 }
  0x34   : > { %p2147_p8 = pnand %p2145_p7, %p2564_p0 }
  0x35   : > { %p2154_p5 = por %p2153_p6, %p2152_p9 }
  0x36   : > { %p2148_p11 = pneg %p2147_p8 }
  0x38   : > { %p2155_p10 = pnand %p2154_p5, %p2148_p11 }
  0x3a   : > { %2158 = shalt.err (!%p2155_p10)
}
  0x3b   : > { %2015 = dma.hbm_to_vmem [thread:$0]  (!%p2548_p12), %s2975_s5, 16, %s485_s26, [#allocation7]  }
  0x3c   : > { %s2159_s22 = scalar_lea.hbm %s2932_s7, 16 }
  0x3d   : > { %p2160_p13 = scmp.ne.s32.totalorder %s2932_s7, %s2159_s22  ;;  %p2166_p5 = scmp.lt.u32.totalorder %s2159_s22, %s2932_s7 }
  0x3f   : > { %p2162_p1 = pnand %p2160_p13, %p2564_p0 }
  0x41   : > { %p2163_p6 = pneg %p2162_p1 }
  0x43   : > { %p2168_p9 = pnand %p2166_p5, %p2163_p6 }
  0x45   : > { %2171 = shalt.err (!%p2168_p9)
}
  0x46   : > { %s2172_s26 = scalar_lea.vmem %s2552_s20, 16  ;;  %s2179_s15 = scalar_lea.vmem %s2552_s20, 32 }
  0x47   : > { %p2173_p10 = scmp.ne.s32.totalorder %s2552_s20, %s2172_s26  ;;  %p2180_p4 = scmp.lt.s32.totalorder %s2552_s20, %s2552_s20 }
  0x48   : > { %p2181_p7 = scmp.lt.s32.totalorder %s2179_s15, %s2172_s26 }
  0x49   : > { %p2175_p2 = pnand %p2173_p10, %p2564_p0 }
  0x4a   : > { %p2182_p8 = por %p2181_p7, %p2180_p4 }
  0x4b   : > { %p2176_p3 = pneg %p2175_p2 }
  0x4d   : > { %p2183_p11 = pnand %p2182_p8, %p2176_p3 }
  0x4f   : > { %2186 = shalt.err (!%p2183_p11)
}
  0x50   : > { %2021 = dma.hbm_to_vmem [thread:$0]  (!%p2548_p12), %s2932_s7, 16, %s2552_s20, [#allocation10]  }
  0x51   : > { %s2977_s3 = sld [smem:[#allocation30_spill]] }
  0x57   : > { %s2187_s25 = scalar_lea.hbm %s2977_s3, 16 }
  0x58   : > { %p2188_p13 = scmp.ne.s32.totalorder %s2977_s3, %s2187_s25  ;;  %p2194_p5 = scmp.lt.u32.totalorder %s2187_s25, %s2977_s3 }
  0x5a   : > { %p2190_p1 = pnand %p2188_p13, %p2564_p0 }
  0x5c   : > { %p2191_p6 = pneg %p2190_p1 }
  0x5e   : > { %p2196_p9 = pnand %p2194_p5, %p2191_p6 }
  0x60   : > { %2199 = shalt.err (!%p2196_p9)
}
  0x61   : > { %s2200_s20 = scalar_lea.vmem %s2554_s29, 16  ;;  %s2207_s15 = scalar_lea.vmem %s2554_s29, 32 }
  0x62   : > { %p2201_p10 = scmp.ne.s32.totalorder %s2554_s29, %s2200_s20  ;;  %p2208_p4 = scmp.lt.s32.totalorder %s2554_s29, %s2554_s29 }
  0x63   : > { %p2209_p7 = scmp.lt.s32.totalorder %s2207_s15, %s2200_s20 }
  0x64   : > { %p2203_p2 = pnand %p2201_p10, %p2564_p0 }
  0x65   : > { %p2210_p8 = por %p2209_p7, %p2208_p4 }
  0x66   : > { %p2204_p3 = pneg %p2203_p2 }
  0x68   : > { %p2211_p11 = pnand %p2210_p8, %p2204_p3 }
  0x6a   : > { %2214 = shalt.err (!%p2211_p11)
}
  0x6b   : > { %2012 = dma.hbm_to_vmem [thread:$0]  (!%p2548_p12), %s2977_s3, 16, %s2554_s29, [#allocation4]  }
  0x6c   : > { %s2382_s23 = smov [#allocation8]   ;;  %s2215_s1 = scalar_lea.hbm %s2931_s6, 256 }
  0x6d   : > { %s494_s18 = sshll.u32 %s2382_s23, 4  ;;  %p2216_p13 = scmp.ne.s32.totalorder %s2931_s6, %s2215_s1  ;;  %s495_s18 = int_to_ptr.vmem [resolvable:$true] %s494_s18 }
  0x6e   : > { %p2222_p5 = scmp.lt.u32.totalorder %s2215_s1, %s2931_s6 }
  0x6f   : > { %p2218_p1 = pnand %p2216_p13, %p2564_p0 }
  0x71   : > { %p2219_p6 = pneg %p2218_p1 }
  0x73   : > { %p2224_p9 = pnand %p2222_p5, %p2219_p6 }
  0x75   : > { %2227 = shalt.err (!%p2224_p9)
}
  0x76   : > { %s2228_s29 = scalar_lea.vmem %s495_s18, 256  ;;  %p2236_p4 = scmp.lt.s32.totalorder %s495_s18, %s495_s18 }
  0x77   : > { %p2229_p10 = scmp.ne.s32.totalorder %s495_s18, %s2228_s29  ;;  %p2237_p7 = scmp.lt.s32.totalorder %s2228_s29, %s2228_s29 }
  0x79   : > { %p2231_p2 = pnand %p2229_p10, %p2564_p0  ;;  %p2238_p8 = por %p2237_p7, %p2236_p4 }
  0x7b   : > { %p2232_p3 = pneg %p2231_p2 }
  0x7d   : > { %p2239_p11 = pnand %p2238_p8, %p2232_p3 }
  0x7f   : > { %2242 = shalt.err (!%p2239_p11)
}
  0x80   : > { %s2383_s2 = smov 64   ;;  %s2384_s30 = smov 4  }
  0x81   : > { %2018 = dma.hbm_to_vmem [thread:$0]  (!%p2548_p12), %s2931_s6, 256, %s495_s18, [#allocation7], %s2383_s2, %s2383_s2, %s2384_s30  }
  0x82   : > { %s2385_s22 = smov [#allocation11]   ;;  %s2386_s27 = smov [#allocation12]  }
  0x83   : > { %s518_s1 = sshll.u32 %s2385_s22, 4  ;;  %s532_s26 = sshll.u32 %s2386_s27, 4  ;;  %s519_s1 = int_to_ptr.vmem [resolvable:$true] %s518_s1  ;;  %s2646_s26 = int_to_ptr.vmem [resolvable:$true] %s532_s26 }
  0x84   : > { %s2243_s29 = scalar_lea.hbm %s2933_s8, 256 }
  0x85   : > { %p2244_p13 = scmp.ne.s32.totalorder %s2933_s8, %s2243_s29  ;;  %p2250_p5 = scmp.lt.u32.totalorder %s2243_s29, %s2933_s8 }
  0x87   : > { %p2246_p1 = pnand %p2244_p13, %p2564_p0 }
  0x89   : > { %p2247_p6 = pneg %p2246_p1 }
  0x8b   : > { %p2252_p9 = pnand %p2250_p5, %p2247_p6 }
  0x8d   : > { %2255 = shalt.err (!%p2252_p9)
}
  0x8e   : > { %s2256_s25 = scalar_lea.vmem %s519_s1, 256  ;;  %p2264_p4 = scmp.lt.s32.totalorder %s519_s1, %s519_s1 }
  0x8f   : > { %p2257_p10 = scmp.ne.s32.totalorder %s519_s1, %s2256_s25  ;;  %p2265_p7 = scmp.lt.s32.totalorder %s2256_s25, %s2256_s25 }
  0x91   : > { %p2259_p2 = pnand %p2257_p10, %p2564_p0  ;;  %p2266_p8 = por %p2265_p7, %p2264_p4 }
  0x93   : > { %p2260_p3 = pneg %p2259_p2 }
  0x95   : > { %p2267_p11 = pnand %p2266_p8, %p2260_p3 }
  0x97   : > { %2270 = shalt.err (!%p2267_p11)
}
  0x98   : > { %2024 = dma.hbm_to_vmem [thread:$0]  (!%p2548_p12), %s2933_s8, 256, %s519_s1, [#allocation10], %s2383_s2, %s2383_s2, %s2384_s30  }
  0x99   : > { %s2271_s20 = scalar_lea.hbm %s2934_s9, 16 }
  0x9a   : > { %p2272_p13 = scmp.ne.s32.totalorder %s2934_s9, %s2271_s20  ;;  %p2278_p5 = scmp.lt.u32.totalorder %s2271_s20, %s2934_s9 }
  0x9c   : > { %p2274_p1 = pnand %p2272_p13, %p2564_p0 }
  0x9e   : > { %p2275_p6 = pneg %p2274_p1 }
  0xa0   : > { %p2280_p9 = pnand %p2278_p5, %p2275_p6 }
  0xa2   : > { %2283 = shalt.err (!%p2280_p9)
}
  0xa3   : > { %s2284_s2 = scalar_lea.vmem %s2646_s26, 16  ;;  %s2291_s30 = scalar_lea.vmem %s2646_s26, 32 }
  0xa4   : > { %p2285_p10 = scmp.ne.s32.totalorder %s2646_s26, %s2284_s2  ;;  %p2292_p4 = scmp.lt.s32.totalorder %s2646_s26, %s2646_s26 }
  0xa5   : > { %p2293_p7 = scmp.lt.s32.totalorder %s2291_s30, %s2284_s2 }
  0xa6   : > { %p2287_p2 = pnand %p2285_p10, %p2564_p0 }
  0xa7   : > { %p2294_p8 = por %p2293_p7, %p2292_p4 }
  0xa8   : > { %p2288_p3 = pneg %p2287_p2 }
  0xaa   : > { %p2295_p11 = pnand %p2294_p8, %p2288_p3 }
  0xac   : > { %2298 = shalt.err (!%p2295_p11)
}
  0xad   : > { %2027 = dma.hbm_to_vmem [thread:$0]  (!%p2548_p12), %s2934_s9, 16, %s2646_s26, [#allocation13]  }
  0xae   : > { %p2978_p13 = scmp.ne.s32.totalorder %s2973_s24, 0 }
  0xaf   : > { %p2979_p0 = scmp.eq.s32.totalorder (!%p2978_p13), %s2512_s0, 0 }
  0xb0   : > { %582 = sbr.rel (%p2978_p13) target bundleno = 2780 (0xadc), region = 92 }
  0xb7   : > { %2344 = dma.done.wait (%p2979_p0), [#allocation4], 16   ;;  %p2980_p1 = pmov %p2979_p0 }
  0xb8   : > { %p2981_p6 = pmov %p2979_p0 }
  0xb9   : > { %2346 = vsyncadd (%p2980_p1), [#allocation4], 4294967280 }
  0xba   : > { %2348 = dma.done.wait (%p2981_p6), [#allocation7], 272   ;;  %p2982_p5 = pmov %p2979_p0 }
  0xbb   : > { %p2983_p9 = pmov %p2979_p0 }
  0xbc   : > { %2350 = vsyncadd (%p2982_p5), [#allocation7], 4294967024 }
  0xbd   : > { %2352 = dma.done.wait (%p2983_p9), [#allocation10], 272   ;;  %p2984_p12 = pmov %p2979_p0 }
  0xbe   : > { %p2985_p10 = pmov %p2979_p0 }
  0xbf   : > { %2354 = vsyncadd (%p2984_p12), [#allocation10], 4294967024 }
  0xc0   : > { %2356 = dma.done.wait (%p2985_p10), [#allocation13], 16   ;;  %p2986_p2 = pmov %p2979_p0 }
  0xc1   : > { %p658_p3 = scmp.lt.s32.totalorder %s2512_s0, 1  ;;  %s2987_s3 = sld [smem:[#allocation27_spill]]  ;;  %vm672_vm0 = vcmask 261120   ;;  %v2094_v8 = vld [vmem:[%s2929_s4] sm:$0xff]   ;;  %v2387_v9 = vmov 0.0   ;;  %v2096_v11 = vld [vmem:[%s2929_s4 + $0x8] sm:$0xff]   ;;  %v906_v61 = vlaneseq }
  0xc2   : > { %2358 = vsyncadd (%p2986_p2), [#allocation13], 4294967280  ;;  %s2988_s20 = sld [smem:[#allocation29_spill]]  ;;  %1883 = vmatprep.subr.bf16.mxu0 %v2387_v9  ;;  %1891 = vmatprep.subr.bf16.mxu1 %v2387_v9  ;;  %vm2388_vm1 = vmmov 0   ;;  %v1799_v20 = vld [vmem:[%s2935_s10] ss:$0 sm:$0xff] }
  0xc3   : > { %s2710_s24 = scalar_select %p658_p3, %s2512_s0, 1  ;;  %1892 = vmatpush3.bf16.msra.mxu1 %v2094_v8  ;;  %1887 = vmatprep.mubr.msk.bf16.mxu0 %vm2388_vm1, %v2387_v9  ;;  %v1800_v23 = vld [vmem:[%s2936_s11] ss:$0 sm:$0xff]  ;;  %v2097_v26 = vld [vmem:[#allocation8] sm:$0xff]   ;;  %v2098_v28 = vld [vmem:[#allocation8 + $0x8] sm:$0xff]   ;;  %vm911_vm4 = vcmask 64512  }
  0xc4   : > { %1893 = vmatprep.subr.bf16.mxu1 %v2387_v9  ;;  %1895 = vmatprep.mubr.msk.bf16.mxu1 %vm2388_vm1, %v2387_v9  ;;  %v1805_v29 = vld [vmem:[#allocation6] ss:$0 sm:$0xff]  ;;  %v1801_v30 = vld [vmem:[#allocation3] ss:$0 sm:$0xff]  ;;  %s2389_s26 = smov 112   ;;  %vm973_vm5 = vcmask 1043456  }
  0xc5   : > { %s1798_s21 = sshll.u32 %s2710_s24, 3  ;;  %v1809_v43 = vld [vmem:[#allocation9] ss:$0 sm:$0xff]  ;;  %s2989_s15 = sld [smem:[#allocation28_spill]]  ;;  %v907_v63 = vshrl.u32 %v906_v61, 7  ;;  %vm1018_vm7 = vcmask 60416  }
  0xc6   : > { %s2393_s23 = smov 16   ;;  %s2394_s18 = smov 24   ;;  %vm1140_vm8 = vcmask 126016   ;;  %vm1259_vm9 = vcmask 191616   ;;  %vm1378_vm10 = vcmask 257216   ;;  %vm1593_vm13 = vcmask 523264  }
  0xc7   : > { %s661_s5 = scalar_lea.vmem %s2987_s3, %s1798_s21  ;;  %1894 = vmatpush3.bf16.msra.mxu1 %v2096_v11  ;;  %s2390_s3 = smov 120  }
  0xc8   : > { %v2716_v0 = vld [vmem:[%s661_s5] sm:$0xff]  ;;  %v2095_v10 = vld [vmem:[%s2988_s20 + $0x8] sm:$0xff]   ;;  %1907 = vmatprep.subr.bf16.mxu1 %v2387_v9  ;;  %s2391_s5 = smov 104   ;;  %s655_s1 = sand.u32 1, %s2369_s28  }
  0xc9   : > { %v673_v1 = vsel %vm672_vm0, %v2716_v0, 0.0  ;;  %v2093_v7 = vld [vmem:[%s2988_s20] sm:$0xff]   ;;  %s1797_s25 = sshll.u32 %s655_s1, 3  ;;  %s2395_s2 = smov [#allocation14]  }
  0xca   : > { %674 = vadd.xlane.f32.xlu0 %v673_v1  ;;  %1884 = vmatpush3.bf16.msra.mxu0 %v2093_v7  ;;  %v908_v1 = vsub.s32 0, %v907_v63  ;;  %s657_s22 = scalar_lea.vmem [#allocation14], %s1797_s25  ;;  %s2303_s30 = sshll.u32 %s2395_s2, 4  ;;  %s2304_s30 = int_to_ptr.vmem [resolvable:$false] %s2303_s30 }
  0xcb   : > { %1885 = vmatprep.subr.bf16.mxu0 %v2387_v9  ;;  %s664_s29 = scalar_lea.vmem %s2989_s15, %s2710_s24  ;;  %s2392_s24 = smov 8  }
  0xcc   : > { %v667_v62 = vld [vmem:[%s664_s29] sm:$0x1]  ;;  %s1653_s27 = sshll.u32 %s657_s22, 4  ;;  %s2305_s25 = scalar_lea.vmem %s2304_s30, 256  ;;  %s2884_s27 = int_to_ptr.vmem [resolvable:$true] %s1653_s27 }
  0xcd   : > { %vm668_vm6 = vcmp.eq.f32.partialorder %v667_v62, 0.0  ;;  %p2306_p13 = scmp.lt.s32.totalorder %s2884_s27, %s2304_s30 }
  0xce   : > { %1886 = vmatpush3.bf16.msra.mxu0 %v2095_v10 }
  0xcf   : > { %1899 = vmatprep.subr.bf16.mxu0 %v2387_v9 }
 0x157   : > { %v675_v2 = vpop.xlane.xlu0 %674 }
 0x158   : > { %v677_v3 = vmul.f32 0.03125, %v675_v2  ;;  %v669_v2 = vsel %vm668_vm6, -1e+09, %v2387_v9 }
 0x15a   : > { %v678_v4 = vsub.f32 %v2716_v0, %v677_v3  ;;  %v909_v3 = vrot.slane %v669_v2, %v908_v1 }
 0x15c   : > { %v679_v5 = vmul.f32 %v678_v4, %v678_v4  ;;  %v700_v21 = vmul.f32 %v1799_v20, %v678_v4 }
 0x15e   : > { %v680_v6 = vsel %vm672_vm0, %v679_v5, 0.0 }
 0x15f   : > { %681 = vadd.xlane.f32.xlu0 %v680_v6 }
 0x1ec   : > { %v682_v12 = vpop.xlane.xlu0 %681 }
 0x1ed   : > { %v684_v13 = vmul.f32 0.032258064, %v682_v12 }
 0x1ef   : > { %2107 = vrsqrt.f32 %v684_v13  ;;  %vm687_vm2 = vcmp.eq.f32.partialorder %v684_v13, inf  ;;  %v690_v16 = vand.u32 2147483648, %v684_v13  ;;  %vm689_vm3 = vcmp.eq.f32.partialorder %v684_v13, 0.0 }
 0x1f9   : > { %v2108_v14 = vpop.eup %2107 }
 0x1fa   : > { %v686_v15 = vmul.f32 %v2108_v14, %v684_v13 }
 0x1fc   : > { %v688_v17 = vsel %vm687_vm2, %v684_v13, %v686_v15 }
 0x1fd   : > { %v691_v18 = vsel %vm689_vm3, %v690_v16, %v688_v17 }
 0x1fe   : > { %v692_v19 = vadd.f32 1e-06, %v691_v18 }
 0x200   : > { %2109 = vrcp.f32 %v692_v19 }
 0x20a   : > { %v2110_v22 = vpop.eup %2109 }
 0x20b   : > { %v701_v24 = vmul.f32 %v2110_v22, %v700_v21 }
 0x20d   : > { %v708_v25 = vadd.f32 %v1800_v23, %v701_v24 }
 0x20f   : > { %v709_v27 = vpack.c.bf16 %v708_v25, %v708_v25 }
 0x211   : > { %1888 = vmatmul.mubr.msk.bf16.vlgmr.msra.gmra.mrb[0].mxu0 %vm672_vm0, %v709_v27  ;;  %1896 = vmatmul.mubr.msk.bf16.vlgmr.msra.gmra.mrb[0].mxu1 %vm672_vm0, %v709_v27 }
 0x212   : > { %1900 = vmatpush3.bf16.msra.mxu0 %v2097_v26  ;;  %1903 = vmatprep.mubr.msk.bf16.mxu0 %vm2388_vm1, %v2387_v9 }
 0x213   : > { %1901 = vmatprep.subr.bf16.mxu0 %v2387_v9  ;;  %1909 = vmatprep.mubr.msk.bf16.mxu1 %vm2388_vm1, %v2387_v9 }
 0x216   : > { %1902 = vmatpush3.bf16.msra.mxu0 %v2098_v28 }
 0x217   : > { %1913 = vmatprep.subr.bf16.mxu0 %v2387_v9 }
 0x219   : > { %1904 = vmatmul.mubr.msk.bf16.vlgmr.msra.gmra.mrb[4].mxu0 %vm672_vm0, %v709_v27 }
 0x21a   : > { %1915 = vmatprep.mubr.msk.bf16.mxu0 %vm2388_vm1, %v2387_v9 }
 0x2e4   : > { %v770_v31 = vpop.f32.mrb[0].mxu0  ;;  %v834_v32 = vpop.f32.mrb[0].mxu1 }
 0x2e5   : > { %v835_v33 = vadd.f32 %v1805_v29, %v834_v32  ;;  %v1889_v34 = vpop.f32.mrb[1].mxu0  ;;  %v1897_v35 = vpop.f32.mrb[1].mxu1  ;;  %v771_v38 = vadd.f32 %v1801_v30, %v770_v31 }
 0x2e6   : > { %v773_v36 = vpop.f32.mrb[2].mxu0  ;;  %v837_v37 = vpop.f32.mrb[2].mxu1 }
 0x2e7   : > { %v840_v39 = vpack.c.bf16 %v835_v33, %v835_v33  ;;  %v1890_v40 = vpop.f32.mrb[3].mxu0  ;;  %v1898_v41 = vpop.f32.mrb[3].mxu1  ;;  %v776_v44 = vpack.c.bf16 %v771_v38, %v771_v38 }
 0x2e9   : > { %1144 = vrot.lane.b32.xlu0 %v840_v39, %s2389_s26  ;;  %1024 = vrot.lane.b32.xlu1 %v840_v39, %s2390_s3  ;;  %v916_v42 = vsel %vm911_vm4, %v840_v39, 0 }
 0x2ea   : > { %1908 = vmatpush3.bf16.xpose.msra.mxu1 %v916_v42 }
 0x2eb   : > { %1919 = vmatprep.subr.bf16.mxu1 %v2387_v9 }
 0x2ec   : > { %v898_v45 = vpop.f32.mrb[4].mxu0 }
 0x2ed   : > { %v899_v46 = vadd.f32 %v1809_v43, %v898_v45  ;;  %1021 = vrot.lane.b32.xlu1 %v776_v44, %s2390_s3  ;;  %v1905_v47 = vpop.f32.mrb[5].mxu0 }
 0x2ee   : > { %v901_v48 = vpop.f32.mrb[6].mxu0 }
 0x2ef   : > { %v2766_v49 = vpack.c.bf16 %v899_v46, %v899_v46  ;;  %v1906_v50 = vpop.f32.mrb[7].mxu0 }
 0x2f1   : > { %1142 = vrot.lane.b32.xlu1 %v776_v44, %s2389_s26  ;;  %1910 = vmatmul.mubr.msk.bf16.vlgmr.msra.gmra.mrb[4].mxu1 %vm911_vm4, %v776_v44  ;;  %v975_v51 = vsel %vm973_vm5, %v2766_v49, 0 }
 0x2f2   : > { %1914 = vmatpush3.bf16.msra.mxu0 %v975_v51  ;;  %1921 = vmatprep.mubr.msk.bf16.mxu1 %vm2388_vm1, %v2387_v9 }
 0x2f3   : > { %1925 = vmatprep.subr.bf16.mxu0 %v2387_v9 }
 0x2f5   : > { %1263 = vrot.lane.b32.xlu1 %v840_v39, %s2391_s5 }
 0x2f9   : > { %1261 = vrot.lane.b32.xlu1 %v776_v44, %s2391_s5 }
 0x35b   : > { %v1025_v52 = vpop.permute.xlu1 %1024  ;;  %v1145_v55 = vpop.permute.xlu0 %1144 }
 0x35c   : > { %v1030_v53 = vsel %vm911_vm4, %v1025_v52, 0  ;;  %v1150_v57 = vsel %vm911_vm4, %v1145_v55, 0 }
 0x35d   : > { %1920 = vmatpush3.bf16.xpose.msra.mxu1 %v1030_v53 }
 0x35e   : > { %1931 = vmatprep.subr.bf16.mxu1 %v2387_v9 }
 0x35f   : > { %v1022_v54 = vpop.permute.xlu1 %1021 }
 0x363   : > { %v1143_v56 = vpop.permute.xlu1 %1142 }
 0x364   : > { %1922 = vmatmul.mubr.msk.bf16.vlgmr.msra.gmra.mrb[8].mxu1 %vm911_vm4, %v1022_v54 }
 0x365   : > { %1932 = vmatpush3.bf16.xpose.msra.mxu1 %v1150_v57  ;;  %1933 = vmatprep.mubr.msk.bf16.mxu1 %vm2388_vm1, %v2387_v9 }
 0x366   : > { %1943 = vmatprep.subr.bf16.mxu1 %v2387_v9 }
 0x367   : > { %v1264_v58 = vpop.permute.xlu1 %1263 }
 0x368   : > { %v1269_v59 = vsel %vm911_vm4, %v1264_v58, 0 }
 0x36b   : > { %v1262_v60 = vpop.permute.xlu1 %1261 }
 0x36c   : > { %1934 = vmatmul.mubr.msk.bf16.vlgmr.msra.gmra.mrb[12].mxu1 %vm911_vm4, %v1143_v56 }
 0x36d   : > { %1944 = vmatpush3.bf16.xpose.msra.mxu1 %v1269_v59  ;;  %1945 = vmatprep.mubr.msk.bf16.mxu1 %vm2388_vm1, %v2387_v9 }
 0x36e   : > { %1955 = vmatprep.subr.bf16.mxu1 %v2387_v9 }
 0x374   : > { %1946 = vmatmul.mubr.msk.bf16.vlgmr.msra.gmra.mrb[16].mxu1 %vm911_vm4, %v1262_v60 }
 0x375   : > { %1959 = vmatprep.mubr.msk.bf16.mxu1 %vm2388_vm1, %v2387_v9 }
 0x3c4   : > { %v952_v4 = vpop.f32.mrb[4].mxu1 }
 0x3c5   : > { %v953_v5 = vadd.f32 %v952_v4, %v909_v3  ;;  %v1911_v6 = vpop.f32.mrb[5].mxu1 }
 0x3c6   : > { %v955_v7 = vpop.f32.mrb[6].mxu1 }
 0x3c7   : > { %v1912_v8 = vpop.f32.mrb[7].mxu1  ;;  %v958_v10 = vsel %vm911_vm4, %v953_v5, -inf }
 0x3c8   : > { %959 = vmax.xlane.f32.xlu1 %v958_v10 }
 0x437   : > { %v1066_v11 = vpop.f32.mrb[8].mxu1 }
 0x438   : > { %v1067_v12 = vadd.f32 %v1066_v11, %v909_v3  ;;  %v1923_v13 = vpop.f32.mrb[9].mxu1 }
 0x439   : > { %v1069_v14 = vpop.f32.mrb[10].mxu1 }
 0x43a   : > { %v1924_v15 = vpop.f32.mrb[11].mxu1  ;;  %v1072_v16 = vsel %vm911_vm4, %v1067_v12, -inf }
 0x43b   : > { %1073 = vmax.xlane.f32.xlu0 %v1072_v16 }
 0x43f   : > { %v1186_v17 = vpop.f32.mrb[12].mxu1 }
 0x440   : > { %v1187_v18 = vadd.f32 %v1186_v17, %v909_v3  ;;  %v1935_v19 = vpop.f32.mrb[13].mxu1 }
 0x441   : > { %v1189_v20 = vpop.f32.mrb[14].mxu1 }
 0x442   : > { %v1936_v21 = vpop.f32.mrb[15].mxu1  ;;  %v1192_v22 = vsel %vm911_vm4, %v1187_v18, -inf }
 0x443   : > { %1193 = vmax.xlane.f32.xlu1 %v1192_v22 }
 0x447   : > { %v1305_v23 = vpop.f32.mrb[16].mxu1 }
 0x448   : > { %v1306_v24 = vadd.f32 %v1305_v23, %v909_v3  ;;  %v1947_v25 = vpop.f32.mrb[17].mxu1 }
 0x449   : > { %v1308_v26 = vpop.f32.mrb[18].mxu1  ;;  %v2100_v25 = vld [vmem:[#allocation11 + $0x8] sm:$0xff]  }
 0x44a   : > { %v1948_v27 = vpop.f32.mrb[19].mxu1  ;;  %v1311_v28 = vsel %vm911_vm4, %v1306_v24, -inf }
 0x44b   : > { %1312 = vmax.xlane.f32.xlu1 %v1311_v28 }
 0x455   : > { %v960_v29 = vpop.xlane.xlu1 %959 }
 0x456   : > { %v961_v30 = vsub.f32 %v953_v5, %v960_v29 }
 0x458   : > { %v962_v31 = vmul.f32 1.442695, %v961_v30 }
 0x45a   : > { %2111 = vpow2.f32 %v962_v31 }
 0x464   : > { %v2112_v32 = vpop.eup %2111 }
 0x465   : > { %v964_v33 = vsel %vm911_vm4, %v2112_v32, 0.0 }
 0x466   : > { %965 = vadd.xlane.f32.xlu0 %v964_v33 }
 0x4c8   : > { %v1074_v34 = vpop.xlane.xlu0 %1073 }
 0x4c9   : > { %v1075_v35 = vsub.f32 %v1067_v12, %v1074_v34 }
 0x4cb   : > { %v1076_v36 = vmul.f32 1.442695, %v1075_v35 }
 0x4cd   : > { %2113 = vpow2.f32 %v1076_v36  ;;  %v1827_v36 = vld [vmem:[#allocation12] ss:$0 sm:$0xff] }
 0x4d0   : > { %v1194_v37 = vpop.xlane.xlu1 %1193 }
 0x4d1   : > { %v1195_v38 = vsub.f32 %v1187_v18, %v1194_v37 }
 0x4d3   : > { %v1196_v39 = vmul.f32 1.442695, %v1195_v38 }
 0x4d5   : > { %2115 = vpow2.f32 %v1196_v39 }
 0x4d7   : > { %v2114_v40 = vpop.eup %2113 }
 0x4d8   : > { %v1078_v41 = vsel %vm911_vm4, %v2114_v40, 0.0  ;;  %v1313_v45 = vpop.xlane.xlu1 %1312 }
 0x4d9   : > { %1079 = vadd.xlane.f32.xlu1 %v1078_v41  ;;  %v1314_v46 = vsub.f32 %v1306_v24, %v1313_v45  ;;  %v2099_v24 = vld [vmem:[#allocation11] sm:$0xff]  }
 0x4da   : > { %1956 = vmatpush3.bf16.msra.mxu1 %v2099_v24 }
 0x4db   : > { %v1315_v47 = vmul.f32 1.442695, %v1314_v46  ;;  %1957 = vmatprep.subr.bf16.mxu1 %v2387_v9 }
 0x4de   : > { %1958 = vmatpush3.bf16.msra.mxu1 %v2100_v25 }
 0x4df   : > { %v2116_v42 = vpop.eup %2115  ;;  %1971 = vmatprep.subr.bf16.mxu1 %v2387_v9 }
 0x4e0   : > { %v1198_v43 = vsel %vm911_vm4, %v2116_v42, 0.0 }
 0x4e1   : > { %1199 = vadd.xlane.f32.xlu0 %v1198_v43 }
 0x4ea   : > { %1204 = vrot.lane.b32.xlu1 %v2766_v49, %s2389_s26  ;;  %s2990_s26 = sld [smem:[#allocation32_spill]] }
 0x4f3   : > { %v966_v44 = vpop.xlane.xlu0 %965 }
 0x4f4   : > { %2117 = vrcp.f32 %v966_v44 }
 0x4f5   : > { %2119 = vpow2.f32 %v1315_v47 }
 0x4f7   : > { %1085 = vrot.lane.b32.xlu0 %v2766_v49, %s2390_s3  ;;  %s2991_s3 = sld [smem:[#allocation25_spill]] }
 0x4fd   : > { %p2993_p7 = scmp.ne.s32.totalorder %s2991_s3, 0 }
 0x4fe   : > { %v2118_v48 = vpop.eup %2117 }
 0x4ff   : > { %v968_v50 = vmul.f32 %v2118_v48, %v2112_v32  ;;  %v2120_v52 = vpop.eup %2119  ;;  %v2102_v48 = vld [vmem:[%s2937_s12 + $0x8] sm:$0xff]  }
 0x500   : > { %v1317_v53 = vsel %vm911_vm4, %v2120_v52, 0.0 }
 0x501   : > { %v969_v51 = vpack.c.bf16 %v968_v50, %v968_v50  ;;  %v2103_v50 = vld [vmem:[%s2939_s14] sm:$0xff]  }
 0x503   : > { %1916 = vmatmul.mubr.msk.bf16.vlgmr.msra.gmra.mrb[8].mxu0 %vm911_vm4, %v969_v51  ;;  %v2104_v51 = vld [vmem:[%s2939_s14 + $0x8] sm:$0xff]  }
 0x504   : > { %1927 = vmatprep.mubr.msk.bf16.mxu0 %vm2388_vm1, %v2387_v9 }
 0x50e   : > { %1318 = vadd.xlane.f32.xlu1 %v1317_v53 }
 0x51f   : > { %1323 = vrot.lane.b32.xlu1 %v2766_v49, %s2391_s5  ;;  %s1841_s5 = sshll.u32 %s2512_s0, 7  ;;  %s1640_s0 = scalar_lea.sflag [#allocation5], %s655_s1 }
 0x566   : > { %v1080_v54 = vpop.xlane.xlu1 %1079 }
 0x567   : > { %2121 = vrcp.f32 %v1080_v54 }
 0x56a   : > { %v1205_v60 = vpop.permute.xlu1 %1204 }
 0x56b   : > { %v1210_v62 = vsel %vm973_vm5, %v1205_v60, 0  ;;  %v1828_v60 = vld [vmem:[%s2941_s16] ss:$0 sm:$0xff] }
 0x56e   : > { %v1200_v55 = vpop.xlane.xlu0 %1199 }
 0x56f   : > { %2123 = vrcp.f32 %v1200_v55 }
 0x571   : > { %v2122_v56 = vpop.eup %2121 }
 0x572   : > { %v1082_v57 = vmul.f32 %v2122_v56, %v2114_v40  ;;  %v1086_v58 = vpop.permute.xlu0 %1085 }
 0x573   : > { %v1091_v59 = vsel %vm973_vm5, %v1086_v58, 0 }
 0x574   : > { %1926 = vmatpush3.bf16.msra.mxu0 %v1091_v59  ;;  %v1083_v61 = vpack.c.bf16 %v1082_v57, %v1082_v57 }
 0x575   : > { %1937 = vmatprep.subr.bf16.mxu0 %v2387_v9 }
 0x577   : > { %1928 = vmatmul.mubr.msk.bf16.vlgmr.msra.gmra.mrb[12].mxu0 %vm911_vm4, %v1083_v61 }
 0x578   : > { %1938 = vmatpush3.bf16.msra.mxu0 %v1210_v62  ;;  %1939 = vmatprep.mubr.msk.bf16.mxu0 %vm2388_vm1, %v2387_v9 }
 0x579   : > { %v2124_v49 = vpop.eup %2123  ;;  %1949 = vmatprep.subr.bf16.mxu0 %v2387_v9 }
 0x57a   : > { %v1202_v63 = vmul.f32 %v2124_v49, %v2116_v42  ;;  %v1829_v49 = vld [vmem:[%s2942_s17] ss:$0 sm:$0xff] }
 0x57c   : > { %v1203_v1 = vpack.c.bf16 %v1202_v63, %v1202_v63 }
 0x57f   : > { %1940 = vmatmul.mubr.msk.bf16.vlgmr.msra.gmra.mrb[16].mxu0 %vm911_vm4, %v1203_v1 }
 0x580   : > { %1951 = vmatprep.mubr.msk.bf16.mxu0 %vm2388_vm1, %v2387_v9 }
 0x59b   : > { %v1319_v2 = vpop.xlane.xlu1 %1318 }
 0x59c   : > { %2125 = vrcp.f32 %v1319_v2 }
 0x59f   : > { %v1324_v3 = vpop.permute.xlu1 %1323 }
 0x5a0   : > { %v1329_v4 = vsel %vm973_vm5, %v1324_v3, 0  ;;  %v2105_v3 = vld [vmem:[%s2939_s14 + $0x10] sm:$0xff]  }
 0x5a1   : > { %1950 = vmatpush3.bf16.msra.mxu0 %v1329_v4  ;;  %v2106_v4 = vld [vmem:[%s2939_s14 + $0x18] sm:$0xff]  }
 0x5a2   : > { %1963 = vmatprep.subr.bf16.mxu0 %v2387_v9 }
 0x5a6   : > { %v2126_v5 = vpop.eup %2125 }
 0x5a7   : > { %v1321_v6 = vmul.f32 %v2126_v5, %v2120_v52  ;;  %v1830_v5 = vld [vmem:[%s2938_s13] ss:$0 sm:$0xff] }
 0x5a9   : > { %v1322_v7 = vpack.c.bf16 %v1321_v6, %v1321_v6 }
 0x5ab   : > { %1952 = vmatmul.mubr.msk.bf16.vlgmr.msra.gmra.mrb[20].mxu0 %vm911_vm4, %v1322_v7 }
 0x5ac   : > { %1967 = vmatprep.mubr.msk.bf16.mxu0 %vm2388_vm1, %v2387_v9 }
 0x5d6   : > { %v1011_v8 = vpop.f32.mrb[8].mxu0 }
 0x5d7   : > { %v1017_v10 = vpack.c.bf16 %v1011_v8, %v1011_v8  ;;  %v1917_v11 = vpop.f32.mrb[9].mxu0 }
 0x5d8   : > { %v1014_v12 = vpop.f32.mrb[10].mxu0 }
 0x5d9   : > { %1019 = vst.msk [vmem:[#allocation2] sm:$0xf] %vm1018_vm7, %v1017_v10  ;;  %v1918_v13 = vpop.f32.mrb[11].mxu0 }
 0x64a   : > { %v1127_v14 = vpop.f32.mrb[12].mxu0 }
 0x64b   : > { %v1844_v15 = vpack.c.bf16 %v1127_v14, %v1127_v14  ;;  %v1929_v16 = vpop.f32.mrb[13].mxu0 }
 0x64c   : > { %v1130_v17 = vpop.f32.mrb[14].mxu0 }
 0x64d   : > { %1137 = vrot.lane.b32.xlu0 %v1844_v15, %s2392_s24  ;;  %v1930_v18 = vpop.f32.mrb[15].mxu0  ;;  %s2992_s24 = sld [smem:[#allocation33_spill]] }
 0x652   : > { %v1246_v19 = vpop.f32.mrb[16].mxu0 }
 0x653   : > { %v1845_v20 = vpack.c.bf16 %v1246_v19, %v1246_v19  ;;  %v1941_v21 = vpop.f32.mrb[17].mxu0 }
 0x654   : > { %v1249_v22 = vpop.f32.mrb[18].mxu0 }
 0x655   : > { %1256 = vrot.lane.b32.xlu1 %v1845_v20, %s2393_s23  ;;  %v1942_v23 = vpop.f32.mrb[19].mxu0  ;;  %s2882_s23 = scalar_lea.hbm %s2992_s24, %s1841_s5 }
 0x67e   : > { %v1365_v26 = vpop.f32.mrb[20].mxu0 }
 0x67f   : > { %v1846_v27 = vpack.c.bf16 %v1365_v26, %v1365_v26  ;;  %v1953_v28 = vpop.f32.mrb[21].mxu0 }
 0x680   : > { %v1368_v29 = vpop.f32.mrb[22].mxu0 }
 0x681   : > { %1375 = vrot.lane.b32.xlu0 %v1846_v27, %s2394_s18  ;;  %v1954_v30 = vpop.f32.mrb[23].mxu0  ;;  %s2299_s18 = scalar_lea.vmem %s2884_s27, 128 }
 0x682   : > { %p2300_p4 = scmp.ne.s32.totalorder %s2884_s27, %s2299_s18  ;;  %p2307_p0 = scmp.lt.s32.totalorder %s2305_s25, %s2299_s18 }
 0x684   : > { %p2301_p8 = pnand %p2300_p4, %p2993_p7  ;;  %p2308_p1 = por %p2307_p0, %p2306_p13 }
 0x686   : > { %p2302_p11 = pneg %p2301_p8 }
 0x688   : > { %p2309_p6 = pnand %p2308_p1, %p2302_p11 }
 0x6bf   : > { %v1138_v31 = vpop.permute.xlu0 %1137 }
 0x6c0   : > { %1141 = vst.msk [vmem:[#allocation2] sm:$0xf] %vm1140_vm8, %v1138_v31 }
 0x6c7   : > { %v1257_v32 = vpop.permute.xlu1 %1256 }
 0x6c8   : > { %1260 = vst.msk [vmem:[#allocation2] sm:$0xf] %vm1259_vm9, %v1257_v32 }
 0x6f3   : > { %v1376_v33 = vpop.permute.xlu0 %1375 }
 0x6f4   : > { %1379 = vst.msk [vmem:[#allocation2] sm:$0xf] %vm1378_vm10, %v1376_v33 }
 0x6fb   : > { %v1380_v34 = vld [vmem:[#allocation2] sm:$0xf] }
 0x6fc   : > { %1960 = vmatmul.mubr.msk.bf16.vlgmr.msra.gmra.mrb[20].mxu1 %vm672_vm0, %v1380_v34 }
 0x6fd   : > { %1979 = vmatprep.mubr.msk.bf16.mxu1 %vm2388_vm1, %v2387_v9  ;;  %1972 = vmatpush3.bf16.msra.mxu1 %v2103_v50 }
 0x6fe   : > { %1973 = vmatprep.subr.bf16.mxu1 %v2387_v9 }
 0x701   : > { %1974 = vmatpush3.bf16.msra.mxu1 %v2104_v51 }
 0x702   : > { %1975 = vmatprep.subr.bf16.mxu1 %v2387_v9 }
 0x705   : > { %1976 = vmatpush3.bf16.msra.mxu1 %v2105_v3 }
 0x706   : > { %1977 = vmatprep.subr.bf16.mxu1 %v2387_v9 }
 0x709   : > { %1978 = vmatpush3.bf16.msra.mxu1 %v2106_v4 }
 0x7cf   : > { %v1434_v35 = vpop.f32.mrb[20].mxu1 }
 0x7d0   : > { %v1440_v37 = vadd.f32 %v1434_v35, %v2716_v0  ;;  %v1961_v38 = vpop.f32.mrb[21].mxu1  ;;  %v2101_v0 = vld [vmem:[%s2937_s12] sm:$0xff]  }
 0x7d1   : > { %v1437_v39 = vpop.f32.mrb[22].mxu1  ;;  %1964 = vmatpush3.bf16.msra.mxu0 %v2101_v0 }
 0x7d2   : > { %v2835_v40 = vadd.f32 %v1827_v36, %v1440_v37  ;;  %v1962_v41 = vpop.f32.mrb[23].mxu1  ;;  %1965 = vmatprep.subr.bf16.mxu0 %v2387_v9  ;;  %v1834_v9 = vld [vmem:[%s2990_s26] ss:$0 sm:$0xff] }
 0x7d4   : > { %v1451_v42 = vsel %vm672_vm0, %v2835_v40, 0.0 }
 0x7d5   : > { %1452 = vadd.xlane.f32.xlu1 %v1451_v42  ;;  %1966 = vmatpush3.bf16.msra.mxu0 %v2102_v48 }
 0x862   : > { %v1453_v43 = vpop.xlane.xlu1 %1452 }
 0x863   : > { %v1454_v44 = vmul.f32 0.03125, %v1453_v43 }
 0x865   : > { %v1455_v45 = vsub.f32 %v2835_v40, %v1454_v44 }
 0x867   : > { %v1456_v46 = vmul.f32 %v1455_v45, %v1455_v45  ;;  %v1476_v61 = vmul.f32 %v1828_v60, %v1455_v45 }
 0x869   : > { %v1457_v47 = vsel %vm672_vm0, %v1456_v46, 0.0 }
 0x86a   : > { %1458 = vadd.xlane.f32.xlu0 %v1457_v47 }
 0x8f7   : > { %v1459_v52 = vpop.xlane.xlu0 %1458 }
 0x8f8   : > { %v1460_v53 = vmul.f32 0.032258064, %v1459_v52 }
 0x8fa   : > { %2127 = vrsqrt.f32 %v1460_v53  ;;  %vm1463_vm11 = vcmp.eq.f32.partialorder %v1460_v53, inf  ;;  %v1466_v56 = vand.u32 2147483648, %v1460_v53  ;;  %vm1465_vm12 = vcmp.eq.f32.partialorder %v1460_v53, 0.0 }
 0x904   : > { %v2128_v54 = vpop.eup %2127 }
 0x905   : > { %v1462_v55 = vmul.f32 %v2128_v54, %v1460_v53 }
 0x907   : > { %v1464_v57 = vsel %vm1463_vm11, %v1460_v53, %v1462_v55 }
 0x908   : > { %v1467_v58 = vsel %vm1465_vm12, %v1466_v56, %v1464_v57 }
 0x909   : > { %v1468_v59 = vadd.f32 1e-06, %v1467_v58 }
 0x90b   : > { %2129 = vrcp.f32 %v1468_v59 }
 0x915   : > { %v2130_v62 = vpop.eup %2129 }
 0x916   : > { %v1477_v63 = vmul.f32 %v2130_v62, %v1476_v61 }
 0x918   : > { %v1484_v1 = vadd.f32 %v1829_v49, %v1477_v63 }
 0x91a   : > { %v1485_v2 = vpack.c.bf16 %v1484_v1, %v1484_v1 }
 0x91c   : > { %1968 = vmatmul.mubr.msk.bf16.vlgmr.msra.gmra.mrb[24].mxu0 %vm672_vm0, %v1485_v2 }
 0x9ef   : > { %v1546_v6 = vpop.f32.mrb[24].mxu0 }
 0x9f0   : > { %v1547_v7 = vadd.f32 %v1830_v5, %v1546_v6  ;;  %v1969_v8 = vpop.f32.mrb[25].mxu0 }
 0x9f1   : > { %v1549_v10 = vpop.f32.mrb[26].mxu0 }
 0x9f2   : > { %v1552_v11 = vmax.f32 %v1547_v7, 0.0  ;;  %v1970_v12 = vpop.f32.mrb[27].mxu0 }
 0x9f4   : > { %v1553_v13 = vpack.c.bf16 %v1552_v11, %v1552_v11 }
 0x9f6   : > { %1980 = vmatmul.mubr.msk.bf16.vlgmr.msra.gmra.mrb[24].mxu1 %vm1593_vm13, %v1553_v13 }
 0xac9   : > { %v1631_v14 = vpop.f32.mrb[24].mxu1 }
 0xaca   : > { %v1632_v15 = vadd.f32 %v1834_v9, %v1631_v14  ;;  %v1981_v16 = vpop.f32.mrb[25].mxu1 }
 0xacb   : > { %v1634_v17 = vpop.f32.mrb[26].mxu1 }
 0xacc   : > { %v1637_v18 = vadd.f32 %v1632_v15, %v2835_v40  ;;  %v1982_v19 = vpop.f32.mrb[27].mxu1 }
 0xace   : > { %1638 = vst.msk [vmem:[%s657_s22] sm:$0xff] %vm672_vm0, %v1637_v18 }
 0xacf   : > { %2312 = shalt.err (!%p2309_p6)
}
 0xad0   : > { %s2313_s1 = scalar_lea.hbm %s2882_s23, 128  ;;  %s2317_s26 = scalar_lea.hbm %s2992_s24, 256 }
 0xad1   : > { %p2314_p5 = scmp.ne.s32.totalorder %s2882_s23, %s2313_s1  ;;  %p2318_p10 = scmp.lt.u32.totalorder %s2882_s23, %s2992_s24 }
 0xad2   : > { %p2319_p2 = scmp.lt.u32.totalorder %s2317_s26, %s2313_s1  ;;  %p2321_p4 = scmp.lt.u32.totalorder %s2313_s1, %s2882_s23 }
 0xad3   : > { %p2315_p9 = pnand %p2314_p5, %p2993_p7 }
 0xad4   : > { %p2320_p3 = por %p2319_p2, %p2318_p10 }
 0xad5   : > { %p2316_p12 = pneg %p2315_p9 }
 0xad6   : > { %p2322_p8 = por %p2321_p4, %p2320_p3 }
 0xad8   : > { %p2323_p11 = pnand %p2322_p8, %p2316_p12 }
 0xada   : > { %2326 = shalt.err (!%p2323_p11)
}
 0xadb   : > { %2007 = dma.vmem_to_hbm [thread:$0]  (%p2993_p7), %s2884_s27, 128, %s2882_s23, %s1640_s0  }
 0xadc PF: > { %s2994_s15 = sld [smem:[#allocation22_spill]]  ;;  %s2995_s29 = sld [smem:[#allocation20_spill]] }
 0xadd   : > { %s2996_s18 = sld [smem:[#allocation26_spill]] }
 0xae2   : > { %p2044_p13 = scmp.ge.s32.totalorder %s2994_s15, 2  ;;  %s1665_s2 = sand.u32 1, %s2995_s29  }
 0xae3   : > { %p2997_p0 = scmp.ne.s32.totalorder %s2996_s18, 0  ;;  %s1666_s30 = scalar_lea.sflag [#allocation5], %s1665_s2 }
 0xae5   : > { %p2029_p1 = pnand %p2044_p13, %p2997_p0 }
 0xae7   : > { %2360 = dma.done.wait (!%p2029_p1), %s1666_s30, 128  }
 0xae8   : > { %2362 = vsyncadd (!%p2029_p1), %s1666_s30, 4294967168  ;;  %s2998_s30 = sld [smem:[#allocation23_spill]]  ;;  %s2999_s25 = sld [smem:[#allocation21_spill]] }
 0xae9   : > { %s3000_s29 = sld [smem:[#allocation24_spill]]  ;;  %s3001_s27 = smov %s2369_s28 }
 0xaee   : > { %p32_p6 = scmp.ge.s32.totalorder %s2998_s30, 4   ;;  %s3002_s28 = smov %s2999_s25 }
 0xaf0   :  { %34 = sbr.rel (!%p32_p6) target bundleno = 15 (0xf), region = 155 }
 0xaf7   :  { %1671 = vsyncpa [#allocation4], 1 }
 0xaf8   :  { %1673 = vsyncpa [#allocation4 + $0x1], 1 }
 0xaf9   :  { %1674 = vsyncpa [#allocation7], 1 }
 0xafa   :  { %1675 = vsyncpa [#allocation10], 1 }
 0xafb   :  { %1676 = vsyncpa [#allocation13], 1 }
 0xafc   :  { %1677 = vsyncpa [#allocation5], 1 }
 0xafd   :  { %1679 = vsyncpa [#allocation5 + $0x1], 1 }

</bundles_post_ra>
